<compile_context>
chip_gen: v7x
topology: tpu7x:2x2x1
jax: 0.10.0
libtpu: 0.0.40
codegen_flags: <defaults>
</compile_context>

<pallas_src>
import functools
import math

import jax
import jax.numpy as jnp
from jax.experimental import pallas as pl
from jax.experimental.pallas import tpu as pltpu


# ----------------------------- args ----------------------------------------
class Args:
    attn_embed_dim = 32
    attn_n_heads = 4
    rnn_hidden_dim = 32
    n_actions = 5
    n_agents = 3


def _round_up(x, m):
    return ((x + m - 1) // m) * m


# --------------- kernel 1a: fc1 + attention + fc2 + input gates ------------
def _encoder_attn_kernel(ent_ref, pre_ref, post_ref, w1_ref, b1_ref,
                         wq_ref, wk_ref, wv_ref, wout_ref, bout_ref,
                         w2_ref, b2_ref, wih_ref, bih_ref,
                         gir_ref, giz_ref, gin_ref, *, n_heads):
    Bb, ne, ed = ent_ref.shape
    na = pre_ref.shape[1]
    E = wq_ref.shape[1]
    H = w2_ref.shape[1]
    hd = E // n_heads
    inv_scale = 1.0 / math.sqrt(float(hd))

    def bmm(x, w):  # (Bb, m, k) @ (k, n) -> (Bb, m, n) as a batched MXU matmul
        wb = jnp.broadcast_to(w, (Bb,) + w.shape)
        return jnp.einsum('bmk,bkn->bmn', x, wb, preferred_element_type=jnp.float32)

    ent = ent_ref[...]                                                   # (Bb, ne, ed)
    x1 = jnp.maximum(bmm(ent, w1_ref[...]) + b1_ref[...], 0.0)           # (Bb, ne, E)

    q = bmm(x1[:, :na, :], wq_ref[...])                                  # (Bb, na, E)
    k = bmm(x1, wk_ref[...])                                             # (Bb, ne, E)
    v = bmm(x1, wv_ref[...])                                             # (Bb, ne, E)

    valid = pre_ref[...] == 0.0                                          # (Bb, na, ne)
    wout = wout_ref[...]
    acc = jnp.zeros((Bb, na, E), jnp.float32)
    for h in range(n_heads):
        sl = slice(h * hd, (h + 1) * hd)
        logits = jnp.einsum('bqd,bkd->bqk', q[..., sl], k[..., sl],
                            preferred_element_type=jnp.float32) * inv_scale
        logits = jnp.where(valid, logits, -1e30)
        m = jnp.max(logits, axis=-1, keepdims=True)
        e = jnp.where(valid, jnp.exp(logits - m), 0.0)
        denom = jnp.sum(e, axis=-1, keepdims=True)
        wgt = e / jnp.where(denom == 0.0, 1.0, denom)    # fully-masked row -> zeros
        head_out = jnp.einsum('bqk,bkd->bqd', wgt, v[..., sl],
                              preferred_element_type=jnp.float32)        # (Bb, na, hd)
        # accumulate output projection per head: avoids an 8-lane concatenate
        acc = acc + jnp.einsum('bqd,bde->bqe', head_out,
                               jnp.broadcast_to(wout[sl, :], (Bb, hd, E)),
                               preferred_element_type=jnp.float32)

    out = acc + bout_ref[...]                                            # (Bb, na, E)
    out = jnp.where(post_ref[...] != 0.0, 0.0, out)                      # post-mask
    x3 = jnp.maximum(bmm(out, w2_ref[...]) + b2_ref[...], 0.0)           # (Bb, na, H)
    gi = bmm(x3, wih_ref[...]) + bih_ref[...]                            # (Bb, na, 3H)
    gir_ref[...] = gi[..., :H]
    giz_ref[...] = gi[..., H:2 * H]
    gin_ref[...] = gi[..., 2 * H:]


def encode_attn(ent, pre, post, p, n_heads, block_b=8):
    B, ne, ed = ent.shape
    na = pre.shape[1]
    E = p['w1'].shape[1]
    H = p['w2'].shape[1]
    Bblk = min(block_b, B)
    Bp = _round_up(B, Bblk)
    if Bp != B:
        pad = Bp - B
        ent = jnp.pad(ent, ((0, pad), (0, 0), (0, 0)))
        pre = jnp.pad(pre, ((0, pad), (0, 0), (0, 0)))
        post = jnp.pad(post, ((0, pad), (0, 0), (0, 0)), constant_values=1.0)

    wqkv = p['wqkv']
    wq_a, wk_a, wv_a = wqkv[:, :E], wqkv[:, E:2 * E], wqkv[:, 2 * E:]

    outs = pl.pallas_call(
        functools.partial(_encoder_attn_kernel, n_heads=n_heads),
        out_shape=tuple(jax.ShapeDtypeStruct((Bp, na, H), jnp.float32) for _ in range(3)),
        grid=(Bp // Bblk,),
        in_specs=[pl.BlockSpec((Bblk, ne, ed), lambda i: (i, 0, 0)),
                  pl.BlockSpec((Bblk, na, ne), lambda i: (i, 0, 0)),
                  pl.BlockSpec((Bblk, na, 1), lambda i: (i, 0, 0)),
                  pl.BlockSpec((ed, E), lambda i: (0, 0)),
                  pl.BlockSpec((1, E), lambda i: (0, 0)),
                  pl.BlockSpec((E, E), lambda i: (0, 0)),
                  pl.BlockSpec((E, E), lambda i: (0, 0)),
                  pl.BlockSpec((E, E), lambda i: (0, 0)),
                  pl.BlockSpec((E, E), lambda i: (0, 0)),
                  pl.BlockSpec((1, E), lambda i: (0, 0)),
                  pl.BlockSpec((E, H), lambda i: (0, 0)),
                  pl.BlockSpec((1, H), lambda i: (0, 0)),
                  pl.BlockSpec((H, 3 * H), lambda i: (0, 0)),
                  pl.BlockSpec((1, 3 * H), lambda i: (0, 0))],
        out_specs=tuple(pl.BlockSpec((Bblk, na, H), lambda i: (i, 0, 0)) for _ in range(3)),
        compiler_params=pltpu.CompilerParams(dimension_semantics=("parallel",)),
    )(ent, pre, post, p['w1'], p['b1'].reshape(1, E), wq_a, wk_a, wv_a,
      p['wout'], p['bout'].reshape(1, E), p['w2'], p['b2'].reshape(1, H),
      p['wih'], p['bih'].reshape(1, 3 * H))
    return tuple(o[:B] for o in outs)


# --------------- kernel 1b: fc1 + fc2 + input gates (avg net) --------------
def _mlp_gi_kernel(x_ref, w1_ref, b1_ref, w2_ref, b2_ref, wih_ref, bih_ref,
                   gir_ref, giz_ref, gin_ref):
    H = gir_ref.shape[-1]
    x1 = jnp.maximum(jnp.dot(x_ref[...], w1_ref[...],
                             preferred_element_type=jnp.float32) + b1_ref[...], 0.0)
    x3 = jnp.maximum(jnp.dot(x1, w2_ref[...],
                             preferred_element_type=jnp.float32) + b2_ref[...], 0.0)
    gi = jnp.dot(x3, wih_ref[...], preferred_element_type=jnp.float32) + bih_ref[...]
    gir_ref[...] = gi[:, :H]
    giz_ref[...] = gi[:, H:2 * H]
    gin_ref[...] = gi[:, 2 * H:]


def encode_mlp(x_flat, p, tm_max=256):
    M, ed = x_flat.shape
    E = p['w1'].shape[1]
    H = p['w2'].shape[1]
    Mp8 = _round_up(M, 8)
    TM = min(tm_max, Mp8)
    Mp = _round_up(Mp8, TM)
    if Mp != M:
        x_flat = jnp.pad(x_flat, ((0, Mp - M), (0, 0)))
    outs = pl.pallas_call(
        _mlp_gi_kernel,
        out_shape=tuple(jax.ShapeDtypeStruct((Mp, H), jnp.float32) for _ in range(3)),
        grid=(Mp // TM,),
        in_specs=[pl.BlockSpec((TM, ed), lambda i: (i, 0)),
                  pl.BlockSpec((ed, E), lambda i: (0, 0)),
                  pl.BlockSpec((1, E), lambda i: (0, 0)),
                  pl.BlockSpec((E, H), lambda i: (0, 0)),
                  pl.BlockSpec((1, H), lambda i: (0, 0)),
                  pl.BlockSpec((H, 3 * H), lambda i: (0, 0)),
                  pl.BlockSpec((1, 3 * H), lambda i: (0, 0))],
        out_specs=tuple(pl.BlockSpec((TM, H), lambda i: (i, 0)) for _ in range(3)),
        compiler_params=pltpu.CompilerParams(dimension_semantics=("parallel",)),
    )(x_flat, p['w1'], p['b1'].reshape(1, E), p['w2'], p['b2'].reshape(1, H),
      p['wih'], p['bih'].reshape(1, 3 * H))
    return tuple(o[:M] for o in outs)


# ----------------------------- kernel 2: GRU recurrence ---------------------
def _gru_kernel(gir_ref, giz_ref, gin_ref, h0_ref,
                whr_ref, whz_ref, whn_ref, bhr_ref, bhz_ref, bhn_ref,
                hs_ref, h_scr):
    t = pl.program_id(0)

    @pl.when(t == 0)
    def _():
        h_scr[...] = h0_ref[...]

    h = h_scr[...]                                                        # (Bp, H)
    gh_r = jnp.dot(h, whr_ref[...], preferred_element_type=jnp.float32) + bhr_ref[...]
    gh_z = jnp.dot(h, whz_ref[...], preferred_element_type=jnp.float32) + bhz_ref[...]
    gh_n = jnp.dot(h, whn_ref[...], preferred_element_type=jnp.float32) + bhn_ref[...]
    r = jax.nn.sigmoid(gir_ref[0] + gh_r)
    z = jax.nn.sigmoid(giz_ref[0] + gh_z)
    n = jnp.tanh(gin_ref[0] + r * gh_n)
    hn = (1.0 - z) * n + z * h
    h_scr[...] = hn
    hs_ref[0] = hn


def gru_sequence(gir, giz, gin, h0, p):
    ts, Bp, H = gir.shape
    whh, bhh = p['whh'], p['bhh']
    whr, whz, whn = whh[:, :H], whh[:, H:2 * H], whh[:, 2 * H:]
    bhr = bhh[:H].reshape(1, H)
    bhz = bhh[H:2 * H].reshape(1, H)
    bhn = bhh[2 * H:].reshape(1, H)
    return pl.pallas_call(
        _gru_kernel,
        out_shape=jax.ShapeDtypeStruct((ts, Bp, H), jnp.float32),
        grid=(ts,),
        in_specs=[pl.BlockSpec((1, Bp, H), lambda t: (t, 0, 0)),
                  pl.BlockSpec((1, Bp, H), lambda t: (t, 0, 0)),
                  pl.BlockSpec((1, Bp, H), lambda t: (t, 0, 0)),
                  pl.BlockSpec((Bp, H), lambda t: (0, 0)),
                  pl.BlockSpec((H, H), lambda t: (0, 0)),
                  pl.BlockSpec((H, H), lambda t: (0, 0)),
                  pl.BlockSpec((H, H), lambda t: (0, 0)),
                  pl.BlockSpec((1, H), lambda t: (0, 0)),
                  pl.BlockSpec((1, H), lambda t: (0, 0)),
                  pl.BlockSpec((1, H), lambda t: (0, 0))],
        out_specs=pl.BlockSpec((1, Bp, H), lambda t: (t, 0, 0)),
        scratch_shapes=[pltpu.VMEM((Bp, H), jnp.float32)],
        compiler_params=pltpu.CompilerParams(dimension_semantics=("arbitrary",)),
    )(gir, giz, gin, h0, whr, whz, whn, bhr, bhz, bhn)


# ----------------------------- kernel 3: fused heads ------------------------
def _heads_kernel(hs_ref, mask_ref, w_ref, b_ref, out_ref, *, n_actions):
    y = jnp.dot(hs_ref[...], w_ref[...], preferred_element_type=jnp.float32) + b_ref[...]
    m = mask_ref[...] != 0.0                                              # (TM, 1)
    lane = jax.lax.broadcasted_iota(jnp.int32, y.shape, 1)
    fill = jnp.where(lane < n_actions, 0.0, -10000000000.0)              # q -> 0, pi -> -1e10
    out_ref[...] = jnp.where(m, fill, y)


def heads(hs_flat, mask_flat, p, n_actions, tm_max=256):
    M, H = hs_flat.shape
    A = n_actions
    w = jnp.concatenate([p['wq'], p['wpi']], axis=1)                      # (H, 2A)
    b = jnp.concatenate([p['bq'], p['bpi']]).reshape(1, 2 * A)
    Mp8 = _round_up(M, 8)
    TM = min(tm_max, Mp8)
    Mp = _round_up(Mp8, TM)
    if Mp != M:
        hs_flat = jnp.pad(hs_flat, ((0, Mp - M), (0, 0)))
        mask_flat = jnp.pad(mask_flat, ((0, Mp - M), (0, 0)), constant_values=1.0)
    out = pl.pallas_call(
        functools.partial(_heads_kernel, n_actions=A),
        out_shape=jax.ShapeDtypeStruct((Mp, 2 * A), jnp.float32),
        grid=(Mp // TM,),
        in_specs=[pl.BlockSpec((TM, H), lambda i: (i, 0)),
                  pl.BlockSpec((TM, 1), lambda i: (i, 0)),
                  pl.BlockSpec((H, 2 * A), lambda i: (0, 0)),
                  pl.BlockSpec((1, 2 * A), lambda i: (0, 0))],
        out_specs=pl.BlockSpec((TM, 2 * A), lambda i: (i, 0)),
        compiler_params=pltpu.CompilerParams(dimension_semantics=("parallel",)),
    )(hs_flat, mask_flat, w, b)
    out = out[:M]
    return out[:, :A], out[:, A:]


# ----------------------------- module (glue around kernels) ----------------
def rnn_module_forward(p, entities, obs_mask, entity_mask, hidden, args, bool_avg):
    bs, ts, ne, ed = entities.shape
    na, H, A = args.n_agents, args.rnn_hidden_dim, args.n_actions
    B = bs * ts
    ent = entities.reshape(B, ne, ed)
    agent_m = entity_mask.reshape(B, ne)[:, :na]                          # (B, na)

    if not bool_avg:
        pre = obs_mask.reshape(B, ne, ne)[:, :na, :]                      # (B, na, ne)
        post = agent_m.reshape(B, na, 1)
        gi_r, gi_z, gi_n = encode_attn(ent, pre, post, p, args.attn_n_heads)
    else:
        ent_ag = ent[:, :na, :].reshape(B * na, ed)
        gi_r, gi_z, gi_n = encode_mlp(ent_ag, p)
        gi_r = gi_r.reshape(B, na, H)
        gi_z = gi_z.reshape(B, na, H)
        gi_n = gi_n.reshape(B, na, H)

    Brnn = bs * na
    Bp = _round_up(Brnn, 8)

    def to_seq(g):  # (bs*ts, na, H) -> (ts, Bp, H), rows padded to sublane multiple
        g = g.reshape(bs, ts, na, H).transpose(1, 0, 2, 3).reshape(ts, Brnn, H)
        if Bp != Brnn:
            g = jnp.pad(g, ((0, 0), (0, Bp - Brnn), (0, 0)))
        return g

    h0 = hidden.reshape(Brnn, H)
    if Bp != Brnn:
        h0 = jnp.pad(h0, ((0, Bp - Brnn), (0, 0)))

    hs_seq = gru_sequence(to_seq(gi_r), to_seq(gi_z), to_seq(gi_n), h0, p)  # (ts, Bp, H)
    hs = hs_seq[:, :Brnn].reshape(ts, bs, na, H).transpose(1, 0, 2, 3)      # (bs, ts, na, H)

    q_flat, pi_flat = heads(hs.reshape(B * na, H), agent_m.reshape(B * na, 1), p, A)
    q = q_flat.reshape(bs, ts, na, A)
    pi = pi_flat.reshape(bs, ts, na, A)
    return (q, pi), hs


def agent_forward(params_q, params_pi, inputs, hidden_q, hidden_pi, args):
    entities, obs_mask, entity_mask = inputs
    (q, pi), h_q = rnn_module_forward(params_q, entities, obs_mask, entity_mask,
                                      hidden_q, args, bool_avg=False)
    (_, pi_avg), h_pi_avg = rnn_module_forward(params_pi, entities, obs_mask, entity_mask,
                                               hidden_pi, args, bool_avg=True)
    return (q, pi, pi_avg), (h_q, h_pi_avg)


# ----------------------------- pure-JAX reference ---------------------------
_HP = jax.lax.Precision.HIGHEST


def _ref_gru_cell(x, h, wih, whh, bih, bhh):
    H = h.shape[-1]
    gi = jnp.dot(x, wih, precision=_HP) + bih
    gh = jnp.dot(h, whh, precision=_HP) + bhh
    r = jax.nn.sigmoid(gi[:, :H] + gh[:, :H])
    z = jax.nn.sigmoid(gi[:, H:2 * H] + gh[:, H:2 * H])
    n = jnp.tanh(gi[:, 2 * H:] + r * gh[:, 2 * H:])
    return (1.0 - z) * n + z * h


def ref_module_forward(p, entities, obs_mask, entity_mask, hidden, args, bool_avg):
    bs, ts, ne, ed = entities.shape
    na, E, H = args.n_agents, args.attn_embed_dim, args.rnn_hidden_dim
    B = bs * ts
    ent = entities.reshape(B, ne, ed)
    obs_m = obs_mask.reshape(B, ne, ne)
    agent_m = entity_mask.reshape(B, ne)[:, :na]
    x1 = jax.nn.relu(jnp.einsum('bne,ef->bnf', ent, p['w1'], precision=_HP) + p['b1'])
    if not bool_avg:
        nh = args.attn_n_heads
        hd = E // nh
        qkv = jnp.einsum('bne,ef->bnf', x1, p['wqkv'], precision=_HP)
        q = qkv[:, :na, :E].reshape(B, na, nh, hd).transpose(0, 2, 1, 3)
        k = qkv[:, :, E:2 * E].reshape(B, ne, nh, hd).transpose(0, 2, 1, 3)
        v = qkv[:, :, 2 * E:].reshape(B, ne, nh, hd).transpose(0, 2, 1, 3)
        logits = jnp.einsum('bhqd,bhkd->bhqk', q, k, precision=_HP) / math.sqrt(float(hd))
        valid = (obs_m[:, :na, :] == 0.0)[:, None]
        logits = jnp.where(valid, logits, -1e30)
        m = jnp.max(logits, axis=-1, keepdims=True)
        e = jnp.where(valid, jnp.exp(logits - m), 0.0)
        denom = jnp.sum(e, axis=-1, keepdims=True)
        w = e / jnp.where(denom == 0.0, 1.0, denom)
        ao = jnp.einsum('bhqk,bhkd->bhqd', w, v, precision=_HP)
        ao = ao.transpose(0, 2, 1, 3).reshape(B, na, E)
        ao = jnp.einsum('bqe,ef->bqf', ao, p['wout'], precision=_HP) + p['bout']
        x2 = jnp.where(agent_m[:, :, None] != 0.0, 0.0, ao)
    else:
        x2 = x1[:, :na]
    x3 = jax.nn.relu(jnp.einsum('bqe,ef->bqf', x2, p['w2'], precision=_HP) + p['b2'])
    x3 = x3.reshape(bs, ts, na, H)
    h = hidden.reshape(bs * na, H)
    hs = []
    for t in range(ts):
        h = _ref_gru_cell(x3[:, t].reshape(bs * na, H), h,
                          p['wih'], p['whh'], p['bih'], p['bhh'])
        hs.append(h.reshape(bs, na, H))
    hs = jnp.stack(hs, axis=1)
    q_out = jnp.einsum('btnh,ha->btna', hs, p['wq'], precision=_HP) + p['bq']
    pi_out = jnp.einsum('btnh,ha->btna', hs, p['wpi'], precision=_HP) + p['bpi']
    am = agent_m.reshape(bs, ts, na, 1) != 0.0
    return (jnp.where(am, 0.0, q_out), jnp.where(am, -10000000000.0, pi_out)), hs


# ----------------------------- param init ----------------------------------
def _init_linear(key, fan_in, fan_out):
    k1, k2 = jax.random.split(key)
    bound = 1.0 / math.sqrt(fan_in)
    w = jax.random.uniform(k1, (fan_in, fan_out), jnp.float32, -bound, bound)
    b = jax.random.uniform(k2, (fan_out,), jnp.float32, -bound, bound)
    return w, b


def init_module_params(key, input_shape, args, bool_avg):
    E, H, A = args.attn_embed_dim, args.rnn_hidden_dim, args.n_actions
    keys = jax.random.split(key, 10)
    p = {}
    p['w1'], p['b1'] = _init_linear(keys[0], input_shape, E)
    if not bool_avg:
        bound = 1.0 / math.sqrt(E)
        p['wqkv'] = jax.random.uniform(keys[1], (E, 3 * E), jnp.float32, -bound, bound)
        p['wout'], p['bout'] = _init_linear(keys[2], E, E)
    p['w2'], p['b2'] = _init_linear(keys[3], E, H)
    bound = 1.0 / math.sqrt(H)
    p['wih'] = jax.random.uniform(keys[4], (H, 3 * H), jnp.float32, -bound, bound)
    p['whh'] = jax.random.uniform(keys[5], (H, 3 * H), jnp.float32, -bound, bound)
    p['bih'] = jax.random.uniform(keys[6], (3 * H,), jnp.float32, -bound, bound)
    p['bhh'] = jax.random.uniform(keys[7], (3 * H,), jnp.float32, -bound, bound)
    p['wq'], p['bq'] = _init_linear(keys[8], H, A)
    p['wpi'], p['bpi'] = _init_linear(keys[9], H, A)
    return p


# ----------------------------- main -----------------------------------------
if __name__ == "__main__":
    args = Args()
    bs, ts, ne, ed = 2, 4, 6, 16

    key = jax.random.PRNGKey(0)
    k_ent, k_obs, k_em, k_pq, k_ppi = jax.random.split(key, 5)

    entities = jax.random.normal(k_ent, (bs, ts, ne, ed), jnp.float32)
    obs_mask = (jax.random.uniform(k_obs, (bs, ts, ne, ne)) < 0.3).astype(jnp.float32)
    entity_mask = (jax.random.uniform(k_em, (bs, ts, ne)) < 0.2).astype(jnp.float32)
    hidden_q = jnp.zeros((bs, args.n_agents, args.rnn_hidden_dim), jnp.float32)
    hidden_pi = jnp.zeros((bs, args.n_agents, args.rnn_hidden_dim), jnp.float32)

    params_q = init_module_params(k_pq, ed, args, bool_avg=False)
    params_pi = init_module_params(k_ppi, ed, args, bool_avg=True)

    inputs = (entities, obs_mask, entity_mask)
    fwd = jax.jit(functools.partial(agent_forward, args=args))
    (q, pi, pi_avg), (h_q, h_pi_avg) = fwd(params_q, params_pi, inputs, hidden_q, hidden_pi)
    jax.block_until_ready(((q, pi, pi_avg), (h_q, h_pi_avg)))

    # pure-JAX reference check (high-precision reference matmuls)
    (q_r, pi_r), hq_r = ref_module_forward(params_q, entities, obs_mask, entity_mask,
                                           hidden_q, args, bool_avg=False)
    (_, piavg_r), hpi_r = ref_module_forward(params_pi, entities, obs_mask, entity_mask,
                                             hidden_pi, args, bool_avg=True)
    for a, b in [(q, q_r), (pi, pi_r), (pi_avg, piavg_r), (h_q, hq_r), (h_pi_avg, hpi_r)]:
        if not jnp.allclose(a, b, rtol=1e-3, atol=1e-3):
            raise AssertionError("Pallas output mismatch vs reference")

    print("KERNEL_OK")
</pallas_src>

<mosaic_0001>
module attributes {stable_mosaic.version = 11 : i64} {
  func.func @_encoder_attn_kernel(%arg0: i32, %arg1: memref<8x6x16xf32, #tpu.memory_space<vmem>>, %arg2: memref<8x3x6xf32, #tpu.memory_space<vmem>>, %arg3: memref<8x3x1xf32, #tpu.memory_space<vmem>>, %arg4: memref<16x32xf32, #tpu.memory_space<vmem>>, %arg5: memref<1x32xf32, #tpu.memory_space<vmem>>, %arg6: memref<32x32xf32, #tpu.memory_space<vmem>>, %arg7: memref<32x32xf32, #tpu.memory_space<vmem>>, %arg8: memref<32x32xf32, #tpu.memory_space<vmem>>, %arg9: memref<32x32xf32, #tpu.memory_space<vmem>>, %arg10: memref<1x32xf32, #tpu.memory_space<vmem>>, %arg11: memref<32x32xf32, #tpu.memory_space<vmem>>, %arg12: memref<1x32xf32, #tpu.memory_space<vmem>>, %arg13: memref<32x96xf32, #tpu.memory_space<vmem>>, %arg14: memref<1x96xf32, #tpu.memory_space<vmem>>, %arg15: memref<8x3x32xf32, #tpu.memory_space<vmem>>, %arg16: memref<8x3x32xf32, #tpu.memory_space<vmem>>, %arg17: memref<8x3x32xf32, #tpu.memory_space<vmem>>) attributes {dimension_semantics = [#tpu.dimension_semantics<parallel>], iteration_bounds = array<i64: 1>, scalar_prefetch = 0 : i64, scratch_operands = 0 : i64, tpu.core_type = #tpu.core_type<tc>, window_params = [{transform_indices = @transform_0, window_bounds = array<i64: 8, 6, 16>}, {transform_indices = @transform_1, window_bounds = array<i64: 8, 3, 6>}, {transform_indices = @transform_2, window_bounds = array<i64: 8, 3, 1>}, {pipeline_mode = #tpu.pipeline_mode<synchronous>, transform_indices = @transform_3, window_bounds = array<i64: 16, 32>}, {pipeline_mode = #tpu.pipeline_mode<synchronous>, transform_indices = @transform_4, window_bounds = array<i64: 1, 32>}, {pipeline_mode = #tpu.pipeline_mode<synchronous>, transform_indices = @transform_5, window_bounds = array<i64: 32, 32>}, {pipeline_mode = #tpu.pipeline_mode<synchronous>, transform_indices = @transform_6, window_bounds = array<i64: 32, 32>}, {pipeline_mode = #tpu.pipeline_mode<synchronous>, transform_indices = @transform_7, window_bounds = array<i64: 32, 32>}, {pipeline_mode = #tpu.pipeline_mode<synchronous>, transform_indices = @transform_8, window_bounds = array<i64: 32, 32>}, {pipeline_mode = #tpu.pipeline_mode<synchronous>, transform_indices = @transform_9, window_bounds = array<i64: 1, 32>}, {pipeline_mode = #tpu.pipeline_mode<synchronous>, transform_indices = @transform_10, window_bounds = array<i64: 32, 32>}, {pipeline_mode = #tpu.pipeline_mode<synchronous>, transform_indices = @transform_11, window_bounds = array<i64: 1, 32>}, {pipeline_mode = #tpu.pipeline_mode<synchronous>, transform_indices = @transform_12, window_bounds = array<i64: 32, 96>}, {pipeline_mode = #tpu.pipeline_mode<synchronous>, transform_indices = @transform_13, window_bounds = array<i64: 1, 96>}, {transform_indices = @transform_14, window_bounds = array<i64: 8, 3, 32>}, {transform_indices = @transform_15, window_bounds = array<i64: 8, 3, 32>}, {transform_indices = @transform_16, window_bounds = array<i64: 8, 3, 32>}]} {
    %c0 = arith.constant 0 : index
    %c0_0 = arith.constant 0 : index
    %c0_1 = arith.constant 0 : index
    %0 = vector.load %arg1[%c0, %c0_0, %c0_1] : memref<8x6x16xf32, #tpu.memory_space<vmem>>, vector<8x6x16xf32>
    %c0_2 = arith.constant 0 : index
    %c0_3 = arith.constant 0 : index
    %1 = vector.load %arg4[%c0_2, %c0_3] : memref<16x32xf32, #tpu.memory_space<vmem>>, vector<16x32xf32>
    %2 = vector.shape_cast %1 : vector<16x32xf32> to vector<1x16x32xf32>
    %3 = vector.broadcast %2 : vector<1x16x32xf32> to vector<8x16x32xf32>
    "tpu.trace_start"() <{level = 10 : i32, message = "bmk,bkn->bmn"}> : () -> ()
    %cst = arith.constant dense<0.000000e+00> : vector<8x6x32xf32>
    %4 = tpu.matmul %0, %3, %cst {dimension_numbers = #tpu.dot_dimension_numbers<[2], [1], [1], [2], [0, 0, 0, 1, 1, 2], [0], [0]>} : vector<8x6x16xf32>, vector<8x16x32xf32>, vector<8x6x32xf32> -> vector<8x6x32xf32>
    "tpu.trace_stop"() : () -> ()
    %c0_4 = arith.constant 0 : index
    %c0_5 = arith.constant 0 : index
    %5 = vector.load %arg5[%c0_4, %c0_5] : memref<1x32xf32, #tpu.memory_space<vmem>>, vector<1x32xf32>
    %6 = vector.shape_cast %5 : vector<1x32xf32> to vector<1x1x32xf32>
    %7 = vector.broadcast %6 : vector<1x1x32xf32> to vector<8x6x32xf32>
    %8 = arith.addf %4, %7 : vector<8x6x32xf32>
    %cst_6 = arith.constant 0.000000e+00 : f32
    %9 = vector.broadcast %cst_6 : f32 to vector<8x6x32xf32>
    %10 = arith.maximumf %8, %9 : vector<8x6x32xf32>
    %11 = vector.extract_strided_slice %10 {offsets = [0, 0, 0], sizes = [8, 3, 32], strides = [1, 1, 1]} : vector<8x6x32xf32> to vector<8x3x32xf32>
    %c0_7 = arith.constant 0 : index
    %c0_8 = arith.constant 0 : index
    %12 = vector.load %arg6[%c0_7, %c0_8] : memref<32x32xf32, #tpu.memory_space<vmem>>, vector<32x32xf32>
    %13 = vector.shape_cast %12 : vector<32x32xf32> to vector<1x32x32xf32>
    %14 = vector.broadcast %13 : vector<1x32x32xf32> to vector<8x32x32xf32>
    "tpu.trace_start"() <{level = 10 : i32, message = "bmk,bkn->bmn"}> : () -> ()
    %cst_9 = arith.constant dense<0.000000e+00> : vector<8x3x32xf32>
    %15 = tpu.matmul %11, %14, %cst_9 {dimension_numbers = #tpu.dot_dimension_numbers<[2], [1], [1], [2], [0, 0, 0, 1, 1, 2], [0], [0]>} : vector<8x3x32xf32>, vector<8x32x32xf32>, vector<8x3x32xf32> -> vector<8x3x32xf32>
    "tpu.trace_stop"() : () -> ()
    %c0_10 = arith.constant 0 : index
    %c0_11 = arith.constant 0 : index
    %16 = vector.load %arg7[%c0_10, %c0_11] : memref<32x32xf32, #tpu.memory_space<vmem>>, vector<32x32xf32>
    %17 = vector.shape_cast %16 : vector<32x32xf32> to vector<1x32x32xf32>
    %18 = vector.broadcast %17 : vector<1x32x32xf32> to vector<8x32x32xf32>
    "tpu.trace_start"() <{level = 10 : i32, message = "bmk,bkn->bmn"}> : () -> ()
    %cst_12 = arith.constant dense<0.000000e+00> : vector<8x6x32xf32>
    %19 = tpu.matmul %10, %18, %cst_12 {dimension_numbers = #tpu.dot_dimension_numbers<[2], [1], [1], [2], [0, 0, 0, 1, 1, 2], [0], [0]>} : vector<8x6x32xf32>, vector<8x32x32xf32>, vector<8x6x32xf32> -> vector<8x6x32xf32>
    "tpu.trace_stop"() : () -> ()
    %c0_13 = arith.constant 0 : index
    %c0_14 = arith.constant 0 : index
    %20 = vector.load %arg8[%c0_13, %c0_14] : memref<32x32xf32, #tpu.memory_space<vmem>>, vector<32x32xf32>
    %21 = vector.shape_cast %20 : vector<32x32xf32> to vector<1x32x32xf32>
    %22 = vector.broadcast %21 : vector<1x32x32xf32> to vector<8x32x32xf32>
    "tpu.trace_start"() <{level = 10 : i32, message = "bmk,bkn->bmn"}> : () -> ()
    %cst_15 = arith.constant dense<0.000000e+00> : vector<8x6x32xf32>
    %23 = tpu.matmul %10, %22, %cst_15 {dimension_numbers = #tpu.dot_dimension_numbers<[2], [1], [1], [2], [0, 0, 0, 1, 1, 2], [0], [0]>} : vector<8x6x32xf32>, vector<8x32x32xf32>, vector<8x6x32xf32> -> vector<8x6x32xf32>
    "tpu.trace_stop"() : () -> ()
    %c0_16 = arith.constant 0 : index
    %c0_17 = arith.constant 0 : index
    %c0_18 = arith.constant 0 : index
    %24 = vector.load %arg2[%c0_16, %c0_17, %c0_18] : memref<8x3x6xf32, #tpu.memory_space<vmem>>, vector<8x3x6xf32>
    %cst_19 = arith.constant 0.000000e+00 : f32
    %25 = vector.broadcast %cst_19 : f32 to vector<8x3x6xf32>
    %26 = arith.cmpf oeq, %24, %25 : vector<8x3x6xf32>
    %c0_20 = arith.constant 0 : index
    %c0_21 = arith.constant 0 : index
    %27 = vector.load %arg9[%c0_20, %c0_21] : memref<32x32xf32, #tpu.memory_space<vmem>>, vector<32x32xf32>
    %cst_22 = arith.constant 0.000000e+00 : f32
    %28 = vector.broadcast %cst_22 : f32 to vector<8x3x32xf32>
    %29 = vector.extract_strided_slice %15 {offsets = [0, 0, 0], sizes = [8, 3, 8], strides = [1, 1, 1]} : vector<8x3x32xf32> to vector<8x3x8xf32>
    %30 = vector.extract_strided_slice %19 {offsets = [0, 0, 0], sizes = [8, 6, 8], strides = [1, 1, 1]} : vector<8x6x32xf32> to vector<8x6x8xf32>
    "tpu.trace_start"() <{level = 10 : i32, message = "bqd,bkd->bqk"}> : () -> ()
    %cst_23 = arith.constant dense<0.000000e+00> : vector<8x3x6xf32>
    %31 = tpu.matmul %29, %30, %cst_23 {dimension_numbers = #tpu.dot_dimension_numbers<[2], [2], [1], [1], [0, 0, 0, 1, 1, 1], [0], [0]>} : vector<8x3x8xf32>, vector<8x6x8xf32>, vector<8x3x6xf32> -> vector<8x3x6xf32>
    "tpu.trace_stop"() : () -> ()
    %cst_24 = arith.constant 0.353553385 : f32
    %32 = vector.broadcast %cst_24 : f32 to vector<8x3x6xf32>
    %33 = arith.mulf %31, %32 : vector<8x3x6xf32>
    %cst_25 = arith.constant -1.000000e+30 : f32
    %34 = vector.broadcast %cst_25 : f32 to vector<8x3x6xf32>
    %35 = arith.select %26, %33, %34 : vector<8x3x6xi1>, vector<8x3x6xf32>
    %cst_26 = arith.constant dense<0xFF800000> : vector<8x3xf32>
    %36 = vector.multi_reduction <maximumf>, %35, %cst_26 [2] : vector<8x3x6xf32> to vector<8x3xf32>
    %37 = vector.shape_cast %36 : vector<8x3xf32> to vector<8x3x1xf32>
    %38 = vector.broadcast %37 : vector<8x3x1xf32> to vector<8x3x6xf32>
    %39 = arith.subf %35, %38 : vector<8x3x6xf32>
    %40 = math.exp %39 : vector<8x3x6xf32>
    %cst_27 = arith.constant 0.000000e+00 : f32
    %41 = vector.broadcast %cst_27 : f32 to vector<8x3x6xf32>
    %42 = arith.select %26, %40, %41 : vector<8x3x6xi1>, vector<8x3x6xf32>
    %cst_28 = arith.constant dense<0.000000e+00> : vector<8x3xf32>
    %43 = vector.multi_reduction <add>, %42, %cst_28 [2] : vector<8x3x6xf32> to vector<8x3xf32>
    %44 = vector.shape_cast %43 : vector<8x3xf32> to vector<8x3x1xf32>
    %cst_29 = arith.constant 0.000000e+00 : f32
    %45 = vector.broadcast %cst_29 : f32 to vector<8x3x1xf32>
    %46 = arith.cmpf oeq, %44, %45 : vector<8x3x1xf32>
    %cst_30 = arith.constant 1.000000e+00 : f32
    %47 = vector.broadcast %cst_30 : f32 to vector<8x3x1xf32>
    %48 = arith.select %46, %47, %44 : vector<8x3x1xi1>, vector<8x3x1xf32>
    %49 = vector.broadcast %48 : vector<8x3x1xf32> to vector<8x3x6xf32>
    %50 = arith.divf %42, %49 : vector<8x3x6xf32>
    %51 = vector.extract_strided_slice %23 {offsets = [0, 0, 0], sizes = [8, 6, 8], strides = [1, 1, 1]} : vector<8x6x32xf32> to vector<8x6x8xf32>
    "tpu.trace_start"() <{level = 10 : i32, message = "bqk,bkd->bqd"}> : () -> ()
    %cst_31 = arith.constant dense<0.000000e+00> : vector<8x3x8xf32>
    %52 = tpu.matmul %50, %51, %cst_31 {dimension_numbers = #tpu.dot_dimension_numbers<[2], [1], [1], [2], [0, 0, 0, 1, 1, 2], [0], [0]>} : vector<8x3x6xf32>, vector<8x6x8xf32>, vector<8x3x8xf32> -> vector<8x3x8xf32>
    "tpu.trace_stop"() : () -> ()
    %53 = vector.extract_strided_slice %27 {offsets = [0, 0], sizes = [8, 32], strides = [1, 1]} : vector<32x32xf32> to vector<8x32xf32>
    %54 = vector.shape_cast %53 : vector<8x32xf32> to vector<1x8x32xf32>
    %55 = vector.broadcast %54 : vector<1x8x32xf32> to vector<8x8x32xf32>
    "tpu.trace_start"() <{level = 10 : i32, message = "bqd,bde->bqe"}> : () -> ()
    %cst_32 = arith.constant dense<0.000000e+00> : vector<8x3x32xf32>
    %56 = tpu.matmul %52, %55, %cst_32 {dimension_numbers = #tpu.dot_dimension_numbers<[2], [1], [1], [2], [0, 0, 0, 1, 1, 2], [0], [0]>} : vector<8x3x8xf32>, vector<8x8x32xf32>, vector<8x3x32xf32> -> vector<8x3x32xf32>
    "tpu.trace_stop"() : () -> ()
    %57 = arith.addf %28, %56 : vector<8x3x32xf32>
    %58 = vector.extract_strided_slice %15 {offsets = [0, 0, 8], sizes = [8, 3, 8], strides = [1, 1, 1]} : vector<8x3x32xf32> to vector<8x3x8xf32>
    %59 = vector.extract_strided_slice %19 {offsets = [0, 0, 8], sizes = [8, 6, 8], strides = [1, 1, 1]} : vector<8x6x32xf32> to vector<8x6x8xf32>
    "tpu.trace_start"() <{level = 10 : i32, message = "bqd,bkd->bqk"}> : () -> ()
    %cst_33 = arith.constant dense<0.000000e+00> : vector<8x3x6xf32>
    %60 = tpu.matmul %58, %59, %cst_33 {dimension_numbers = #tpu.dot_dimension_numbers<[2], [2], [1], [1], [0, 0, 0, 1, 1, 1], [0], [0]>} : vector<8x3x8xf32>, vector<8x6x8xf32>, vector<8x3x6xf32> -> vector<8x3x6xf32>
    "tpu.trace_stop"() : () -> ()
    %cst_34 = arith.constant 0.353553385 : f32
    %61 = vector.broadcast %cst_34 : f32 to vector<8x3x6xf32>
    %62 = arith.mulf %60, %61 : vector<8x3x6xf32>
    %cst_35 = arith.constant -1.000000e+30 : f32
    %63 = vector.broadcast %cst_35 : f32 to vector<8x3x6xf32>
    %64 = arith.select %26, %62, %63 : vector<8x3x6xi1>, vector<8x3x6xf32>
    %cst_36 = arith.constant dense<0xFF800000> : vector<8x3xf32>
    %65 = vector.multi_reduction <maximumf>, %64, %cst_36 [2] : vector<8x3x6xf32> to vector<8x3xf32>
    %66 = vector.shape_cast %65 : vector<8x3xf32> to vector<8x3x1xf32>
    %67 = vector.broadcast %66 : vector<8x3x1xf32> to vector<8x3x6xf32>
    %68 = arith.subf %64, %67 : vector<8x3x6xf32>
    %69 = math.exp %68 : vector<8x3x6xf32>
    %cst_37 = arith.constant 0.000000e+00 : f32
    %70 = vector.broadcast %cst_37 : f32 to vector<8x3x6xf32>
    %71 = arith.select %26, %69, %70 : vector<8x3x6xi1>, vector<8x3x6xf32>
    %cst_38 = arith.constant dense<0.000000e+00> : vector<8x3xf32>
    %72 = vector.multi_reduction <add>, %71, %cst_38 [2] : vector<8x3x6xf32> to vector<8x3xf32>
    %73 = vector.shape_cast %72 : vector<8x3xf32> to vector<8x3x1xf32>
    %cst_39 = arith.constant 0.000000e+00 : f32
    %74 = vector.broadcast %cst_39 : f32 to vector<8x3x1xf32>
    %75 = arith.cmpf oeq, %73, %74 : vector<8x3x1xf32>
    %cst_40 = arith.constant 1.000000e+00 : f32
    %76 = vector.broadcast %cst_40 : f32 to vector<8x3x1xf32>
    %77 = arith.select %75, %76, %73 : vector<8x3x1xi1>, vector<8x3x1xf32>
    %78 = vector.broadcast %77 : vector<8x3x1xf32> to vector<8x3x6xf32>
    %79 = arith.divf %71, %78 : vector<8x3x6xf32>
    %80 = vector.extract_strided_slice %23 {offsets = [0, 0, 8], sizes = [8, 6, 8], strides = [1, 1, 1]} : vector<8x6x32xf32> to vector<8x6x8xf32>
    "tpu.trace_start"() <{level = 10 : i32, message = "bqk,bkd->bqd"}> : () -> ()
    %cst_41 = arith.constant dense<0.000000e+00> : vector<8x3x8xf32>
    %81 = tpu.matmul %79, %80, %cst_41 {dimension_numbers = #tpu.dot_dimension_numbers<[2], [1], [1], [2], [0, 0, 0, 1, 1, 2], [0], [0]>} : vector<8x3x6xf32>, vector<8x6x8xf32>, vector<8x3x8xf32> -> vector<8x3x8xf32>
    "tpu.trace_stop"() : () -> ()
    %82 = vector.extract_strided_slice %27 {offsets = [8, 0], sizes = [8, 32], strides = [1, 1]} : vector<32x32xf32> to vector<8x32xf32>
    %83 = vector.shape_cast %82 : vector<8x32xf32> to vector<1x8x32xf32>
    %84 = vector.broadcast %83 : vector<1x8x32xf32> to vector<8x8x32xf32>
    "tpu.trace_start"() <{level = 10 : i32, message = "bqd,bde->bqe"}> : () -> ()
    %cst_42 = arith.constant dense<0.000000e+00> : vector<8x3x32xf32>
    %85 = tpu.matmul %81, %84, %cst_42 {dimension_numbers = #tpu.dot_dimension_numbers<[2], [1], [1], [2], [0, 0, 0, 1, 1, 2], [0], [0]>} : vector<8x3x8xf32>, vector<8x8x32xf32>, vector<8x3x32xf32> -> vector<8x3x32xf32>
    "tpu.trace_stop"() : () -> ()
    %86 = arith.addf %57, %85 : vector<8x3x32xf32>
    %87 = vector.extract_strided_slice %15 {offsets = [0, 0, 16], sizes = [8, 3, 8], strides = [1, 1, 1]} : vector<8x3x32xf32> to vector<8x3x8xf32>
    %88 = vector.extract_strided_slice %19 {offsets = [0, 0, 16], sizes = [8, 6, 8], strides = [1, 1, 1]} : vector<8x6x32xf32> to vector<8x6x8xf32>
    "tpu.trace_start"() <{level = 10 : i32, message = "bqd,bkd->bqk"}> : () -> ()
    %cst_43 = arith.constant dense<0.000000e+00> : vector<8x3x6xf32>
    %89 = tpu.matmul %87, %88, %cst_43 {dimension_numbers = #tpu.dot_dimension_numbers<[2], [2], [1], [1], [0, 0, 0, 1, 1, 1], [0], [0]>} : vector<8x3x8xf32>, vector<8x6x8xf32>, vector<8x3x6xf32> -> vector<8x3x6xf32>
    "tpu.trace_stop"() : () -> ()
    %cst_44 = arith.constant 0.353553385 : f32
    %90 = vector.broadcast %cst_44 : f32 to vector<8x3x6xf32>
    %91 = arith.mulf %89, %90 : vector<8x3x6xf32>
    %cst_45 = arith.constant -1.000000e+30 : f32
    %92 = vector.broadcast %cst_45 : f32 to vector<8x3x6xf32>
    %93 = arith.select %26, %91, %92 : vector<8x3x6xi1>, vector<8x3x6xf32>
    %cst_46 = arith.constant dense<0xFF800000> : vector<8x3xf32>
    %94 = vector.multi_reduction <maximumf>, %93, %cst_46 [2] : vector<8x3x6xf32> to vector<8x3xf32>
    %95 = vector.shape_cast %94 : vector<8x3xf32> to vector<8x3x1xf32>
    %96 = vector.broadcast %95 : vector<8x3x1xf32> to vector<8x3x6xf32>
    %97 = arith.subf %93, %96 : vector<8x3x6xf32>
    %98 = math.exp %97 : vector<8x3x6xf32>
    %cst_47 = arith.constant 0.000000e+00 : f32
    %99 = vector.broadcast %cst_47 : f32 to vector<8x3x6xf32>
    %100 = arith.select %26, %98, %99 : vector<8x3x6xi1>, vector<8x3x6xf32>
    %cst_48 = arith.constant dense<0.000000e+00> : vector<8x3xf32>
    %101 = vector.multi_reduction <add>, %100, %cst_48 [2] : vector<8x3x6xf32> to vector<8x3xf32>
    %102 = vector.shape_cast %101 : vector<8x3xf32> to vector<8x3x1xf32>
    %cst_49 = arith.constant 0.000000e+00 : f32
    %103 = vector.broadcast %cst_49 : f32 to vector<8x3x1xf32>
    %104 = arith.cmpf oeq, %102, %103 : vector<8x3x1xf32>
    %cst_50 = arith.constant 1.000000e+00 : f32
    %105 = vector.broadcast %cst_50 : f32 to vector<8x3x1xf32>
    %106 = arith.select %104, %105, %102 : vector<8x3x1xi1>, vector<8x3x1xf32>
    %107 = vector.broadcast %106 : vector<8x3x1xf32> to vector<8x3x6xf32>
    %108 = arith.divf %100, %107 : vector<8x3x6xf32>
    %109 = vector.extract_strided_slice %23 {offsets = [0, 0, 16], sizes = [8, 6, 8], strides = [1, 1, 1]} : vector<8x6x32xf32> to vector<8x6x8xf32>
    "tpu.trace_start"() <{level = 10 : i32, message = "bqk,bkd->bqd"}> : () -> ()
    %cst_51 = arith.constant dense<0.000000e+00> : vector<8x3x8xf32>
    %110 = tpu.matmul %108, %109, %cst_51 {dimension_numbers = #tpu.dot_dimension_numbers<[2], [1], [1], [2], [0, 0, 0, 1, 1, 2], [0], [0]>} : vector<8x3x6xf32>, vector<8x6x8xf32>, vector<8x3x8xf32> -> vector<8x3x8xf32>
    "tpu.trace_stop"() : () -> ()
    %111 = vector.extract_strided_slice %27 {offsets = [16, 0], sizes = [8, 32], strides = [1, 1]} : vector<32x32xf32> to vector<8x32xf32>
    %112 = vector.shape_cast %111 : vector<8x32xf32> to vector<1x8x32xf32>
    %113 = vector.broadcast %112 : vector<1x8x32xf32> to vector<8x8x32xf32>
    "tpu.trace_start"() <{level = 10 : i32, message = "bqd,bde->bqe"}> : () -> ()
    %cst_52 = arith.constant dense<0.000000e+00> : vector<8x3x32xf32>
    %114 = tpu.matmul %110, %113, %cst_52 {dimension_numbers = #tpu.dot_dimension_numbers<[2], [1], [1], [2], [0, 0, 0, 1, 1, 2], [0], [0]>} : vector<8x3x8xf32>, vector<8x8x32xf32>, vector<8x3x32xf32> -> vector<8x3x32xf32>
    "tpu.trace_stop"() : () -> ()
    %115 = arith.addf %86, %114 : vector<8x3x32xf32>
    %116 = vector.extract_strided_slice %15 {offsets = [0, 0, 24], sizes = [8, 3, 8], strides = [1, 1, 1]} : vector<8x3x32xf32> to vector<8x3x8xf32>
    %117 = vector.extract_strided_slice %19 {offsets = [0, 0, 24], sizes = [8, 6, 8], strides = [1, 1, 1]} : vector<8x6x32xf32> to vector<8x6x8xf32>
    "tpu.trace_start"() <{level = 10 : i32, message = "bqd,bkd->bqk"}> : () -> ()
    %cst_53 = arith.constant dense<0.000000e+00> : vector<8x3x6xf32>
    %118 = tpu.matmul %116, %117, %cst_53 {dimension_numbers = #tpu.dot_dimension_numbers<[2], [2], [1], [1], [0, 0, 0, 1, 1, 1], [0], [0]>} : vector<8x3x8xf32>, vector<8x6x8xf32>, vector<8x3x6xf32> -> vector<8x3x6xf32>
    "tpu.trace_stop"() : () -> ()
    %cst_54 = arith.constant 0.353553385 : f32
    %119 = vector.broadcast %cst_54 : f32 to vector<8x3x6xf32>
    %120 = arith.mulf %118, %119 : vector<8x3x6xf32>
    %cst_55 = arith.constant -1.000000e+30 : f32
    %121 = vector.broadcast %cst_55 : f32 to vector<8x3x6xf32>
    %122 = arith.select %26, %120, %121 : vector<8x3x6xi1>, vector<8x3x6xf32>
    %cst_56 = arith.constant dense<0xFF800000> : vector<8x3xf32>
    %123 = vector.multi_reduction <maximumf>, %122, %cst_56 [2] : vector<8x3x6xf32> to vector<8x3xf32>
    %124 = vector.shape_cast %123 : vector<8x3xf32> to vector<8x3x1xf32>
    %125 = vector.broadcast %124 : vector<8x3x1xf32> to vector<8x3x6xf32>
    %126 = arith.subf %122, %125 : vector<8x3x6xf32>
    %127 = math.exp %126 : vector<8x3x6xf32>
    %cst_57 = arith.constant 0.000000e+00 : f32
    %128 = vector.broadcast %cst_57 : f32 to vector<8x3x6xf32>
    %129 = arith.select %26, %127, %128 : vector<8x3x6xi1>, vector<8x3x6xf32>
    %cst_58 = arith.constant dense<0.000000e+00> : vector<8x3xf32>
    %130 = vector.multi_reduction <add>, %129, %cst_58 [2] : vector<8x3x6xf32> to vector<8x3xf32>
    %131 = vector.shape_cast %130 : vector<8x3xf32> to vector<8x3x1xf32>
    %cst_59 = arith.constant 0.000000e+00 : f32
    %132 = vector.broadcast %cst_59 : f32 to vector<8x3x1xf32>
    %133 = arith.cmpf oeq, %131, %132 : vector<8x3x1xf32>
    %cst_60 = arith.constant 1.000000e+00 : f32
    %134 = vector.broadcast %cst_60 : f32 to vector<8x3x1xf32>
    %135 = arith.select %133, %134, %131 : vector<8x3x1xi1>, vector<8x3x1xf32>
    %136 = vector.broadcast %135 : vector<8x3x1xf32> to vector<8x3x6xf32>
    %137 = arith.divf %129, %136 : vector<8x3x6xf32>
    %138 = vector.extract_strided_slice %23 {offsets = [0, 0, 24], sizes = [8, 6, 8], strides = [1, 1, 1]} : vector<8x6x32xf32> to vector<8x6x8xf32>
    "tpu.trace_start"() <{level = 10 : i32, message = "bqk,bkd->bqd"}> : () -> ()
    %cst_61 = arith.constant dense<0.000000e+00> : vector<8x3x8xf32>
    %139 = tpu.matmul %137, %138, %cst_61 {dimension_numbers = #tpu.dot_dimension_numbers<[2], [1], [1], [2], [0, 0, 0, 1, 1, 2], [0], [0]>} : vector<8x3x6xf32>, vector<8x6x8xf32>, vector<8x3x8xf32> -> vector<8x3x8xf32>
    "tpu.trace_stop"() : () -> ()
    %140 = vector.extract_strided_slice %27 {offsets = [24, 0], sizes = [8, 32], strides = [1, 1]} : vector<32x32xf32> to vector<8x32xf32>
    %141 = vector.shape_cast %140 : vector<8x32xf32> to vector<1x8x32xf32>
    %142 = vector.broadcast %141 : vector<1x8x32xf32> to vector<8x8x32xf32>
    "tpu.trace_start"() <{level = 10 : i32, message = "bqd,bde->bqe"}> : () -> ()
    %cst_62 = arith.constant dense<0.000000e+00> : vector<8x3x32xf32>
    %143 = tpu.matmul %139, %142, %cst_62 {dimension_numbers = #tpu.dot_dimension_numbers<[2], [1], [1], [2], [0, 0, 0, 1, 1, 2], [0], [0]>} : vector<8x3x8xf32>, vector<8x8x32xf32>, vector<8x3x32xf32> -> vector<8x3x32xf32>
    "tpu.trace_stop"() : () -> ()
    %144 = arith.addf %115, %143 : vector<8x3x32xf32>
    %c0_63 = arith.constant 0 : index
    %c0_64 = arith.constant 0 : index
    %145 = vector.load %arg10[%c0_63, %c0_64] : memref<1x32xf32, #tpu.memory_space<vmem>>, vector<1x32xf32>
    %146 = vector.shape_cast %145 : vector<1x32xf32> to vector<1x1x32xf32>
    %147 = vector.broadcast %146 : vector<1x1x32xf32> to vector<8x3x32xf32>
    %148 = arith.addf %144, %147 : vector<8x3x32xf32>
    %c0_65 = arith.constant 0 : index
    %c0_66 = arith.constant 0 : index
    %c0_67 = arith.constant 0 : index
    %149 = vector.load %arg3[%c0_65, %c0_66, %c0_67] : memref<8x3x1xf32, #tpu.memory_space<vmem>>, vector<8x3x1xf32>
    %cst_68 = arith.constant 0.000000e+00 : f32
    %150 = vector.broadcast %cst_68 : f32 to vector<8x3x1xf32>
    %151 = arith.cmpf one, %149, %150 : vector<8x3x1xf32>
    %cst_69 = arith.constant 0.000000e+00 : f32
    %152 = vector.shape_cast %151 : vector<8x3x1xi1> to vector<8x3x1xi1>
    %153 = vector.broadcast %152 : vector<8x3x1xi1> to vector<8x3x32xi1>
    %154 = vector.broadcast %cst_69 : f32 to vector<8x3x32xf32>
    %155 = arith.select %153, %154, %148 : vector<8x3x32xi1>, vector<8x3x32xf32>
    %c0_70 = arith.constant 0 : index
    %c0_71 = arith.constant 0 : index
    %156 = vector.load %arg11[%c0_70, %c0_71] : memref<32x32xf32, #tpu.memory_space<vmem>>, vector<32x32xf32>
    %157 = vector.shape_cast %156 : vector<32x32xf32> to vector<1x32x32xf32>
    %158 = vector.broadcast %157 : vector<1x32x32xf32> to vector<8x32x32xf32>
    "tpu.trace_start"() <{level = 10 : i32, message = "bmk,bkn->bmn"}> : () -> ()
    %cst_72 = arith.constant dense<0.000000e+00> : vector<8x3x32xf32>
    %159 = tpu.matmul %155, %158, %cst_72 {dimension_numbers = #tpu.dot_dimension_numbers<[2], [1], [1], [2], [0, 0, 0, 1, 1, 2], [0], [0]>} : vector<8x3x32xf32>, vector<8x32x32xf32>, vector<8x3x32xf32> -> vector<8x3x32xf32>
    "tpu.trace_stop"() : () -> ()
    %c0_73 = arith.constant 0 : index
    %c0_74 = arith.constant 0 : index
    %160 = vector.load %arg12[%c0_73, %c0_74] : memref<1x32xf32, #tpu.memory_space<vmem>>, vector<1x32xf32>
    %161 = vector.shape_cast %160 : vector<1x32xf32> to vector<1x1x32xf32>
    %162 = vector.broadcast %161 : vector<1x1x32xf32> to vector<8x3x32xf32>
    %163 = arith.addf %159, %162 : vector<8x3x32xf32>
    %cst_75 = arith.constant 0.000000e+00 : f32
    %164 = vector.broadcast %cst_75 : f32 to vector<8x3x32xf32>
    %165 = arith.maximumf %163, %164 : vector<8x3x32xf32>
    %c0_76 = arith.constant 0 : index
    %c0_77 = arith.constant 0 : index
    %166 = vector.load %arg13[%c0_76, %c0_77] : memref<32x96xf32, #tpu.memory_space<vmem>>, vector<32x96xf32>
    %167 = vector.shape_cast %166 : vector<32x96xf32> to vector<1x32x96xf32>
    %168 = vector.broadcast %167 : vector<1x32x96xf32> to vector<8x32x96xf32>
    "tpu.trace_start"() <{level = 10 : i32, message = "bmk,bkn->bmn"}> : () -> ()
    %cst_78 = arith.constant dense<0.000000e+00> : vector<8x3x96xf32>
    %169 = tpu.matmul %165, %168, %cst_78 {dimension_numbers = #tpu.dot_dimension_numbers<[2], [1], [1], [2], [0, 0, 0, 1, 1, 2], [0], [0]>} : vector<8x3x32xf32>, vector<8x32x96xf32>, vector<8x3x96xf32> -> vector<8x3x96xf32>
    "tpu.trace_stop"() : () -> ()
    %c0_79 = arith.constant 0 : index
    %c0_80 = arith.constant 0 : index
    %170 = vector.load %arg14[%c0_79, %c0_80] : memref<1x96xf32, #tpu.memory_space<vmem>>, vector<1x96xf32>
    %171 = vector.shape_cast %170 : vector<1x96xf32> to vector<1x1x96xf32>
    %172 = vector.broadcast %171 : vector<1x1x96xf32> to vector<8x3x96xf32>
    %173 = arith.addf %169, %172 : vector<8x3x96xf32>
    %174 = vector.extract_strided_slice %173 {offsets = [0, 0, 0], sizes = [8, 3, 32], strides = [1, 1, 1]} : vector<8x3x96xf32> to vector<8x3x32xf32>
    %c0_81 = arith.constant 0 : index
    %c0_82 = arith.constant 0 : index
    %c0_83 = arith.constant 0 : index
    %175 = vector.load %arg15[%c0_81, %c0_82, %c0_83] : memref<8x3x32xf32, #tpu.memory_space<vmem>>, vector<8x3x32xf32>
    tpu.vector_store %arg15[%c0_81, %c0_82, %c0_83], %174 {strides = array<i32>} : memref<8x3x32xf32, #tpu.memory_space<vmem>>, vector<8x3x32xf32>,
    %176 = vector.extract_strided_slice %173 {offsets = [0, 0, 32], sizes = [8, 3, 32], strides = [1, 1, 1]} : vector<8x3x96xf32> to vector<8x3x32xf32>
    %c0_84 = arith.constant 0 : index
    %c0_85 = arith.constant 0 : index
    %c0_86 = arith.constant 0 : index
    %177 = vector.load %arg16[%c0_84, %c0_85, %c0_86] : memref<8x3x32xf32, #tpu.memory_space<vmem>>, vector<8x3x32xf32>
    tpu.vector_store %arg16[%c0_84, %c0_85, %c0_86], %176 {strides = array<i32>} : memref<8x3x32xf32, #tpu.memory_space<vmem>>, vector<8x3x32xf32>,
    %178 = vector.extract_strided_slice %173 {offsets = [0, 0, 64], sizes = [8, 3, 32], strides = [1, 1, 1]} : vector<8x3x96xf32> to vector<8x3x32xf32>
    %c0_87 = arith.constant 0 : index
    %c0_88 = arith.constant 0 : index
    %c0_89 = arith.constant 0 : index
    %179 = vector.load %arg17[%c0_87, %c0_88, %c0_89] : memref<8x3x32xf32, #tpu.memory_space<vmem>>, vector<8x3x32xf32>
    tpu.vector_store %arg17[%c0_87, %c0_88, %c0_89], %178 {strides = array<i32>} : memref<8x3x32xf32, #tpu.memory_space<vmem>>, vector<8x3x32xf32>,
    return
  }
  func.func @transform_0(%arg0: i32) -> (i32, i32, i32) {
    %c0_i32 = arith.constant 0 : i32
    %c0_i32_0 = arith.constant 0 : i32
    %c0_i32_1 = arith.constant 0 : i32
    return %arg0, %c0_i32, %c0_i32_0 : i32, i32, i32
  }
  func.func @transform_1(%arg0: i32) -> (i32, i32, i32) {
    %c0_i32 = arith.constant 0 : i32
    %c0_i32_0 = arith.constant 0 : i32
    %c0_i32_1 = arith.constant 0 : i32
    return %arg0, %c0_i32, %c0_i32_0 : i32, i32, i32
  }
  func.func @transform_2(%arg0: i32) -> (i32, i32, i32) {
    %c0_i32 = arith.constant 0 : i32
    %c0_i32_0 = arith.constant 0 : i32
    %c0_i32_1 = arith.constant 0 : i32
    return %arg0, %c0_i32, %c0_i32_0 : i32, i32, i32
  }
  func.func @transform_3(%arg0: i32) -> (i32, i32) {
    %c0_i32 = arith.constant 0 : i32
    %c0_i32_0 = arith.constant 0 : i32
    %c0_i32_1 = arith.constant 0 : i32
    return %c0_i32, %c0_i32_0 : i32, i32
  }
  func.func @transform_4(%arg0: i32) -> (i32, i32) {
    %c0_i32 = arith.constant 0 : i32
    %c0_i32_0 = arith.constant 0 : i32
    %c0_i32_1 = arith.constant 0 : i32
    return %c0_i32, %c0_i32_0 : i32, i32
  }
  func.func @transform_5(%arg0: i32) -> (i32, i32) {
    %c0_i32 = arith.constant 0 : i32
    %c0_i32_0 = arith.constant 0 : i32
    %c0_i32_1 = arith.constant 0 : i32
    return %c0_i32, %c0_i32_0 : i32, i32
  }
  func.func @transform_6(%arg0: i32) -> (i32, i32) {
    %c0_i32 = arith.constant 0 : i32
    %c0_i32_0 = arith.constant 0 : i32
    %c0_i32_1 = arith.constant 0 : i32
    return %c0_i32, %c0_i32_0 : i32, i32
  }
  func.func @transform_7(%arg0: i32) -> (i32, i32) {
    %c0_i32 = arith.constant 0 : i32
    %c0_i32_0 = arith.constant 0 : i32
    %c0_i32_1 = arith.constant 0 : i32
    return %c0_i32, %c0_i32_0 : i32, i32
  }
  func.func @transform_8(%arg0: i32) -> (i32, i32) {
    %c0_i32 = arith.constant 0 : i32
    %c0_i32_0 = arith.constant 0 : i32
    %c0_i32_1 = arith.constant 0 : i32
    return %c0_i32, %c0_i32_0 : i32, i32
  }
  func.func @transform_9(%arg0: i32) -> (i32, i32) {
    %c0_i32 = arith.constant 0 : i32
    %c0_i32_0 = arith.constant 0 : i32
    %c0_i32_1 = arith.constant 0 : i32
    return %c0_i32, %c0_i32_0 : i32, i32
  }
  func.func @transform_10(%arg0: i32) -> (i32, i32) {
    %c0_i32 = arith.constant 0 : i32
    %c0_i32_0 = arith.constant 0 : i32
    %c0_i32_1 = arith.constant 0 : i32
    return %c0_i32, %c0_i32_0 : i32, i32
  }
  func.func @transform_11(%arg0: i32) -> (i32, i32) {
    %c0_i32 = arith.constant 0 : i32
    %c0_i32_0 = arith.constant 0 : i32
    %c0_i32_1 = arith.constant 0 : i32
    return %c0_i32, %c0_i32_0 : i32, i32
  }
  func.func @transform_12(%arg0: i32) -> (i32, i32) {
    %c0_i32 = arith.constant 0 : i32
    %c0_i32_0 = arith.constant 0 : i32
    %c0_i32_1 = arith.constant 0 : i32
    return %c0_i32, %c0_i32_0 : i32, i32
  }
  func.func @transform_13(%arg0: i32) -> (i32, i32) {
    %c0_i32 = arith.constant 0 : i32
    %c0_i32_0 = arith.constant 0 : i32
    %c0_i32_1 = arith.constant 0 : i32
    return %c0_i32, %c0_i32_0 : i32, i32
  }
  func.func @transform_14(%arg0: i32) -> (i32, i32, i32) {
    %c0_i32 = arith.constant 0 : i32
    %c0_i32_0 = arith.constant 0 : i32
    %c0_i32_1 = arith.constant 0 : i32
    return %arg0, %c0_i32, %c0_i32_0 : i32, i32, i32
  }
  func.func @transform_15(%arg0: i32) -> (i32, i32, i32) {
    %c0_i32 = arith.constant 0 : i32
    %c0_i32_0 = arith.constant 0 : i32
    %c0_i32_1 = arith.constant 0 : i32
    return %arg0, %c0_i32, %c0_i32_0 : i32, i32, i32
  }
  func.func @transform_16(%arg0: i32) -> (i32, i32, i32) {
    %c0_i32 = arith.constant 0 : i32
    %c0_i32_0 = arith.constant 0 : i32
    %c0_i32_1 = arith.constant 0 : i32
    return %arg0, %c0_i32, %c0_i32_0 : i32, i32, i32
  }
}

module attributes {stable_mosaic.version = 11 : i64} {
  func.func @_gru_kernel(%arg0: i32, %arg1: memref<1x8x32xf32, #tpu.memory_space<vmem>>, %arg2: memref<1x8x32xf32, #tpu.memory_space<vmem>>, %arg3: memref<1x8x32xf32, #tpu.memory_space<vmem>>, %arg4: memref<8x32xf32, #tpu.memory_space<vmem>>, %arg5: memref<32x32xf32, #tpu.memory_space<vmem>>, %arg6: memref<32x32xf32, #tpu.memory_space<vmem>>, %arg7: memref<32x32xf32, #tpu.memory_space<vmem>>, %arg8: memref<1x32xf32, #tpu.memory_space<vmem>>, %arg9: memref<1x32xf32, #tpu.memory_space<vmem>>, %arg10: memref<1x32xf32, #tpu.memory_space<vmem>>, %arg11: memref<1x8x32xf32, #tpu.memory_space<vmem>>, %arg12: memref<8x32xf32, #tpu.memory_space<vmem>>) attributes {dimension_semantics = [#tpu.dimension_semantics<arbitrary>], iteration_bounds = array<i64: 4>, scalar_prefetch = 0 : i64, scratch_operands = 1 : i64, tpu.core_type = #tpu.core_type<tc>, window_params = [{transform_indices = @transform_0, window_bounds = array<i64: 1, 8, 32>}, {transform_indices = @transform_1, window_bounds = array<i64: 1, 8, 32>}, {transform_indices = @transform_2, window_bounds = array<i64: 1, 8, 32>}, {pipeline_mode = #tpu.pipeline_mode<synchronous>, transform_indices = @transform_3, window_bounds = array<i64: 8, 32>}, {pipeline_mode = #tpu.pipeline_mode<synchronous>, transform_indices = @transform_4, window_bounds = array<i64: 32, 32>}, {pipeline_mode = #tpu.pipeline_mode<synchronous>, transform_indices = @transform_5, window_bounds = array<i64: 32, 32>}, {pipeline_mode = #tpu.pipeline_mode<synchronous>, transform_indices = @transform_6, window_bounds = array<i64: 32, 32>}, {pipeline_mode = #tpu.pipeline_mode<synchronous>, transform_indices = @transform_7, window_bounds = array<i64: 1, 32>}, {pipeline_mode = #tpu.pipeline_mode<synchronous>, transform_indices = @transform_8, window_bounds = array<i64: 1, 32>}, {pipeline_mode = #tpu.pipeline_mode<synchronous>, transform_indices = @transform_9, window_bounds = array<i64: 1, 32>}, {transform_indices = @transform_10, window_bounds = array<i64: 1, 8, 32>}]} {
    %c0_i32 = arith.constant 0 : i32
    %0 = arith.cmpi eq, %arg0, %c0_i32 : i32
    %1 = arith.extui %0 : i1 to i32
    %c0_i32_0 = arith.constant 0 : i32
    %2 = arith.cmpi ne, %1, %c0_i32_0 : i32
    scf.if %2 {
      %c0_33 = arith.constant 0 : index
      %c0_34 = arith.constant 0 : index
      %49 = vector.load %arg4[%c0_33, %c0_34] : memref<8x32xf32, #tpu.memory_space<vmem>>, vector<8x32xf32>
      %c0_35 = arith.constant 0 : index
      %c0_36 = arith.constant 0 : index
      %50 = vector.load %arg12[%c0_35, %c0_36] : memref<8x32xf32, #tpu.memory_space<vmem>>, vector<8x32xf32>
      tpu.vector_store %arg12[%c0_35, %c0_36], %49 {strides = array<i32>} : memref<8x32xf32, #tpu.memory_space<vmem>>, vector<8x32xf32>,
    } else {
    }
    %c0 = arith.constant 0 : index
    %c0_1 = arith.constant 0 : index
    %3 = vector.load %arg12[%c0, %c0_1] : memref<8x32xf32, #tpu.memory_space<vmem>>, vector<8x32xf32>
    %c0_2 = arith.constant 0 : index
    %c0_3 = arith.constant 0 : index
    %4 = vector.load %arg5[%c0_2, %c0_3] : memref<32x32xf32, #tpu.memory_space<vmem>>, vector<32x32xf32>
    %cst = arith.constant dense<0.000000e+00> : vector<8x32xf32>
    %5 = tpu.matmul %3, %4, %cst {dimension_numbers = #tpu.dot_dimension_numbers<[1], [0], [0], [1], [0, 0, 1, 1], [], []>} : vector<8x32xf32>, vector<32x32xf32>, vector<8x32xf32> -> vector<8x32xf32>
    %c0_4 = arith.constant 0 : index
    %c0_5 = arith.constant 0 : index
    %6 = vector.load %arg8[%c0_4, %c0_5] : memref<1x32xf32, #tpu.memory_space<vmem>>, vector<1x32xf32>
    %7 = vector.broadcast %6 : vector<1x32xf32> to vector<8x32xf32>
    %8 = arith.addf %5, %7 : vector<8x32xf32>
    %c0_6 = arith.constant 0 : index
    %c0_7 = arith.constant 0 : index
    %9 = vector.load %arg6[%c0_6, %c0_7] : memref<32x32xf32, #tpu.memory_space<vmem>>, vector<32x32xf32>
    %cst_8 = arith.constant dense<0.000000e+00> : vector<8x32xf32>
    %10 = tpu.matmul %3, %9, %cst_8 {dimension_numbers = #tpu.dot_dimension_numbers<[1], [0], [0], [1], [0, 0, 1, 1], [], []>} : vector<8x32xf32>, vector<32x32xf32>, vector<8x32xf32> -> vector<8x32xf32>
    %c0_9 = arith.constant 0 : index
    %c0_10 = arith.constant 0 : index
    %11 = vector.load %arg9[%c0_9, %c0_10] : memref<1x32xf32, #tpu.memory_space<vmem>>, vector<1x32xf32>
    %12 = vector.broadcast %11 : vector<1x32xf32> to vector<8x32xf32>
    %13 = arith.addf %10, %12 : vector<8x32xf32>
    %c0_11 = arith.constant 0 : index
    %c0_12 = arith.constant 0 : index
    %14 = vector.load %arg7[%c0_11, %c0_12] : memref<32x32xf32, #tpu.memory_space<vmem>>, vector<32x32xf32>
    %cst_13 = arith.constant dense<0.000000e+00> : vector<8x32xf32>
    %15 = tpu.matmul %3, %14, %cst_13 {dimension_numbers = #tpu.dot_dimension_numbers<[1], [0], [0], [1], [0, 0, 1, 1], [], []>} : vector<8x32xf32>, vector<32x32xf32>, vector<8x32xf32> -> vector<8x32xf32>
    %c0_14 = arith.constant 0 : index
    %c0_15 = arith.constant 0 : index
    %16 = vector.load %arg10[%c0_14, %c0_15] : memref<1x32xf32, #tpu.memory_space<vmem>>, vector<1x32xf32>
    %17 = vector.broadcast %16 : vector<1x32xf32> to vector<8x32xf32>
    %18 = arith.addf %15, %17 : vector<8x32xf32>
    %c0_16 = arith.constant 0 : index
    %c0_17 = arith.constant 0 : index
    %c0_18 = arith.constant 0 : index
    %19 = vector.load %arg1[%c0_16, %c0_17, %c0_18] : memref<1x8x32xf32, #tpu.memory_space<vmem>>, vector<1x8x32xf32>
    %20 = vector.shape_cast %19 : vector<1x8x32xf32> to vector<8x32xf32>
    %21 = arith.addf %20, %8 : vector<8x32xf32>
    %22 = arith.negf %21 : vector<8x32xf32>
    %23 = math.exp %22 : vector<8x32xf32>
    %cst_19 = arith.constant 1.000000e+00 : f32
    %24 = vector.broadcast %cst_19 : f32 to vector<8x32xf32>
    %25 = arith.addf %24, %23 : vector<8x32xf32>
    %26 = arith.divf %24, %25 : vector<8x32xf32>
    %c0_20 = arith.constant 0 : index
    %c0_21 = arith.constant 0 : index
    %c0_22 = arith.constant 0 : index
    %27 = vector.load %arg2[%c0_20, %c0_21, %c0_22] : memref<1x8x32xf32, #tpu.memory_space<vmem>>, vector<1x8x32xf32>
    %28 = vector.shape_cast %27 : vector<1x8x32xf32> to vector<8x32xf32>
    %29 = arith.addf %28, %13 : vector<8x32xf32>
    %30 = arith.negf %29 : vector<8x32xf32>
    %31 = math.exp %30 : vector<8x32xf32>
    %cst_23 = arith.constant 1.000000e+00 : f32
    %32 = vector.broadcast %cst_23 : f32 to vector<8x32xf32>
    %33 = arith.addf %32, %31 : vector<8x32xf32>
    %34 = arith.divf %32, %33 : vector<8x32xf32>
    %c0_24 = arith.constant 0 : index
    %c0_25 = arith.constant 0 : index
    %c0_26 = arith.constant 0 : index
    %35 = vector.load %arg3[%c0_24, %c0_25, %c0_26] : memref<1x8x32xf32, #tpu.memory_space<vmem>>, vector<1x8x32xf32>
    %36 = vector.shape_cast %35 : vector<1x8x32xf32> to vector<8x32xf32>
    %37 = arith.mulf %26, %18 : vector<8x32xf32>
    %38 = arith.addf %36, %37 : vector<8x32xf32>
    %39 = math.tanh %38 : vector<8x32xf32>
    %cst_27 = arith.constant 1.000000e+00 : f32
    %40 = vector.broadcast %cst_27 : f32 to vector<8x32xf32>
    %41 = arith.subf %40, %34 : vector<8x32xf32>
    %42 = arith.mulf %41, %39 : vector<8x32xf32>
    %43 = arith.mulf %34, %3 : vector<8x32xf32>
    %44 = arith.addf %42, %43 : vector<8x32xf32>
    %c0_28 = arith.constant 0 : index
    %c0_29 = arith.constant 0 : index
    %45 = vector.load %arg12[%c0_28, %c0_29] : memref<8x32xf32, #tpu.memory_space<vmem>>, vector<8x32xf32>
    tpu.vector_store %arg12[%c0_28, %c0_29], %44 {strides = array<i32>} : memref<8x32xf32, #tpu.memory_space<vmem>>, vector<8x32xf32>,
    %c0_30 = arith.constant 0 : index
    %c0_31 = arith.constant 0 : index
    %c0_32 = arith.constant 0 : index
    %46 = vector.load %arg11[%c0_30, %c0_31, %c0_32] : memref<1x8x32xf32, #tpu.memory_space<vmem>>, vector<1x8x32xf32>
    %47 = vector.shape_cast %46 : vector<1x8x32xf32> to vector<8x32xf32>
    %48 = vector.shape_cast %44 : vector<8x32xf32> to vector<1x8x32xf32>
    tpu.vector_store %arg11[%c0_30, %c0_31, %c0_32], %48 {strides = array<i32>} : memref<1x8x32xf32, #tpu.memory_space<vmem>>, vector<1x8x32xf32>,
    return
  }
  func.func @transform_0(%arg0: i32) -> (i32, i32, i32) {
    %c0_i32 = arith.constant 0 : i32
    %c0_i32_0 = arith.constant 0 : i32
    %c0_i32_1 = arith.constant 0 : i32
    return %arg0, %c0_i32, %c0_i32_0 : i32, i32, i32
  }
  func.func @transform_1(%arg0: i32) -> (i32, i32, i32) {
    %c0_i32 = arith.constant 0 : i32
    %c0_i32_0 = arith.constant 0 : i32
    %c0_i32_1 = arith.constant 0 : i32
    return %arg0, %c0_i32, %c0_i32_0 : i32, i32, i32
  }
  func.func @transform_2(%arg0: i32) -> (i32, i32, i32) {
    %c0_i32 = arith.constant 0 : i32
    %c0_i32_0 = arith.constant 0 : i32
    %c0_i32_1 = arith.constant 0 : i32
    return %arg0, %c0_i32, %c0_i32_0 : i32, i32, i32
  }
  func.func @transform_3(%arg0: i32) -> (i32, i32) {
    %c0_i32 = arith.constant 0 : i32
    %c0_i32_0 = arith.constant 0 : i32
    %c0_i32_1 = arith.constant 0 : i32
    return %c0_i32, %c0_i32_0 : i32, i32
  }
  func.func @transform_4(%arg0: i32) -> (i32, i32) {
    %c0_i32 = arith.constant 0 : i32
    %c0_i32_0 = arith.constant 0 : i32
    %c0_i32_1 = arith.constant 0 : i32
    return %c0_i32, %c0_i32_0 : i32, i32
  }
  func.func @transform_5(%arg0: i32) -> (i32, i32) {
    %c0_i32 = arith.constant 0 : i32
    %c0_i32_0 = arith.constant 0 : i32
    %c0_i32_1 = arith.constant 0 : i32
    return %c0_i32, %c0_i32_0 : i32, i32
  }
  func.func @transform_6(%arg0: i32) -> (i32, i32) {
    %c0_i32 = arith.constant 0 : i32
    %c0_i32_0 = arith.constant 0 : i32
    %c0_i32_1 = arith.constant 0 : i32
    return %c0_i32, %c0_i32_0 : i32, i32
  }
  func.func @transform_7(%arg0: i32) -> (i32, i32) {
    %c0_i32 = arith.constant 0 : i32
    %c0_i32_0 = arith.constant 0 : i32
    %c0_i32_1 = arith.constant 0 : i32
    return %c0_i32, %c0_i32_0 : i32, i32
  }
  func.func @transform_8(%arg0: i32) -> (i32, i32) {
    %c0_i32 = arith.constant 0 : i32
    %c0_i32_0 = arith.constant 0 : i32
    %c0_i32_1 = arith.constant 0 : i32
    return %c0_i32, %c0_i32_0 : i32, i32
  }
  func.func @transform_9(%arg0: i32) -> (i32, i32) {
    %c0_i32 = arith.constant 0 : i32
    %c0_i32_0 = arith.constant 0 : i32
    %c0_i32_1 = arith.constant 0 : i32
    return %c0_i32, %c0_i32_0 : i32, i32
  }
  func.func @transform_10(%arg0: i32) -> (i32, i32, i32) {
    %c0_i32 = arith.constant 0 : i32
    %c0_i32_0 = arith.constant 0 : i32
    %c0_i32_1 = arith.constant 0 : i32
    return %arg0, %c0_i32, %c0_i32_0 : i32, i32, i32
  }
}

module attributes {stable_mosaic.version = 11 : i64} {
  func.func @_heads_kernel(%arg0: i32, %arg1: memref<24x32xf32, #tpu.memory_space<vmem>>, %arg2: memref<24x1xf32, #tpu.memory_space<vmem>>, %arg3: memref<32x10xf32, #tpu.memory_space<vmem>>, %arg4: memref<1x10xf32, #tpu.memory_space<vmem>>, %arg5: memref<24x10xf32, #tpu.memory_space<vmem>>) attributes {dimension_semantics = [#tpu.dimension_semantics<parallel>], iteration_bounds = array<i64: 1>, scalar_prefetch = 0 : i64, scratch_operands = 0 : i64, tpu.core_type = #tpu.core_type<tc>, window_params = [{transform_indices = @transform_0, window_bounds = array<i64: 24, 32>}, {transform_indices = @transform_1, window_bounds = array<i64: 24, 1>}, {pipeline_mode = #tpu.pipeline_mode<synchronous>, transform_indices = @transform_2, window_bounds = array<i64: 32, 10>}, {pipeline_mode = #tpu.pipeline_mode<synchronous>, transform_indices = @transform_3, window_bounds = array<i64: 1, 10>}, {transform_indices = @transform_4, window_bounds = array<i64: 24, 10>}]} {
    %c0 = arith.constant 0 : index
    %c0_0 = arith.constant 0 : index
    %0 = vector.load %arg1[%c0, %c0_0] : memref<24x32xf32, #tpu.memory_space<vmem>>, vector<24x32xf32>
    %c0_1 = arith.constant 0 : index
    %c0_2 = arith.constant 0 : index
    %1 = vector.load %arg3[%c0_1, %c0_2] : memref<32x10xf32, #tpu.memory_space<vmem>>, vector<32x10xf32>
    %cst = arith.constant dense<0.000000e+00> : vector<24x10xf32>
    %2 = tpu.matmul %0, %1, %cst {dimension_numbers = #tpu.dot_dimension_numbers<[1], [0], [0], [1], [0, 0, 1, 1], [], []>} : vector<24x32xf32>, vector<32x10xf32>, vector<24x10xf32> -> vector<24x10xf32>
    %c0_3 = arith.constant 0 : index
    %c0_4 = arith.constant 0 : index
    %3 = vector.load %arg4[%c0_3, %c0_4] : memref<1x10xf32, #tpu.memory_space<vmem>>, vector<1x10xf32>
    %4 = vector.broadcast %3 : vector<1x10xf32> to vector<24x10xf32>
    %5 = arith.addf %2, %4 : vector<24x10xf32>
    %c0_5 = arith.constant 0 : index
    %c0_6 = arith.constant 0 : index
    %6 = vector.load %arg2[%c0_5, %c0_6] : memref<24x1xf32, #tpu.memory_space<vmem>>, vector<24x1xf32>
    %cst_7 = arith.constant 0.000000e+00 : f32
    %7 = vector.broadcast %cst_7 : f32 to vector<24x1xf32>
    %8 = arith.cmpf one, %6, %7 : vector<24x1xf32>
    %9 = tpu.iota {dimensions = array<i32: 1>} : vector<24x10xi32>
    %c5_i32 = arith.constant 5 : i32
    %10 = vector.broadcast %c5_i32 : i32 to vector<24x10xi32>
    %11 = arith.cmpi slt, %9, %10 : vector<24x10xi32>
    %cst_8 = arith.constant 0.000000e+00 : f32
    %cst_9 = arith.constant -1.000000e+10 : f32
    %12 = vector.broadcast %cst_8 : f32 to vector<24x10xf32>
    %13 = vector.broadcast %cst_9 : f32 to vector<24x10xf32>
    %14 = arith.select %11, %12, %13 : vector<24x10xi1>, vector<24x10xf32>
    %15 = vector.shape_cast %8 : vector<24x1xi1> to vector<24x1xi1>
    %16 = vector.broadcast %15 : vector<24x1xi1> to vector<24x10xi1>
    %17 = arith.select %16, %14, %5 : vector<24x10xi1>, vector<24x10xf32>
    %c0_10 = arith.constant 0 : index
    %c0_11 = arith.constant 0 : index
    %18 = vector.load %arg5[%c0_10, %c0_11] : memref<24x10xf32, #tpu.memory_space<vmem>>, vector<24x10xf32>
    tpu.vector_store %arg5[%c0_10, %c0_11], %17 {strides = array<i32>} : memref<24x10xf32, #tpu.memory_space<vmem>>, vector<24x10xf32>,
    return
  }
  func.func @transform_0(%arg0: i32) -> (i32, i32) {
    %c0_i32 = arith.constant 0 : i32
    %c0_i32_0 = arith.constant 0 : i32
    return %arg0, %c0_i32 : i32, i32
  }
  func.func @transform_1(%arg0: i32) -> (i32, i32) {
    %c0_i32 = arith.constant 0 : i32
    %c0_i32_0 = arith.constant 0 : i32
    return %arg0, %c0_i32 : i32, i32
  }
  func.func @transform_2(%arg0: i32) -> (i32, i32) {
    %c0_i32 = arith.constant 0 : i32
    %c0_i32_0 = arith.constant 0 : i32
    %c0_i32_1 = arith.constant 0 : i32
    return %c0_i32, %c0_i32_0 : i32, i32
  }
  func.func @transform_3(%arg0: i32) -> (i32, i32) {
    %c0_i32 = arith.constant 0 : i32
    %c0_i32_0 = arith.constant 0 : i32
    %c0_i32_1 = arith.constant 0 : i32
    return %c0_i32, %c0_i32_0 : i32, i32
  }
  func.func @transform_4(%arg0: i32) -> (i32, i32) {
    %c0_i32 = arith.constant 0 : i32
    %c0_i32_0 = arith.constant 0 : i32
    return %arg0, %c0_i32 : i32, i32
  }
}

module attributes {stable_mosaic.version = 11 : i64} {
  func.func @_mlp_gi_kernel(%arg0: i32, %arg1: memref<24x16xf32, #tpu.memory_space<vmem>>, %arg2: memref<16x32xf32, #tpu.memory_space<vmem>>, %arg3: memref<1x32xf32, #tpu.memory_space<vmem>>, %arg4: memref<32x32xf32, #tpu.memory_space<vmem>>, %arg5: memref<1x32xf32, #tpu.memory_space<vmem>>, %arg6: memref<32x96xf32, #tpu.memory_space<vmem>>, %arg7: memref<1x96xf32, #tpu.memory_space<vmem>>, %arg8: memref<24x32xf32, #tpu.memory_space<vmem>>, %arg9: memref<24x32xf32, #tpu.memory_space<vmem>>, %arg10: memref<24x32xf32, #tpu.memory_space<vmem>>) attributes {dimension_semantics = [#tpu.dimension_semantics<parallel>], iteration_bounds = array<i64: 1>, scalar_prefetch = 0 : i64, scratch_operands = 0 : i64, tpu.core_type = #tpu.core_type<tc>, window_params = [{transform_indices = @transform_0, window_bounds = array<i64: 24, 16>}, {pipeline_mode = #tpu.pipeline_mode<synchronous>, transform_indices = @transform_1, window_bounds = array<i64: 16, 32>}, {pipeline_mode = #tpu.pipeline_mode<synchronous>, transform_indices = @transform_2, window_bounds = array<i64: 1, 32>}, {pipeline_mode = #tpu.pipeline_mode<synchronous>, transform_indices = @transform_3, window_bounds = array<i64: 32, 32>}, {pipeline_mode = #tpu.pipeline_mode<synchronous>, transform_indices = @transform_4, window_bounds = array<i64: 1, 32>}, {pipeline_mode = #tpu.pipeline_mode<synchronous>, transform_indices = @transform_5, window_bounds = array<i64: 32, 96>}, {pipeline_mode = #tpu.pipeline_mode<synchronous>, transform_indices = @transform_6, window_bounds = array<i64: 1, 96>}, {transform_indices = @transform_7, window_bounds = array<i64: 24, 32>}, {transform_indices = @transform_8, window_bounds = array<i64: 24, 32>}, {transform_indices = @transform_9, window_bounds = array<i64: 24, 32>}]} {
    %c0 = arith.constant 0 : index
    %c0_0 = arith.constant 0 : index
    %0 = vector.load %arg1[%c0, %c0_0] : memref<24x16xf32, #tpu.memory_space<vmem>>, vector<24x16xf32>
    %c0_1 = arith.constant 0 : index
    %c0_2 = arith.constant 0 : index
    %1 = vector.load %arg2[%c0_1, %c0_2] : memref<16x32xf32, #tpu.memory_space<vmem>>, vector<16x32xf32>
    %cst = arith.constant dense<0.000000e+00> : vector<24x32xf32>
    %2 = tpu.matmul %0, %1, %cst {dimension_numbers = #tpu.dot_dimension_numbers<[1], [0], [0], [1], [0, 0, 1, 1], [], []>} : vector<24x16xf32>, vector<16x32xf32>, vector<24x32xf32> -> vector<24x32xf32>
    %c0_3 = arith.constant 0 : index
    %c0_4 = arith.constant 0 : index
    %3 = vector.load %arg3[%c0_3, %c0_4] : memref<1x32xf32, #tpu.memory_space<vmem>>, vector<1x32xf32>
    %4 = vector.broadcast %3 : vector<1x32xf32> to vector<24x32xf32>
    %5 = arith.addf %2, %4 : vector<24x32xf32>
    %cst_5 = arith.constant 0.000000e+00 : f32
    %6 = vector.broadcast %cst_5 : f32 to vector<24x32xf32>
    %7 = arith.maximumf %5, %6 : vector<24x32xf32>
    %c0_6 = arith.constant 0 : index
    %c0_7 = arith.constant 0 : index
    %8 = vector.load %arg4[%c0_6, %c0_7] : memref<32x32xf32, #tpu.memory_space<vmem>>, vector<32x32xf32>
    %cst_8 = arith.constant dense<0.000000e+00> : vector<24x32xf32>
    %9 = tpu.matmul %7, %8, %cst_8 {dimension_numbers = #tpu.dot_dimension_numbers<[1], [0], [0], [1], [0, 0, 1, 1], [], []>} : vector<24x32xf32>, vector<32x32xf32>, vector<24x32xf32> -> vector<24x32xf32>
    %c0_9 = arith.constant 0 : index
    %c0_10 = arith.constant 0 : index
    %10 = vector.load %arg5[%c0_9, %c0_10] : memref<1x32xf32, #tpu.memory_space<vmem>>, vector<1x32xf32>
    %11 = vector.broadcast %10 : vector<1x32xf32> to vector<24x32xf32>
    %12 = arith.addf %9, %11 : vector<24x32xf32>
    %cst_11 = arith.constant 0.000000e+00 : f32
    %13 = vector.broadcast %cst_11 : f32 to vector<24x32xf32>
    %14 = arith.maximumf %12, %13 : vector<24x32xf32>
    %c0_12 = arith.constant 0 : index
    %c0_13 = arith.constant 0 : index
    %15 = vector.load %arg6[%c0_12, %c0_13] : memref<32x96xf32, #tpu.memory_space<vmem>>, vector<32x96xf32>
    %cst_14 = arith.constant dense<0.000000e+00> : vector<24x96xf32>
    %16 = tpu.matmul %14, %15, %cst_14 {dimension_numbers = #tpu.dot_dimension_numbers<[1], [0], [0], [1], [0, 0, 1, 1], [], []>} : vector<24x32xf32>, vector<32x96xf32>, vector<24x96xf32> -> vector<24x96xf32>
    %c0_15 = arith.constant 0 : index
    %c0_16 = arith.constant 0 : index
    %17 = vector.load %arg7[%c0_15, %c0_16] : memref<1x96xf32, #tpu.memory_space<vmem>>, vector<1x96xf32>
    %18 = vector.broadcast %17 : vector<1x96xf32> to vector<24x96xf32>
    %19 = arith.addf %16, %18 : vector<24x96xf32>
    %20 = vector.extract_strided_slice %19 {offsets = [0, 0], sizes = [24, 32], strides = [1, 1]} : vector<24x96xf32> to vector<24x32xf32>
    %c0_17 = arith.constant 0 : index
    %c0_18 = arith.constant 0 : index
    %21 = vector.load %arg8[%c0_17, %c0_18] : memref<24x32xf32, #tpu.memory_space<vmem>>, vector<24x32xf32>
    tpu.vector_store %arg8[%c0_17, %c0_18], %20 {strides = array<i32>} : memref<24x32xf32, #tpu.memory_space<vmem>>, vector<24x32xf32>,
    %22 = vector.extract_strided_slice %19 {offsets = [0, 32], sizes = [24, 32], strides = [1, 1]} : vector<24x96xf32> to vector<24x32xf32>
    %c0_19 = arith.constant 0 : index
    %c0_20 = arith.constant 0 : index
    %23 = vector.load %arg9[%c0_19, %c0_20] : memref<24x32xf32, #tpu.memory_space<vmem>>, vector<24x32xf32>
    tpu.vector_store %arg9[%c0_19, %c0_20], %22 {strides = array<i32>} : memref<24x32xf32, #tpu.memory_space<vmem>>, vector<24x32xf32>,
    %24 = vector.extract_strided_slice %19 {offsets = [0, 64], sizes = [24, 32], strides = [1, 1]} : vector<24x96xf32> to vector<24x32xf32>
    %c0_21 = arith.constant 0 : index
    %c0_22 = arith.constant 0 : index
    %25 = vector.load %arg10[%c0_21, %c0_22] : memref<24x32xf32, #tpu.memory_space<vmem>>, vector<24x32xf32>
    tpu.vector_store %arg10[%c0_21, %c0_22], %24 {strides = array<i32>} : memref<24x32xf32, #tpu.memory_space<vmem>>, vector<24x32xf32>,
    return
  }
  func.func @transform_0(%arg0: i32) -> (i32, i32) {
    %c0_i32 = arith.constant 0 : i32
    %c0_i32_0 = arith.constant 0 : i32
    return %arg0, %c0_i32 : i32, i32
  }
  func.func @transform_1(%arg0: i32) -> (i32, i32) {
    %c0_i32 = arith.constant 0 : i32
    %c0_i32_0 = arith.constant 0 : i32
    %c0_i32_1 = arith.constant 0 : i32
    return %c0_i32, %c0_i32_0 : i32, i32
  }
  func.func @transform_2(%arg0: i32) -> (i32, i32) {
    %c0_i32 = arith.constant 0 : i32
    %c0_i32_0 = arith.constant 0 : i32
    %c0_i32_1 = arith.constant 0 : i32
    return %c0_i32, %c0_i32_0 : i32, i32
  }
  func.func @transform_3(%arg0: i32) -> (i32, i32) {
    %c0_i32 = arith.constant 0 : i32
    %c0_i32_0 = arith.constant 0 : i32
    %c0_i32_1 = arith.constant 0 : i32
    return %c0_i32, %c0_i32_0 : i32, i32
  }
  func.func @transform_4(%arg0: i32) -> (i32, i32) {
    %c0_i32 = arith.constant 0 : i32
    %c0_i32_0 = arith.constant 0 : i32
    %c0_i32_1 = arith.constant 0 : i32
    return %c0_i32, %c0_i32_0 : i32, i32
  }
  func.func @transform_5(%arg0: i32) -> (i32, i32) {
    %c0_i32 = arith.constant 0 : i32
    %c0_i32_0 = arith.constant 0 : i32
    %c0_i32_1 = arith.constant 0 : i32
    return %c0_i32, %c0_i32_0 : i32, i32
  }
  func.func @transform_6(%arg0: i32) -> (i32, i32) {
    %c0_i32 = arith.constant 0 : i32
    %c0_i32_0 = arith.constant 0 : i32
    %c0_i32_1 = arith.constant 0 : i32
    return %c0_i32, %c0_i32_0 : i32, i32
  }
  func.func @transform_7(%arg0: i32) -> (i32, i32) {
    %c0_i32 = arith.constant 0 : i32
    %c0_i32_0 = arith.constant 0 : i32
    return %arg0, %c0_i32 : i32, i32
  }
  func.func @transform_8(%arg0: i32) -> (i32, i32) {
    %c0_i32 = arith.constant 0 : i32
    %c0_i32_0 = arith.constant 0 : i32
    return %arg0, %c0_i32 : i32, i32
  }
  func.func @transform_9(%arg0: i32) -> (i32, i32) {
    %c0_i32 = arith.constant 0 : i32
    %c0_i32_0 = arith.constant 0 : i32
    return %arg0, %c0_i32 : i32, i32
  }
}

</mosaic_0001>

<bundles_post_ra>
// kernel: agent_forward.8
= control target key start
LH: loop header
LB: loop body
LE: loop exit
PB: predicated region body
PF: predicated region fallthrough
CT: control target
= control target key end

     0   :  { %v202_v0 = vmov 0.0|0.0   ;;  %vm203_vm0 = vmmov 0   ;;  %v204_v6 = vmov 0.0   ;;  %v205_v7 = vmov 0   ;;  %s277_s2 = inlined_call_operand.vmem [shape: f32[32,10], index: 2, kind: input, shape index: {}]   ;;  %s278_s1 = inlined_call_operand.vmem [shape: f32[24,1], index: 1, kind: input, shape index: {}]   ;;  %s279_s0 = inlined_call_operand.vmem [shape: f32[24,32], index: 0, kind: input, shape index: {}]   ;;  %s280_s3 = inlined_call_operand.vmem [shape: f32[1,10], index: 3, kind: input, shape index: {}]   ;;  %s281_s4 = inlined_call_operand.vmem [shape: f32[24,10], index: 4, kind: output, shape index: {}]  }
   0x1   :  { %185 = vmatprep.subr.bf16.mxu0 %v202_v0  ;;  %191 = vmatprep.subr.bf16.mxu1 %v202_v0  ;;  %v20_v1 = vld [vmem:[%s277_s2] sm:$0xff]  ;;  %v21_v2 = vld [vmem:[%s277_s2 + $0x8] sm:$0xff]  ;;  %v22_v3 = vld [vmem:[%s277_s2 + $0x10] sm:$0xff]  ;;  %vm31_vm4 = vcmask 261120   ;;  %v127_v18 = vlaneseq  ;;  %v206_v26 = vmov -1e+10  }
   0x2   :  { %v186_v4 = vpack.c.bf16 %v21_v2, %v20_v1  ;;  %v23_v5 = vld [vmem:[%s277_s2 + $0x18] sm:$0xff]  ;;  %176 = vmatprep.mubr.msk.f32.mxu0 %vm203_vm0, %v204_v6  ;;  %179 = vmatprep.mubr.msk.f32.mxu1 %vm203_vm0, %v204_v6  ;;  %v121_v8 = vld [vmem:[%s278_s1] sm:$0xff]  ;;  %v122_v9 = vld [vmem:[%s278_s1 + $0x8] sm:$0xff]  ;;  %vm149_vm8 = vcmask 80896  }
   0x3   :  { %200 = vset.pattern.permute.xlu0 %v205_v7  ;;  %201 = vset.pattern.permute.xlu1 %v205_v7  ;;  %v189_v10 = vpack.c.bf16 %v23_v5, %v22_v3  ;;  %vm124_vm1 = vcmp.ne.f32.partialorder %v121_v8, 0.0  ;;  %vm125_vm2 = vcmp.ne.f32.partialorder %v122_v9, 0.0  ;;  %v123_v11 = vld [vmem:[%s278_s1 + $0x10] sm:$0xff]  ;;  %v17_v15 = vld [vmem:[%s279_s0] sm:$0xff]  ;;  %v18_v16 = vld [vmem:[%s279_s0 + $0x8] sm:$0xff]  ;;  %v128_v20 = vand.u32 127, %v127_v18 }
   0x4   :  { %187 = vmatpush3.bf16.msra.mxu0 %v186_v4  ;;  %193 = vmatpush3.bf16.msra.mxu1 %v186_v4  ;;  %v131_v12 = vsel %vm124_vm1, 1, %v205_v7  ;;  %vm126_vm3 = vcmp.ne.f32.partialorder %v123_v11, 0.0  ;;  %v132_v14 = vsel %vm125_vm2, 1, %v205_v7  ;;  %v19_v17 = vld [vmem:[%s279_s0 + $0x10] sm:$0xff]  ;;  %v157_v22 = vld [vmem:[%s280_s3] ss:$0 sm:$0xff] }
   0x5   :  { %188 = vmatprep.subr.bf16.mxu0 %v202_v0  ;;  %192 = vmatprep.subr.bf16.mxu1 %v202_v0  ;;  %v133_v13 = vsel %vm126_vm3, 1, %v205_v7  ;;  %vm129_vm5 = vcmp.lt.s32.totalorder %v128_v20, 5 }
   0x6   :  { %135 = vperm.xlu0 %200, %v131_v12   ;;  %141 = vperm.xlu1 %201, %v133_v13   ;;  %v130_v27 = vsel %vm129_vm5, 0.0, %v206_v26 }
   0x8   :  { %190 = vmatpush3.bf16.msra.mxu0 %v189_v10  ;;  %194 = vmatpush3.bf16.msra.mxu1 %v189_v10 }
   0xa   :  { %138 = vperm.xlu0 %200, %v132_v14  }
   0xb   :  { %177 = vmatmul.mubr.msk.f32.vlgmr.msra.gmra.mrb[0].mxu0 %vm31_vm4, %v17_v15  ;;  %180 = vmatmul.mubr.msk.f32.vlgmr.msra.gmra.mrb[0].mxu1 %vm31_vm4, %v18_v16 }
   0xc   :  { %182 = vmatprep.mubr.msk.f32.mxu1 %vm203_vm0, %v204_v6 }
   0xf   :  { %183 = vmatmul.mubr.msk.f32.gmra.mrb[2].mxu1 %vm31_vm4, %v19_v17 }
  0x85   :  { %v136_v19 = vpop.permute.xlu0 %135  ;;  %v142_v23 = vpop.permute.xlu1 %141 }
  0x86   :  { %vm143_vm6 = vcmp.eq.s32.totalorder %v136_v19, 1  ;;  %vm145_vm9 = vcmp.eq.s32.totalorder %v142_v23, 1 }
  0x89   :  { %v139_v21 = vpop.permute.xlu0 %138 }
  0x8a   :  { %vm144_vm7 = vcmp.eq.s32.totalorder %v139_v21, 1 }
  0xde   :  { %v107_v24 = vpop.f32.mrb[0].mxu0  ;;  %v112_v25 = vpop.f32.mrb[0].mxu1 }
  0xdf   :  { %v108_v28 = vadd.f32 %v157_v22, %v107_v24  ;;  %v113_v29 = vadd.f32 %v157_v22, %v112_v25  ;;  %v181_v30 = vpop.f32.mrb[1].mxu1  ;;  %v178_v31 = vpop.f32.mrb[1].mxu0 }
  0xe1   :  { %v146_v32 = vsel %vm143_vm6, %v130_v27, %v108_v28  ;;  %v147_v33 = vsel %vm144_vm7, %v130_v27, %v113_v29 }
  0xe2   :  { %150 = vst.msk [vmem:[%s281_s4] sm:$0xff] %vm149_vm8, %v146_v32  ;;  %151 = vst.msk [vmem:[%s281_s4 + $0x8] sm:$0xff] %vm149_vm8, %v147_v33  ;;  %v117_v34 = vpop.f32.mrb[2].mxu1 }
  0xe3   :  { %v118_v35 = vadd.f32 %v157_v22, %v117_v34  ;;  %v184_v36 = vpop.f32.mrb[3].mxu1 }
  0xe5   :  { %v148_v37 = vsel %vm145_vm9, %v130_v27, %v118_v35 }
  0xe6   :  { %152 = vst.msk [vmem:[%s281_s4 + $0x10] sm:$0xff] %vm149_vm8, %v148_v37 }

// kernel: agent_forward.7
= control target key start
LH: loop header
LB: loop body
LE: loop exit
PB: predicated region body
PF: predicated region fallthrough
CT: control target
= control target key end

     0   :  { %s920_s13 = smov 0   ;;  %s1025_s0 = inlined_call_operand.vmem [shape: f32[4,8,32], index: 0, kind: input, shape index: {}]   ;;  %s1026_s1 = inlined_call_operand.vmem [shape: f32[4,8,32], index: 1, kind: input, shape index: {}]   ;;  %s1027_s2 = inlined_call_operand.vmem [shape: f32[4,8,32], index: 2, kind: input, shape index: {}]   ;;  %s1028_s3 = inlined_call_operand.vmem [shape: f32[8,32], index: 3, kind: input, shape index: {}]   ;;  %s1029_s4 = inlined_call_operand.vmem [shape: f32[32,32], index: 4, kind: input, shape index: {}]   ;;  %s1030_s5 = inlined_call_operand.vmem [shape: f32[32,32], index: 5, kind: input, shape index: {}]   ;;  %s1031_s6 = inlined_call_operand.vmem [shape: f32[32,32], index: 6, kind: input, shape index: {}]   ;;  %s1032_s7 = inlined_call_operand.vmem [shape: f32[1,32], index: 7, kind: input, shape index: {}]   ;;  %s1033_s8 = inlined_call_operand.vmem [shape: f32[1,32], index: 8, kind: input, shape index: {}]   ;;  %s1034_s9 = inlined_call_operand.vmem [shape: f32[1,32], index: 9, kind: input, shape index: {}]   ;;  %s1035_s10 = inlined_call_operand.vmem [shape: f32[4,8,32], index: 10, kind: output, shape index: {}]  }
   0x1 LB: > { %s747_s14 = sadd.s32 4294967295, %s860_s13   ;;  %p751_p0 = scmp.ge.s32.totalorder %s860_s13, 1  ;;  %s860_s13 = sphi %s920_s13, %s20_s13  }
   0x2   : > { %p329_p1 = scmp.lt.s32.totalorder %s860_s13, 5 }
   0x4   : > { %p330_p2 = pnand %p751_p0, %p329_p1 }
   0x5   : > { %p373_p3 = scmp.lt.s32.totalorder (!%p330_p2), %s747_s14, 3  ;;  %p756_p4 = scmp.ne.s32.totalorder (!%p330_p2), %s747_s14, 0 }
   0x6   : > { %333 = sbr.rel (%p330_p2) target bundleno = 293 (0x125), region = 60 }
   0xd   : > { %s374_s15 = scalar_select %p373_p3, %s747_s14, 3 }
   0xe   : > { %392 = sbr.rel (%p756_p4) target bundleno = 21 (0x15), region = 64  ;;  %v393_v0 = vld [vmem:[%s1028_s3] sm:$0xff] (!%p756_p4)  ;;  %vm394_vm0 = vcmask (!%p756_p4), 261120  }
   0xf   : > { %s928_s16 = sshll.u32 %s374_s15, 3  ;;  %395 = vst.msk [vmem:[#allocation2] sm:$0xff] (!%p756_p4), %vm394_vm0, %v393_v0 }
  0x10   : > { %s376_s19 = scalar_lea.vmem %s1025_s0, %s928_s16  ;;  %s380_s22 = scalar_lea.vmem %s1026_s1, %s928_s16 }
  0x11   : > { %s384_s25 = scalar_lea.vmem %s1027_s2, %s928_s16  ;;  %s388_s28 = scalar_lea.vmem %s1035_s10, %s928_s16 }
  0x15 PF: > { %v397_v1 = vld [vmem:[%s1029_s4] sm:$0xff]  ;;  %v398_v2 = vld [vmem:[%s1029_s4 + $0x8] sm:$0xff]  ;;  %v399_v3 = vld [vmem:[%s1029_s4 + $0x10] sm:$0xff]  ;;  %v862_v4 = vmov 0.0|0.0   ;;  %vm863_vm1 = vmmov 0   ;;  %v864_v7 = vmov 0.0  }
  0x16   : > { %815 = vmatprep.subr.bf16.mxu0 %v862_v4  ;;  %v816_v5 = vpack.c.bf16 %v398_v2, %v397_v1  ;;  %v400_v6 = vld [vmem:[%s1029_s4 + $0x18] sm:$0xff]  ;;  %790 = vmatprep.mubr.msk.f32.mxu0 %vm863_vm1, %v864_v7  ;;  %v482_v8 = vld [vmem:[%s1030_s5] sm:$0xff]  ;;  %v483_v9 = vld [vmem:[%s1030_s5 + $0x8] sm:$0xff]  ;;  %vm408_vm2 = vcmask 261120  }
  0x17   : > { %821 = vmatprep.subr.bf16.mxu1 %v862_v4  ;;  %v484_v10 = vld [vmem:[%s1030_s5 + $0x10] sm:$0xff]  ;;  %v485_v11 = vld [vmem:[%s1030_s5 + $0x18] sm:$0xff]  ;;  %801 = vmatprep.mubr.msk.f32.mxu1 %vm863_vm1, %v864_v7  ;;  %v819_v12 = vpack.c.bf16 %v400_v6, %v399_v3  ;;  %v822_v13 = vpack.c.bf16 %v483_v9, %v482_v8  ;;  %v563_v14 = vld [vmem:[%s1031_s6] sm:$0xff] }
  0x18   : > { %817 = vmatpush3.bf16.msra.mxu0 %v816_v5  ;;  %v564_v15 = vld [vmem:[%s1031_s6 + $0x8] sm:$0xff]  ;;  %v825_v16 = vpack.c.bf16 %v485_v11, %v484_v10  ;;  %v396_v17 = vld [vmem:[#allocation2] sm:$0xff]  ;;  %v565_v19 = vld [vmem:[%s1031_s6 + $0x10] sm:$0xff] }
  0x19   : > { %818 = vmatprep.subr.bf16.mxu0 %v862_v4  ;;  %823 = vmatpush3.bf16.msra.mxu1 %v822_v13  ;;  %v828_v18 = vpack.c.bf16 %v564_v15, %v563_v14  ;;  %v566_v20 = vld [vmem:[%s1031_s6 + $0x18] sm:$0xff]  ;;  %v757_v22 = vld [vmem:[%s1032_s7] ss:$0 sm:$0xff] }
  0x1a   : > { %824 = vmatprep.subr.bf16.mxu1 %v862_v4  ;;  %v831_v21 = vpack.c.bf16 %v566_v20, %v565_v19  ;;  %v644_v24 = vld [vmem:[%s376_s19] sm:$0xff] }
  0x1b   : > { %v759_v25 = vld [vmem:[%s1033_s8] ss:$0 sm:$0xff] }
  0x1c   : > { %820 = vmatpush3.bf16.msra.mxu0 %v819_v12  ;;  %v652_v29 = vld [vmem:[%s380_s22] sm:$0xff] }
  0x1d   : > { %827 = vmatprep.subr.bf16.mxu0 %v862_v4  ;;  %826 = vmatpush3.bf16.msra.mxu1 %v825_v16  ;;  %v761_v41 = vld [vmem:[%s1034_s9] ss:$0 sm:$0xff] }
  0x1e   : > { %v660_v45 = vld [vmem:[%s384_s25] sm:$0xff] }
  0x1f   : > { %791 = vmatmul.mubr.msk.f32.vlgmr.msra.gmra.mrb[0].mxu0 %vm408_vm2, %v396_v17 }
  0x20   : > { %829 = vmatpush3.bf16.msra.mxu0 %v828_v18  ;;  %812 = vmatprep.mubr.msk.f32.mxu0 %vm863_vm1, %v864_v7 }
  0x21   : > { %802 = vmatmul.mubr.msk.f32.vlgmr.msra.gmra.mrb[0].mxu1 %vm408_vm2, %v396_v17  ;;  %830 = vmatprep.subr.bf16.mxu0 %v862_v4 }
  0x24   : > { %832 = vmatpush3.bf16.msra.mxu0 %v831_v21 }
  0x27   : > { %813 = vmatmul.mubr.msk.f32.vlgmr.msra.gmra.mrb[2].mxu0 %vm408_vm2, %v396_v17 }
  0xf2   : > { %v478_v23 = vpop.f32.mrb[0].mxu0 }
  0xf3   : > { %v479_v26 = vadd.f32 %v757_v22, %v478_v23  ;;  %v792_v27 = vpop.f32.mrb[1].mxu0 }
  0xf4   : > { %v559_v28 = vpop.f32.mrb[0].mxu1 }
  0xf5   : > { %v645_v30 = vadd.f32 %v644_v24, %v479_v26  ;;  %v560_v31 = vadd.f32 %v759_v25, %v559_v28  ;;  %v803_v32 = vpop.f32.mrb[1].mxu1 }
  0xf7   : > { %v763_v33 = vmul.f32 -1.442695, %v645_v30  ;;  %v653_v34 = vadd.f32 %v652_v29, %v560_v31 }
  0xf9   : > { %844 = vpow2.f32 %v763_v33  ;;  %v764_v35 = vmul.f32 -1.442695, %v653_v34 }
  0xfa   : > { %v640_v36 = vpop.f32.mrb[2].mxu0 }
  0xfb   : > { %v814_v37 = vpop.f32.mrb[3].mxu0  ;;  %846 = vpow2.f32 %v764_v35  ;;  %v641_v43 = vadd.f32 %v761_v41, %v640_v36 }
 0x103   : > { %v845_v38 = vpop.eup %844 }
 0x104   : > { %v649_v39 = vadd.f32 1.0, %v845_v38 }
 0x105   : > { %v847_v40 = vpop.eup %846 }
 0x106   : > { %848 = vrcp.f32 %v649_v39  ;;  %v657_v42 = vadd.f32 1.0, %v847_v40 }
 0x108   : > { %850 = vrcp.f32 %v657_v42 }
 0x110   : > { %v849_v44 = vpop.eup %848 }
 0x111   : > { %v661_v46 = vmul.f32 %v849_v44, %v641_v43 }
 0x112   : > { %v851_v48 = vpop.eup %850 }
 0x113   : > { %v662_v47 = vadd.f32 %v661_v46, %v660_v45  ;;  %v664_v49 = vsub.f32 1.0, %v851_v48  ;;  %v666_v51 = vmul.f32 %v851_v48, %v396_v17 }
 0x115   : > { %852 = vtanh.f32 %v662_v47 }
 0x11f   : > { %v853_v50 = vpop.eup %852 }
 0x120   : > { %v665_v52 = vmul.f32 %v853_v50, %v664_v49 }
 0x122   : > { %v667_v53 = vadd.f32 %v666_v51, %v665_v52 }
 0x124   : > { %668 = vst.msk [vmem:[#allocation2] sm:$0xff] %vm408_vm2, %v667_v53  ;;  %669 = vst.msk [vmem:[%s388_s28] sm:$0xff] %vm408_vm2, %v667_v53 }
 0x125 PF: > { %s20_s13 = sadd.s32 1, %s860_s13  }
 0x126   : > { %p17_p5 = scmp.ge.s32.totalorder %s20_s13, 6  }
 0x128   :  { %19 = sbr.rel (!%p17_p5) target bundleno = 1 (0x1), region = 100 }

// kernel: agent_forward.9
= control target key start
LH: loop header
LB: loop body
LE: loop exit
PB: predicated region body
PF: predicated region fallthrough
CT: control target
= control target key end

     0   :  { %v480_v0 = vmov 0.0|0.0   ;;  %vm481_vm0 = vmmov 0   ;;  %v482_v3 = vmov 0.0   ;;  %vm41_vm1 = vcmask 130048   ;;  %s483_s16 = smov 64   ;;  %s643_s1 = inlined_call_operand.vmem [shape: f32[16,32], index: 1, kind: input, shape index: {}]   ;;  %s644_s3 = inlined_call_operand.vmem [shape: f32[32,32], index: 3, kind: input, shape index: {}]   ;;  %s645_s0 = inlined_call_operand.vmem [shape: f32[24,16], index: 0, kind: input, shape index: {}]   ;;  %s646_s5 = inlined_call_operand.vmem [shape: f32[32,96], index: 5, kind: input, shape index: {}]   ;;  %s647_s2 = inlined_call_operand.vmem [shape: f32[1,32], index: 2, kind: input, shape index: {}]   ;;  %s648_s4 = inlined_call_operand.vmem [shape: f32[1,32], index: 4, kind: input, shape index: {}]   ;;  %s649_s6 = inlined_call_operand.vmem [shape: f32[1,96], index: 6, kind: input, shape index: {}]   ;;  %s650_s7 = inlined_call_operand.vmem [shape: f32[24,32], index: 7, kind: output, shape index: {0}]   ;;  %s651_s9 = inlined_call_operand.vmem [shape: f32[24,32], index: 9, kind: output, shape index: {2}]   ;;  %s652_s8 = inlined_call_operand.vmem [shape: f32[24,32], index: 8, kind: output, shape index: {1}]  }
   0x1   :  { %458 = vmatprep.subr.bf16.mxu0 %v480_v0  ;;  %v32_v1 = vld [vmem:[%s643_s1] sm:$0xff]  ;;  %v33_v2 = vld [vmem:[%s643_s1 + $0x8] sm:$0xff]  ;;  %415 = vmatprep.mubr.msk.f32.mxu0 %vm481_vm0, %v482_v3  ;;  %v31_v8 = vld [vmem:[%s645_s0 + $0x10] sm:$0xff]  ;;  %vm145_vm2 = vcmask 261120   ;;  %s484_s1 = smov 96  }
   0x2   :  { %v459_v4 = vpack.c.bf16 %v33_v2, %v32_v1  ;;  %473 = vmatprep.subr.bf16.mxu1 %v480_v0  ;;  %421 = vmatprep.mubr.msk.f32.mxu1 %vm481_vm0, %v482_v3  ;;  %v134_v5 = vld [vmem:[%s644_s3] sm:$0xff]  ;;  %v135_v6 = vld [vmem:[%s644_s3 + $0x8] sm:$0xff]  ;;  %v136_v11 = vld [vmem:[%s644_s3 + $0x10] sm:$0xff] }
   0x3   :  { %v29_v7 = vld [vmem:[%s645_s0] sm:$0xff]  ;;  %v462_v9 = vpack.c.bf16 %v135_v6, %v134_v5  ;;  %v30_v10 = vld [vmem:[%s645_s0 + $0x8] sm:$0xff]  ;;  %v137_v12 = vld [vmem:[%s644_s3 + $0x18] sm:$0xff] }
   0x4   :  { %460 = vmatpush3.bf16.msra.mxu0 %v459_v4  ;;  %474 = vmatpush3.bf16.msra.mxu1 %v459_v4  ;;  %v465_v13 = vpack.c.bf16 %v137_v12, %v136_v11  ;;  %v238_v14 = vld [vmem:[%s646_s5] sm:$0xff]  ;;  %v239_v15 = vld [vmem:[%s646_s5 + $0x8] sm:$0xff]  ;;  %v240_v30 = vld [vmem:[%s646_s5 + $0x10] sm:$0xff] }
   0x5   :  { %461 = vmatprep.subr.bf16.mxu1 %v480_v0  ;;  %467 = vmatprep.subr.bf16.mxu0 %v480_v0  ;;  %v468_v16 = vpack.c.bf16 %v239_v15, %v238_v14  ;;  %v380_v17 = vld [vmem:[%s647_s2] ss:$0 sm:$0xff]  ;;  %v241_v31 = vld [vmem:[%s646_s5 + $0x18] sm:$0xff] }
   0x6   :  { %v471_v32 = vpack.c.bf16 %v241_v31, %v240_v30  ;;  %v384_v33 = vld [vmem:[%s648_s4] ss:$0 sm:$0xff] }
   0x7   :  { %416 = vmatmul.mubr.msk.f32.vlgmr.msra.gmra.mrb[0].mxu0 %vm41_vm1, %v29_v7  ;;  %422 = vmatmul.mubr.msk.f32.vlgmr.msra.gmra.mrb[0].mxu1 %vm41_vm1, %v31_v8  ;;  %v388_v46 = vld [vmem:[%s649_s6] ss:$0 sm:$0xff] }
   0x8   :  { %418 = vmatprep.mubr.msk.f32.mxu0 %vm481_vm0, %v482_v3  ;;  %463 = vmatpush3.bf16.msra.mxu1 %v462_v9 }
   0x9   :  { %464 = vmatprep.subr.bf16.mxu1 %v480_v0  ;;  %432 = vmatprep.mubr.msk.f32.mxu1 %vm481_vm0, %v482_v3 }
   0xa   :  { %469 = vmatpush3.bf16.msra.mxu0 %v468_v16 }
   0xb   :  { %419 = vmatmul.mubr.msk.f32.gmra.mrb[2].mxu0 %vm41_vm1, %v30_v10  ;;  %470 = vmatprep.subr.bf16.mxu0 %v480_v0 }
   0xc   :  { %449 = vmatprep.mubr.msk.f32.mxu0 %vm481_vm0, %v482_v3  ;;  %466 = vmatpush3.bf16.msra.mxu1 %v465_v13 }
   0xe   :  { %472 = vmatpush3.bf16.msra.mxu0 %v471_v32 }
  0xda   :  { %v117_v18 = vpop.f32.mrb[0].mxu0  ;;  %v127_v19 = vpop.f32.mrb[0].mxu1 }
  0xdb   :  { %v118_v20 = vadd.f32 %v380_v17, %v117_v18  ;;  %v417_v21 = vpop.f32.mrb[1].mxu0  ;;  %v423_v22 = vpop.f32.mrb[1].mxu1  ;;  %v128_v27 = vadd.f32 %v380_v17, %v127_v19 }
  0xdd   :  { %v131_v23 = vmax.f32 %v118_v20, 0.0  ;;  %v133_v29 = vmax.f32 %v128_v27, 0.0 }
  0xde   :  { %v122_v24 = vpop.f32.mrb[2].mxu0 }
  0xdf   :  { %v123_v25 = vadd.f32 %v380_v17, %v122_v24  ;;  %v420_v26 = vpop.f32.mrb[3].mxu0  ;;  %433 = vmatmul.mubr.msk.f32.vlgmr.msra.gmra.mrb[2].mxu1 %vm145_vm2, %v131_v23 }
  0xe0   :  { %435 = vmatprep.mubr.msk.f32.mxu1 %vm481_vm0, %v482_v3 }
  0xe1   :  { %v132_v28 = vmax.f32 %v123_v25, 0.0 }
  0xe3   :  { %436 = vmatmul.mubr.msk.f32.gmra.mrb[4].mxu1 %vm145_vm2, %v132_v28 }
  0xe4   :  { %438 = vmatprep.mubr.msk.f32.mxu1 %vm481_vm0, %v482_v3 }
  0xe7   :  { %439 = vmatmul.mubr.msk.f32.gmra.mrb[6].mxu1 %vm145_vm2, %v133_v29 }
 0x1b2   :  { %v221_v34 = vpop.f32.mrb[2].mxu1 }
 0x1b3   :  { %v222_v35 = vadd.f32 %v384_v33, %v221_v34  ;;  %v434_v36 = vpop.f32.mrb[3].mxu1 }
 0x1b5   :  { %v235_v37 = vmax.f32 %v222_v35, 0.0 }
 0x1b6   :  { %v226_v38 = vpop.f32.mrb[4].mxu1 }
 0x1b7   :  { %v227_v39 = vadd.f32 %v384_v33, %v226_v38  ;;  %v437_v40 = vpop.f32.mrb[5].mxu1  ;;  %450 = vmatmul.mubr.msk.f32.vlgmr.msra.gmra.mrb[4].mxu0 %vm145_vm2, %v235_v37 }
 0x1b8   :  { %452 = vmatprep.mubr.msk.f32.mxu0 %vm481_vm0, %v482_v3 }
 0x1b9   :  { %v236_v41 = vmax.f32 %v227_v39, 0.0 }
 0x1ba   :  { %v231_v42 = vpop.f32.mrb[6].mxu1 }
 0x1bb   :  { %v232_v43 = vadd.f32 %v384_v33, %v231_v42  ;;  %v440_v44 = vpop.f32.mrb[7].mxu1  ;;  %453 = vmatmul.mubr.msk.f32.gmra.mrb[6].mxu0 %vm145_vm2, %v236_v41 }
 0x1bc   :  { %455 = vmatprep.mubr.msk.f32.mxu0 %vm481_vm0, %v482_v3 }
 0x1bd   :  { %v237_v45 = vmax.f32 %v232_v43, 0.0 }
 0x1bf   :  { %456 = vmatmul.mubr.msk.f32.gmra.mrb[8].mxu0 %vm145_vm2, %v237_v45 }
 0x28a   :  { %v324_v47 = vpop.f32.mrb[4].mxu0 }
 0x28b   :  { %v325_v48 = vadd.f32 %v388_v46, %v324_v47  ;;  %v451_v49 = vpop.f32.mrb[5].mxu0 }
 0x28d   :  { %338 = vst.msk [vmem:[%s650_s7] sm:$0xff] %vm145_vm2, %v325_v48  ;;  %356 = vrot.lane.b32.xlu1 %v325_v48, %s483_s16  ;;  %344 = vrot.lane.b32.xlu0 %v325_v48, %s484_s1 }
 0x28e   :  { %v329_v50 = vpop.f32.mrb[6].mxu0 }
 0x28f   :  { %v330_v51 = vadd.f32 %v388_v46, %v329_v50  ;;  %v454_v52 = vpop.f32.mrb[7].mxu0 }
 0x291   :  { %339 = vst.msk [vmem:[%s650_s7 + $0x8] sm:$0xff] %vm145_vm2, %v330_v51  ;;  %346 = vrot.lane.b32.xlu0 %v330_v51, %s484_s1 }
 0x292   :  { %v334_v53 = vpop.f32.mrb[8].mxu0 }
 0x293   :  { %v335_v54 = vadd.f32 %v388_v46, %v334_v53  ;;  %v457_v55 = vpop.f32.mrb[9].mxu0 }
 0x295   :  { %340 = vst.msk [vmem:[%s650_s7 + $0x10] sm:$0xff] %vm145_vm2, %v335_v54  ;;  %358 = vrot.lane.b32.xlu0 %v330_v51, %s483_s16  ;;  %348 = vrot.lane.b32.xlu1 %v335_v54, %s484_s1 }
 0x299   :  { %360 = vrot.lane.b32.xlu1 %v335_v54, %s483_s16 }
 0x2ff   :  { %v357_v56 = vpop.permute.xlu1 %356  ;;  %v345_v57 = vpop.permute.xlu0 %344 }
 0x300   :  { %365 = vst.msk [vmem:[%s651_s9] sm:$0xff] %vm145_vm2, %v357_v56  ;;  %353 = vst.msk [vmem:[%s652_s8] sm:$0xff] %vm145_vm2, %v345_v57 }
 0x303   :  { %v347_v58 = vpop.permute.xlu0 %346 }
 0x304   :  { %354 = vst.msk [vmem:[%s652_s8 + $0x8] sm:$0xff] %vm145_vm2, %v347_v58 }
 0x307   :  { %v359_v59 = vpop.permute.xlu0 %358  ;;  %v349_v60 = vpop.permute.xlu1 %348 }
 0x308   :  { %366 = vst.msk [vmem:[%s651_s9 + $0x8] sm:$0xff] %vm145_vm2, %v359_v59  ;;  %355 = vst.msk [vmem:[%s652_s8 + $0x10] sm:$0xff] %vm145_vm2, %v349_v60 }
 0x30b   :  { %v361_v61 = vpop.permute.xlu1 %360 }
 0x30c   :  { %367 = vst.msk [vmem:[%s651_s9 + $0x10] sm:$0xff] %vm145_vm2, %v361_v61 }

// kernel: agent_forward.6
= control target key start
LH: loop header
LB: loop body
LE: loop exit
PB: predicated region body
PF: predicated region fallthrough
CT: control target
= control target key end

     0   :  { %v15452_v0 = vmov 0.0|0.0   ;;  %vm13579_vm0 = vmmov 0   ;;  %v15454_v4 = vmov 0.0   ;;  %vm67_vm1 = vcmask 130048   ;;  %s13581_s28 = smov 120   ;;  %s13583_s18 = smov 104   ;;  %s15432_s3 = inlined_call_operand.vmem [shape: f32[16,32], index: 3, kind: input, shape index: {}]   ;;  %s15433_s0 = inlined_call_operand.vmem [shape: f32[8,6,16], index: 0, kind: input, shape index: {}]   ;;  %s15434_s5 = inlined_call_operand.vmem [shape: f32[32,32], index: 5, kind: input, shape index: {}]   ;;  %s15435_s4 = inlined_call_operand.vmem [shape: f32[1,32], index: 4, kind: input, shape index: {}]   ;;  %s15436_s6 = inlined_call_operand.vmem [shape: f32[32,32], index: 6, kind: input, shape index: {}]   ;;  %s15437_s7 = inlined_call_operand.vmem [shape: f32[32,32], index: 7, kind: input, shape index: {}]   ;;  %s15438_s1 = inlined_call_operand.vmem [shape: f32[8,3,6], index: 1, kind: input, shape index: {}]   ;;  %s15439_s8 = inlined_call_operand.vmem [shape: f32[32,32], index: 8, kind: input, shape index: {}]   ;;  %s15440_s2 = inlined_call_operand.vmem [shape: f32[8,3,1], index: 2, kind: input, shape index: {}]   ;;  %s15441_s10 = inlined_call_operand.vmem [shape: f32[32,32], index: 10, kind: input, shape index: {}]   ;;  %s15442_s9 = inlined_call_operand.vmem [shape: f32[1,32], index: 9, kind: input, shape index: {}]   ;;  %s15443_s12 = inlined_call_operand.vmem [shape: f32[32,96], index: 12, kind: input, shape index: {}]   ;;  %s15444_s11 = inlined_call_operand.vmem [shape: f32[1,32], index: 11, kind: input, shape index: {}]   ;;  %s15445_s13 = inlined_call_operand.vmem [shape: f32[1,96], index: 13, kind: input, shape index: {}]   ;;  %s15446_s14 = inlined_call_operand.vmem [shape: f32[8,3,32], index: 14, kind: output, shape index: {0}]   ;;  %s15447_s15 = inlined_call_operand.vmem [shape: f32[8,3,32], index: 15, kind: output, shape index: {1}]   ;;  %s15448_s16 = inlined_call_operand.vmem [shape: f32[8,3,32], index: 16, kind: output, shape index: {2}]  }
   0x1   :  { %15461 = sst [smem:[#allocation4_spill]] %s15432_s3  ;;  %13175 = vmatprep.subr.bf16.mxu0 %v15452_v0  ;;  %13178 = vmatprep.subr.bf16.mxu1 %v15452_v0  ;;  %v50_v5 = vld [vmem:[%s15433_s0] sm:$0x3f]  ;;  %v51_v6 = vld [vmem:[%s15433_s0 + $0x8] sm:$0x3f]  ;;  %v662_v16 = vld [vmem:[%s15434_s5 + $0x10] sm:$0xff] }
   0x2   :  { %s15462_s23 = sld [smem:[#allocation4_spill]]  ;;  %12203 = vmatprep.mubr.msk.f32.mxu0 %vm13579_vm0, %v15454_v4  ;;  %12210 = vmatprep.mubr.msk.f32.mxu1 %vm13579_vm0, %v15454_v4  ;;  %v52_v7 = vld [vmem:[%s15433_s0 + $0x10] sm:$0x3f]  ;;  %v53_v8 = vld [vmem:[%s15433_s0 + $0x18] sm:$0x3f]  ;;  %v660_v11 = vld [vmem:[%s15434_s5] sm:$0xff] }
   0x3   :  { %v54_v9 = vld [vmem:[%s15433_s0 + $0x20] sm:$0x3f]  ;;  %v55_v10 = vld [vmem:[%s15433_s0 + $0x28] sm:$0x3f]  ;;  %v56_v13 = vld [vmem:[%s15433_s0 + $0x30] sm:$0x3f] }
   0x4   :  { %v661_v12 = vld [vmem:[%s15434_s5 + $0x8] sm:$0xff]  ;;  %v57_v14 = vld [vmem:[%s15433_s0 + $0x38] sm:$0x3f]  ;;  %v11571_v19 = vld [vmem:[%s15435_s4] ss:$0 sm:$0xff]  ;;  %vm15450_vm2 = vcmask 261120  }
   0x5   :  { %v13734_v15 = vpack.c.bf16 %v661_v12, %v660_v11  ;;  %v663_v17 = vld [vmem:[%s15434_s5 + $0x18] sm:$0xff]  ;;  %v1249_v50 = vld [vmem:[%s15436_s6] sm:$0xff]  ;;  %v1250_v51 = vld [vmem:[%s15436_s6 + $0x8] sm:$0xff]  ;;  %vm2397_vm3 = vcmask 64512   ;;  %vm3139_vm4 = vcmask 1045504   ;;  %vm3022_vm6 = vcmask 43008  }
   0x6   :  { %v13758_v18 = vpack.c.bf16 %v663_v17, %v662_v16  ;;  %v13248_v54 = vpack.c.bf16 %v1250_v51, %v1249_v50  ;;  %v1251_v55 = vld [vmem:[%s15436_s6 + $0x10] sm:$0xff]  ;;  %v1252_v56 = vld [vmem:[%s15436_s6 + $0x18] sm:$0xff]  ;;  %v1813_v58 = vld [vmem:[%s15437_s7] sm:$0xff]  ;;  %s13585_s0 = smov 96  }
   0x7   :  { %v13251_v57 = vpack.c.bf16 %v1252_v56, %v1251_v55  ;;  %v1814_v59 = vld [vmem:[%s15437_s7 + $0x8] sm:$0xff]  ;;  %v1815_v61 = vld [vmem:[%s15437_s7 + $0x10] sm:$0xff]  ;;  %v1816_v62 = vld [vmem:[%s15437_s7 + $0x18] sm:$0xff] }
   0x8   :  { %v58_v1 = vld [vmem:[%s15462_s23] sm:$0xff]  ;;  %v59_v2 = vld [vmem:[%s15462_s23 + $0x8] sm:$0xff]  ;;  %v13296_v60 = vpack.c.bf16 %v1814_v59, %v1813_v58  ;;  %v13299_v63 = vpack.c.bf16 %v1816_v62, %v1815_v61 }
   0x9   :  { %v13176_v3 = vpack.c.bf16 %v59_v2, %v58_v1  ;;  %v14072_v50 = vld [vmem:[%s15438_s1] sm:$0x7]  ;;  %v14077_v51 = vld [vmem:[%s15438_s1 + $0x4] sm:$0x7]  ;;  %v14094_v61 = vld [vmem:[%s15438_s1 + $0x8] sm:$0x7] }
   0xa   :  { %vm2385_vm5 = vcmp.eq.f32.partialorder %v14072_v50, 0.0  ;;  %vm2386_vm7 = vcmp.eq.f32.partialorder %v14077_v51, 0.0  ;;  %v14099_v62 = vld [vmem:[%s15438_s1 + $0xc] sm:$0x7]  ;;  %vm2387_vm8 = vcmp.eq.f32.partialorder %v14094_v61, 0.0 }
   0xb   :  { %13177 = vmatpush3.bf16.msra.mxu0 %v13176_v3  ;;  %13180 = vmatpush3.bf16.msra.mxu1 %v13176_v3  ;;  %vm2388_vm9 = vcmp.eq.f32.partialorder %v14099_v62, 0.0 }
   0xc   :  { %13181 = vmatprep.subr.bf16.mxu0 %v15452_v0  ;;  %13184 = vmatprep.subr.bf16.mxu1 %v15452_v0 }
   0xe   :  { %12204 = vmatmul.mubr.msk.f32.vlgmr.msra.gmra.mrb[0].mxu0 %vm67_vm1, %v50_v5  ;;  %12211 = vmatmul.mubr.msk.f32.vlgmr.msra.gmra.mrb[0].mxu1 %vm67_vm1, %v51_v6 }
   0xf   :  { %13183 = vmatpush3.bf16.msra.mxu0 %v13176_v3  ;;  %13186 = vmatpush3.bf16.msra.mxu1 %v13176_v3 }
  0x10   :  { %12217 = vmatprep.mubr.msk.f32.mxu0 %vm13579_vm0, %v15454_v4  ;;  %12224 = vmatprep.mubr.msk.f32.mxu1 %vm13579_vm0, %v15454_v4 }
  0x11   :  { %13187 = vmatprep.subr.bf16.mxu0 %v15452_v0  ;;  %13190 = vmatprep.subr.bf16.mxu1 %v15452_v0 }
  0x12   :  { %12218 = vmatmul.mubr.msk.f32.vlgmr.msra.gmra.mrb[2].mxu0 %vm67_vm1, %v52_v7  ;;  %12225 = vmatmul.mubr.msk.f32.vlgmr.msra.gmra.mrb[2].mxu1 %vm67_vm1, %v53_v8 }
  0x13   :  { %13189 = vmatpush3.bf16.msra.mxu0 %v13176_v3  ;;  %13192 = vmatpush3.bf16.msra.mxu1 %v13176_v3 }
  0x14   :  { %12231 = vmatprep.mubr.msk.f32.mxu0 %vm13579_vm0, %v15454_v4  ;;  %12238 = vmatprep.mubr.msk.f32.mxu1 %vm13579_vm0, %v15454_v4 }
  0x15   :  { %13193 = vmatprep.subr.bf16.mxu0 %v15452_v0  ;;  %13196 = vmatprep.subr.bf16.mxu1 %v15452_v0 }
  0x16   :  { %12232 = vmatmul.mubr.msk.f32.vlgmr.msra.gmra.mrb[4].mxu0 %vm67_vm1, %v54_v9  ;;  %12239 = vmatmul.mubr.msk.f32.vlgmr.msra.gmra.mrb[4].mxu1 %vm67_vm1, %v55_v10 }
  0x17   :  { %13195 = vmatpush3.bf16.msra.mxu0 %v13176_v3  ;;  %13198 = vmatpush3.bf16.msra.mxu1 %v13176_v3 }
  0x18   :  { %12245 = vmatprep.mubr.msk.f32.mxu0 %vm13579_vm0, %v15454_v4  ;;  %12252 = vmatprep.mubr.msk.f32.mxu1 %vm13579_vm0, %v15454_v4 }
  0x19   :  { %13199 = vmatprep.subr.bf16.mxu0 %v15452_v0  ;;  %13205 = vmatprep.subr.bf16.mxu1 %v15452_v0 }
  0x1a   :  { %12246 = vmatmul.mubr.msk.f32.vlgmr.msra.gmra.mrb[6].mxu0 %vm67_vm1, %v56_v13  ;;  %12253 = vmatmul.mubr.msk.f32.vlgmr.msra.gmra.mrb[6].mxu1 %vm67_vm1, %v57_v14 }
  0x1b   :  { %13201 = vmatpush3.bf16.msra.mxu0 %v13734_v15  ;;  %13207 = vmatpush3.bf16.msra.mxu1 %v13734_v15 }
  0x1c   :  { %13202 = vmatprep.subr.bf16.mxu0 %v15452_v0  ;;  %13208 = vmatprep.subr.bf16.mxu1 %v15452_v0 }
  0x1d   :  { %12263 = vmatprep.mubr.msk.f32.mxu0 %vm13579_vm0, %v15454_v4  ;;  %12274 = vmatprep.mubr.msk.f32.mxu1 %vm13579_vm0, %v15454_v4 }
  0x1f   :  { %13204 = vmatpush3.bf16.msra.mxu0 %v13758_v18  ;;  %13210 = vmatpush3.bf16.msra.mxu1 %v13758_v18 }
  0x20   :  { %13211 = vmatprep.subr.bf16.mxu0 %v15452_v0  ;;  %13217 = vmatprep.subr.bf16.mxu1 %v15452_v0 }
  0xe1   :  { %v137_v20 = vpop.f32.mrb[0].mxu0  ;;  %v210_v21 = vpop.f32.mrb[0].mxu1 }
  0xe2   :  { %v138_v22 = vadd.f32 %v11571_v19, %v137_v20  ;;  %v211_v23 = vadd.f32 %v11571_v19, %v210_v21  ;;  %v12205_v24 = vpop.f32.mrb[1].mxu0  ;;  %v12212_v25 = vpop.f32.mrb[1].mxu1 }
  0xe4   :  { %v13767_v26 = vmax.f32 %v138_v22, 0.0  ;;  %v13769_v27 = vmax.f32 %v211_v23, 0.0 }
  0xe5   :  { %v283_v28 = vpop.f32.mrb[2].mxu0  ;;  %v356_v29 = vpop.f32.mrb[2].mxu1 }
  0xe6   :  { %12264 = vmatmul.mubr.msk.f32.vlgmr.msra.gmra.mrb[8].mxu0 %vm15450_vm2, %v13767_v26  ;;  %12275 = vmatmul.mubr.msk.f32.vlgmr.msra.gmra.mrb[8].mxu1 %vm15450_vm2, %v13769_v27  ;;  %v284_v30 = vadd.f32 %v11571_v19, %v283_v28  ;;  %v357_v31 = vadd.f32 %v11571_v19, %v356_v29  ;;  %v12219_v32 = vpop.f32.mrb[3].mxu0  ;;  %v12226_v33 = vpop.f32.mrb[3].mxu1 }
  0xe7   :  { %13213 = vmatpush3.bf16.msra.mxu0 %v13734_v15  ;;  %13219 = vmatpush3.bf16.msra.mxu1 %v13734_v15 }
  0xe8   :  { %13214 = vmatprep.subr.bf16.mxu0 %v15452_v0  ;;  %13220 = vmatprep.subr.bf16.mxu1 %v15452_v0  ;;  %v13783_v36 = vmax.f32 %v284_v30, 0.0  ;;  %v13785_v37 = vmax.f32 %v357_v31, 0.0 }
  0xe9   :  { %12285 = vmatprep.mubr.msk.f32.mxu0 %vm13579_vm0, %v15454_v4  ;;  %12296 = vmatprep.mubr.msk.f32.mxu1 %vm13579_vm0, %v15454_v4  ;;  %v429_v34 = vpop.f32.mrb[4].mxu0  ;;  %v502_v35 = vpop.f32.mrb[4].mxu1 }
  0xea   :  { %v12233_v38 = vpop.f32.mrb[5].mxu0  ;;  %v12240_v39 = vpop.f32.mrb[5].mxu1  ;;  %v430_v42 = vadd.f32 %v11571_v19, %v429_v34  ;;  %v503_v43 = vadd.f32 %v11571_v19, %v502_v35 }
  0xeb   :  { %13216 = vmatpush3.bf16.msra.mxu0 %v13758_v18  ;;  %13222 = vmatpush3.bf16.msra.mxu1 %v13758_v18 }
  0xec   :  { %13223 = vmatprep.subr.bf16.mxu0 %v15452_v0  ;;  %13229 = vmatprep.subr.bf16.mxu1 %v15452_v0  ;;  %v13803_v46 = vmax.f32 %v430_v42, 0.0  ;;  %v13805_v47 = vmax.f32 %v503_v43, 0.0 }
  0xed   :  { %v575_v40 = vpop.f32.mrb[6].mxu0  ;;  %v648_v41 = vpop.f32.mrb[6].mxu1 }
  0xee   :  { %12286 = vmatmul.mubr.msk.f32.vlgmr.msra.gmra.mrb[10].mxu0 %vm15450_vm2, %v13783_v36  ;;  %12297 = vmatmul.mubr.msk.f32.vlgmr.msra.gmra.mrb[10].mxu1 %vm15450_vm2, %v13785_v37  ;;  %v12247_v44 = vpop.f32.mrb[7].mxu0  ;;  %v12254_v45 = vpop.f32.mrb[7].mxu1  ;;  %v576_v48 = vadd.f32 %v11571_v19, %v575_v40  ;;  %v649_v49 = vadd.f32 %v11571_v19, %v648_v41 }
  0xef   :  { %13225 = vmatpush3.bf16.msra.mxu0 %v13734_v15  ;;  %13231 = vmatpush3.bf16.msra.mxu1 %v13734_v15 }
  0xf0   :  { %13226 = vmatprep.subr.bf16.mxu0 %v15452_v0  ;;  %13232 = vmatprep.subr.bf16.mxu1 %v15452_v0  ;;  %v13829_v52 = vmax.f32 %v576_v48, 0.0  ;;  %v13831_v53 = vmax.f32 %v649_v49, 0.0 }
  0xf1   :  { %12307 = vmatprep.mubr.msk.f32.mxu0 %vm13579_vm0, %v15454_v4  ;;  %12318 = vmatprep.mubr.msk.f32.mxu1 %vm13579_vm0, %v15454_v4 }
  0xf3   :  { %13228 = vmatpush3.bf16.msra.mxu0 %v13758_v18  ;;  %13234 = vmatpush3.bf16.msra.mxu1 %v13758_v18 }
  0xf4   :  { %13235 = vmatprep.subr.bf16.mxu0 %v15452_v0  ;;  %13241 = vmatprep.subr.bf16.mxu1 %v15452_v0 }
  0xf6   :  { %12308 = vmatmul.mubr.msk.f32.vlgmr.msra.gmra.mrb[12].mxu0 %vm15450_vm2, %v13803_v46  ;;  %12319 = vmatmul.mubr.msk.f32.vlgmr.msra.gmra.mrb[12].mxu1 %vm15450_vm2, %v13805_v47 }
  0xf7   :  { %13237 = vmatpush3.bf16.msra.mxu0 %v13734_v15  ;;  %13243 = vmatpush3.bf16.msra.mxu1 %v13734_v15 }
  0xf8   :  { %13238 = vmatprep.subr.bf16.mxu0 %v15452_v0  ;;  %13244 = vmatprep.subr.bf16.mxu1 %v15452_v0 }
  0xf9   :  { %12329 = vmatprep.mubr.msk.f32.mxu0 %vm13579_vm0, %v15454_v4  ;;  %12340 = vmatprep.mubr.msk.f32.mxu1 %vm13579_vm0, %v15454_v4 }
  0xfb   :  { %13240 = vmatpush3.bf16.msra.mxu0 %v13758_v18  ;;  %13246 = vmatpush3.bf16.msra.mxu1 %v13758_v18 }
  0xfc   :  { %13247 = vmatprep.subr.bf16.mxu0 %v15452_v0  ;;  %13253 = vmatprep.subr.bf16.mxu1 %v15452_v0 }
  0xfe   :  { %12330 = vmatmul.mubr.msk.f32.vlgmr.msra.gmra.mrb[14].mxu0 %vm15450_vm2, %v13829_v52  ;;  %12341 = vmatmul.mubr.msk.f32.vlgmr.msra.gmra.mrb[14].mxu1 %vm15450_vm2, %v13831_v53 }
  0xff   :  { %13249 = vmatpush3.bf16.msra.mxu0 %v13248_v54  ;;  %13255 = vmatpush3.bf16.msra.mxu1 %v13248_v54 }
 0x100   :  { %13250 = vmatprep.subr.bf16.mxu0 %v15452_v0  ;;  %13256 = vmatprep.subr.bf16.mxu1 %v15452_v0 }
 0x101   :  { %12351 = vmatprep.mubr.msk.f32.mxu0 %vm13579_vm0, %v15454_v4  ;;  %12362 = vmatprep.mubr.msk.f32.mxu1 %vm13579_vm0, %v15454_v4 }
 0x103   :  { %13252 = vmatpush3.bf16.msra.mxu0 %v13251_v57  ;;  %13258 = vmatpush3.bf16.msra.mxu1 %v13251_v57 }
 0x104   :  { %13259 = vmatprep.subr.bf16.mxu0 %v15452_v0  ;;  %13265 = vmatprep.subr.bf16.mxu1 %v15452_v0 }
 0x106   :  { %12352 = vmatmul.mubr.msk.f32.vlgmr.msra.gmra.mrb[16].mxu0 %vm15450_vm2, %v13767_v26  ;;  %12363 = vmatmul.mubr.msk.f32.vlgmr.msra.gmra.mrb[16].mxu1 %vm15450_vm2, %v13769_v27 }
 0x107   :  { %13261 = vmatpush3.bf16.msra.mxu0 %v13248_v54  ;;  %13267 = vmatpush3.bf16.msra.mxu1 %v13248_v54 }
 0x108   :  { %13262 = vmatprep.subr.bf16.mxu0 %v15452_v0  ;;  %13268 = vmatprep.subr.bf16.mxu1 %v15452_v0 }
 0x109   :  { %12373 = vmatprep.mubr.msk.f32.mxu0 %vm13579_vm0, %v15454_v4  ;;  %12384 = vmatprep.mubr.msk.f32.mxu1 %vm13579_vm0, %v15454_v4 }
 0x10b   :  { %13264 = vmatpush3.bf16.msra.mxu0 %v13251_v57  ;;  %13270 = vmatpush3.bf16.msra.mxu1 %v13251_v57 }
 0x10c   :  { %13271 = vmatprep.subr.bf16.mxu0 %v15452_v0  ;;  %13277 = vmatprep.subr.bf16.mxu1 %v15452_v0 }
 0x10e   :  { %12374 = vmatmul.mubr.msk.f32.vlgmr.msra.gmra.mrb[18].mxu0 %vm15450_vm2, %v13783_v36  ;;  %12385 = vmatmul.mubr.msk.f32.vlgmr.msra.gmra.mrb[18].mxu1 %vm15450_vm2, %v13785_v37 }
 0x10f   :  { %13273 = vmatpush3.bf16.msra.mxu0 %v13248_v54  ;;  %13279 = vmatpush3.bf16.msra.mxu1 %v13248_v54 }
 0x110   :  { %13274 = vmatprep.subr.bf16.mxu0 %v15452_v0  ;;  %13280 = vmatprep.subr.bf16.mxu1 %v15452_v0 }
 0x111   :  { %12395 = vmatprep.mubr.msk.f32.mxu0 %vm13579_vm0, %v15454_v4  ;;  %12406 = vmatprep.mubr.msk.f32.mxu1 %vm13579_vm0, %v15454_v4 }
 0x113   :  { %13276 = vmatpush3.bf16.msra.mxu0 %v13251_v57  ;;  %13282 = vmatpush3.bf16.msra.mxu1 %v13251_v57 }
 0x114   :  { %13283 = vmatprep.subr.bf16.mxu0 %v15452_v0  ;;  %13289 = vmatprep.subr.bf16.mxu1 %v15452_v0 }
 0x116   :  { %12396 = vmatmul.mubr.msk.f32.vlgmr.msra.gmra.mrb[20].mxu0 %vm15450_vm2, %v13803_v46  ;;  %12407 = vmatmul.mubr.msk.f32.vlgmr.msra.gmra.mrb[20].mxu1 %vm15450_vm2, %v13805_v47 }
 0x117   :  { %13285 = vmatpush3.bf16.msra.mxu0 %v13248_v54  ;;  %13291 = vmatpush3.bf16.msra.mxu1 %v13248_v54 }
 0x118   :  { %13286 = vmatprep.subr.bf16.mxu0 %v15452_v0  ;;  %13292 = vmatprep.subr.bf16.mxu1 %v15452_v0 }
 0x119   :  { %12417 = vmatprep.mubr.msk.f32.mxu0 %vm13579_vm0, %v15454_v4  ;;  %12428 = vmatprep.mubr.msk.f32.mxu1 %vm13579_vm0, %v15454_v4 }
 0x11b   :  { %13288 = vmatpush3.bf16.msra.mxu0 %v13251_v57  ;;  %13294 = vmatpush3.bf16.msra.mxu1 %v13251_v57 }
 0x11c   :  { %13295 = vmatprep.subr.bf16.mxu0 %v15452_v0  ;;  %13301 = vmatprep.subr.bf16.mxu1 %v15452_v0 }
 0x11e   :  { %12418 = vmatmul.mubr.msk.f32.vlgmr.msra.gmra.mrb[22].mxu0 %vm15450_vm2, %v13829_v52  ;;  %12429 = vmatmul.mubr.msk.f32.vlgmr.msra.gmra.mrb[22].mxu1 %vm15450_vm2, %v13831_v53 }
 0x11f   :  { %13297 = vmatpush3.bf16.msra.mxu0 %v13296_v60  ;;  %13303 = vmatpush3.bf16.msra.mxu1 %v13296_v60 }
 0x120   :  { %13298 = vmatprep.subr.bf16.mxu0 %v15452_v0  ;;  %13304 = vmatprep.subr.bf16.mxu1 %v15452_v0 }
 0x121   :  { %12439 = vmatprep.mubr.msk.f32.mxu0 %vm13579_vm0, %v15454_v4  ;;  %12450 = vmatprep.mubr.msk.f32.mxu1 %vm13579_vm0, %v15454_v4 }
 0x123   :  { %13300 = vmatpush3.bf16.msra.mxu0 %v13299_v63  ;;  %13306 = vmatpush3.bf16.msra.mxu1 %v13299_v63 }
 0x124   :  { %13307 = vmatprep.subr.bf16.mxu0 %v15452_v0  ;;  %13313 = vmatprep.subr.bf16.mxu1 %v15452_v0 }
 0x126   :  { %12440 = vmatmul.mubr.msk.f32.vlgmr.msra.gmra.mrb[24].mxu0 %vm15450_vm2, %v13767_v26  ;;  %12451 = vmatmul.mubr.msk.f32.vlgmr.msra.gmra.mrb[24].mxu1 %vm15450_vm2, %v13769_v27 }
 0x127   :  { %13309 = vmatpush3.bf16.msra.mxu0 %v13296_v60  ;;  %13315 = vmatpush3.bf16.msra.mxu1 %v13296_v60 }
 0x128   :  { %13310 = vmatprep.subr.bf16.mxu0 %v15452_v0  ;;  %13316 = vmatprep.subr.bf16.mxu1 %v15452_v0 }
 0x129   :  { %12461 = vmatprep.mubr.msk.f32.mxu0 %vm13579_vm0, %v15454_v4  ;;  %12472 = vmatprep.mubr.msk.f32.mxu1 %vm13579_vm0, %v15454_v4 }
 0x12b   :  { %13312 = vmatpush3.bf16.msra.mxu0 %v13299_v63  ;;  %13318 = vmatpush3.bf16.msra.mxu1 %v13299_v63 }
 0x12c   :  { %13319 = vmatprep.subr.bf16.mxu0 %v15452_v0  ;;  %13325 = vmatprep.subr.bf16.mxu1 %v15452_v0 }
 0x12e   :  { %12462 = vmatmul.mubr.msk.f32.vlgmr.msra.gmra.mrb[26].mxu0 %vm15450_vm2, %v13783_v36  ;;  %12473 = vmatmul.mubr.msk.f32.vlgmr.msra.gmra.mrb[26].mxu1 %vm15450_vm2, %v13785_v37 }
 0x12f   :  { %13321 = vmatpush3.bf16.msra.mxu0 %v13296_v60  ;;  %13327 = vmatpush3.bf16.msra.mxu1 %v13296_v60 }
 0x130   :  { %13322 = vmatprep.subr.bf16.mxu0 %v15452_v0  ;;  %13328 = vmatprep.subr.bf16.mxu1 %v15452_v0 }
 0x131   :  { %12483 = vmatprep.mubr.msk.f32.mxu0 %vm13579_vm0, %v15454_v4  ;;  %12494 = vmatprep.mubr.msk.f32.mxu1 %vm13579_vm0, %v15454_v4 }
 0x133   :  { %13324 = vmatpush3.bf16.msra.mxu0 %v13299_v63  ;;  %13330 = vmatpush3.bf16.msra.mxu1 %v13299_v63 }
 0x134   :  { %13331 = vmatprep.subr.bf16.mxu0 %v15452_v0  ;;  %13337 = vmatprep.subr.bf16.mxu1 %v15452_v0 }
 0x136   :  { %12484 = vmatmul.mubr.msk.f32.vlgmr.msra.gmra.mrb[28].mxu0 %vm15450_vm2, %v13803_v46  ;;  %12495 = vmatmul.mubr.msk.f32.vlgmr.msra.gmra.mrb[28].mxu1 %vm15450_vm2, %v13805_v47 }
 0x137   :  { %13333 = vmatpush3.bf16.msra.mxu0 %v13296_v60  ;;  %13339 = vmatpush3.bf16.msra.mxu1 %v13296_v60 }
 0x138   :  { %13334 = vmatprep.subr.bf16.mxu0 %v15452_v0  ;;  %13340 = vmatprep.subr.bf16.mxu1 %v15452_v0 }
 0x139   :  { %12505 = vmatprep.mubr.msk.f32.mxu0 %vm13579_vm0, %v15454_v4  ;;  %12516 = vmatprep.mubr.msk.f32.mxu1 %vm13579_vm0, %v15454_v4 }
 0x13b   :  { %13336 = vmatpush3.bf16.msra.mxu0 %v13299_v63  ;;  %13342 = vmatpush3.bf16.msra.mxu1 %v13299_v63 }
 0x13c   :  { %12519 = vmatprep.subr.mxu0 %v15454_v4  ;;  %12524 = vmatprep.subr.mxu1 %v15454_v4 }
 0x13e   :  { %12506 = vmatmul.mubr.msk.f32.vlgmr.msra.gmra.mrb[30].mxu0 %vm15450_vm2, %v13829_v52  ;;  %12517 = vmatmul.mubr.msk.f32.vlgmr.msra.gmra.mrb[30].mxu1 %vm15450_vm2, %v13831_v53 }
 0x13f   :  { %12521 = vmatprep.mubr.msk.f32.mxu0 %vm13579_vm0, %v15454_v4  ;;  %12526 = vmatprep.mubr.msk.f32.mxu1 %vm13579_vm0, %v15454_v4 }
 0x1b9   :  { %v13959_v1 = vpop.f32.mrb[8].mxu0  ;;  %v13961_v2 = vpop.f32.mrb[8].mxu1 }
 0x1ba   :  { %v12265_v3 = vpop.f32.mrb[9].mxu0  ;;  %v12276_v5 = vpop.f32.mrb[9].mxu1 }
 0x1c1   :  { %v13963_v6 = vpop.f32.mrb[10].mxu0  ;;  %v13965_v7 = vpop.f32.mrb[10].mxu1 }
 0x1c2   :  { %v12287_v8 = vpop.f32.mrb[11].mxu0  ;;  %v12298_v9 = vpop.f32.mrb[11].mxu1 }
 0x1c9   :  { %v13967_v10 = vpop.f32.mrb[12].mxu0  ;;  %v13969_v11 = vpop.f32.mrb[12].mxu1 }
 0x1ca   :  { %v12309_v12 = vpop.f32.mrb[13].mxu0  ;;  %v12320_v13 = vpop.f32.mrb[13].mxu1 }
 0x1d1   :  { %v13971_v14 = vpop.f32.mrb[14].mxu0  ;;  %v13973_v15 = vpop.f32.mrb[14].mxu1 }
 0x1d2   :  { %v12331_v16 = vpop.f32.mrb[15].mxu0  ;;  %v12342_v17 = vpop.f32.mrb[15].mxu1 }
 0x1d9   :  { %v13975_v18 = vpop.f32.mrb[16].mxu0  ;;  %v13977_v19 = vpop.f32.mrb[16].mxu1 }
 0x1da   :  { %v12353_v20 = vpop.f32.mrb[17].mxu0  ;;  %v12364_v21 = vpop.f32.mrb[17].mxu1  ;;  %12520 = vmatpush3.xpose.msk.msra.mxu0 %vm2397_vm3, %v13975_v18  ;;  %12525 = vmatpush3.xpose.msk.msra.mxu1 %vm2397_vm3, %v13977_v19 }
 0x1db   :  { %12529 = vmatprep.subr.mxu0 %v15454_v4  ;;  %12534 = vmatprep.subr.mxu1 %v15454_v4  ;;  %v14113_v21 = vld [vmem:[%s15438_s1 + $0x14] sm:$0x7] }
 0x1dc   :  { %vm2390_vm10 = vcmp.eq.f32.partialorder %v14113_v21, 0.0 }
 0x1dd   :  { %12522 = vmatmul.mubr.msk.f32.vlgmr.msra.gmra.mrb[32].mxu0 %vm2397_vm3, %v13959_v1  ;;  %12527 = vmatmul.mubr.msk.f32.vlgmr.msra.gmra.mrb[32].mxu1 %vm2397_vm3, %v13961_v2 }
 0x1de   :  { %12531 = vmatprep.mubr.msk.f32.mxu0 %vm13579_vm0, %v15454_v4  ;;  %12536 = vmatprep.mubr.msk.f32.mxu1 %vm13579_vm0, %v15454_v4 }
 0x1e1   :  { %v13993_v22 = vpop.f32.mrb[18].mxu0  ;;  %v13995_v23 = vpop.f32.mrb[18].mxu1 }
 0x1e2   :  { %v12375_v24 = vpop.f32.mrb[19].mxu0  ;;  %v12386_v25 = vpop.f32.mrb[19].mxu1  ;;  %12530 = vmatpush3.xpose.msk.msra.mxu0 %vm2397_vm3, %v13993_v22  ;;  %12535 = vmatpush3.xpose.msk.msra.mxu1 %vm2397_vm3, %v13995_v23 }
 0x1e3   :  { %12539 = vmatprep.subr.mxu0 %v15454_v4  ;;  %12544 = vmatprep.subr.mxu1 %v15454_v4  ;;  %v14118_v24 = vld [vmem:[%s15438_s1 + $0x10] sm:$0x7] }
 0x1e4   :  { %vm15459_vm11 = vcmp.eq.f32.partialorder %v14118_v24, 0.0 }
 0x1e5   :  { %12532 = vmatmul.mubr.msk.f32.vlgmr.msra.gmra.mrb[34].mxu0 %vm2397_vm3, %v13963_v6  ;;  %12537 = vmatmul.mubr.msk.f32.vlgmr.msra.gmra.mrb[34].mxu1 %vm2397_vm3, %v13965_v7 }
 0x1e6   :  { %12541 = vmatprep.mubr.msk.f32.mxu0 %vm13579_vm0, %v15454_v4  ;;  %12546 = vmatprep.mubr.msk.f32.mxu1 %vm13579_vm0, %v15454_v4 }
 0x1e9   :  { %v14011_v26 = vpop.f32.mrb[20].mxu0  ;;  %v14013_v27 = vpop.f32.mrb[20].mxu1 }
 0x1ea   :  { %v12397_v28 = vpop.f32.mrb[21].mxu0  ;;  %v12408_v29 = vpop.f32.mrb[21].mxu1  ;;  %12540 = vmatpush3.xpose.msk.msra.mxu0 %vm2397_vm3, %v14011_v26  ;;  %12545 = vmatpush3.xpose.msk.msra.mxu1 %vm2397_vm3, %v14013_v27 }
 0x1eb   :  { %12549 = vmatprep.subr.mxu0 %v15454_v4  ;;  %12554 = vmatprep.subr.mxu1 %v15454_v4 }
 0x1ed   :  { %12542 = vmatmul.mubr.msk.f32.vlgmr.msra.gmra.mrb[36].mxu0 %vm2397_vm3, %v13967_v10  ;;  %12547 = vmatmul.mubr.msk.f32.vlgmr.msra.gmra.mrb[36].mxu1 %vm2397_vm3, %v13969_v11 }
 0x1ee   :  { %12551 = vmatprep.mubr.msk.f32.mxu0 %vm13579_vm0, %v15454_v4  ;;  %12556 = vmatprep.mubr.msk.f32.mxu1 %vm13579_vm0, %v15454_v4 }
 0x1f1   :  { %v14029_v30 = vpop.f32.mrb[22].mxu0  ;;  %v14031_v31 = vpop.f32.mrb[22].mxu1 }
 0x1f2   :  { %v12419_v32 = vpop.f32.mrb[23].mxu0  ;;  %v12430_v33 = vpop.f32.mrb[23].mxu1  ;;  %12550 = vmatpush3.xpose.msk.msra.mxu0 %vm2397_vm3, %v14029_v30  ;;  %12555 = vmatpush3.xpose.msk.msra.mxu1 %vm2397_vm3, %v14031_v31 }
 0x1f3   :  { %12559 = vmatprep.subr.mxu0 %v15454_v4  ;;  %12564 = vmatprep.subr.mxu1 %v15454_v4 }
 0x1f5   :  { %12552 = vmatmul.mubr.msk.f32.vlgmr.msra.gmra.mrb[38].mxu0 %vm2397_vm3, %v13971_v14  ;;  %12557 = vmatmul.mubr.msk.f32.vlgmr.msra.gmra.mrb[38].mxu1 %vm2397_vm3, %v13973_v15 }
 0x1f6   :  { %12561 = vmatprep.mubr.msk.f32.mxu0 %vm13579_vm0, %v15454_v4  ;;  %12566 = vmatprep.mubr.msk.f32.mxu1 %vm13579_vm0, %v15454_v4 }
 0x1f9   :  { %v14047_v34 = vpop.f32.mrb[24].mxu0  ;;  %v14049_v35 = vpop.f32.mrb[24].mxu1 }
 0x1fa   :  { %v12441_v36 = vpop.f32.mrb[25].mxu0  ;;  %v12452_v37 = vpop.f32.mrb[25].mxu1  ;;  %12560 = vmatpush3.msk.msra.mxu0 %vm3139_vm4, %v14047_v34  ;;  %12565 = vmatpush3.msk.msra.mxu1 %vm3139_vm4, %v14049_v35 }
 0x1fb   :  { %12569 = vmatprep.subr.mxu0 %v15454_v4  ;;  %12574 = vmatprep.subr.mxu1 %v15454_v4 }
 0x201   :  { %v14057_v38 = vpop.f32.mrb[26].mxu0  ;;  %v14059_v39 = vpop.f32.mrb[26].mxu1 }
 0x202   :  { %v12463_v40 = vpop.f32.mrb[27].mxu0  ;;  %v12474_v41 = vpop.f32.mrb[27].mxu1 }
 0x209   :  { %v14061_v42 = vpop.f32.mrb[28].mxu0  ;;  %v14063_v43 = vpop.f32.mrb[28].mxu1 }
 0x20a   :  { %15463 = vst [vmem:[#allocation2_spill] sm:$0xff] %v14061_v42  ;;  %15464 = vst [vmem:[#allocation3_spill] sm:$0xff] %v14063_v43  ;;  %v12485_v44 = vpop.f32.mrb[29].mxu0  ;;  %v12496_v45 = vpop.f32.mrb[29].mxu1 }
 0x211   :  { %v14065_v46 = vpop.f32.mrb[30].mxu0  ;;  %v14067_v47 = vpop.f32.mrb[30].mxu1  ;;  %v15478_v50 = vld [vmem:[#allocation3_spill] sm:$0xff] }
 0x212   :  { %v12507_v48 = vpop.f32.mrb[31].mxu0  ;;  %v12518_v49 = vpop.f32.mrb[31].mxu1 }
 0x213   :  { %v14132_v48 = vld [vmem:[%s15438_s1 + $0x18] sm:$0x7] }
 0x214   :  { %vm15458_vm12 = vcmp.eq.f32.partialorder %v14132_v48, 0.0 }
 0x2b0   :  { %v2470_v52 = vpop.f32.mrb[32].mxu0  ;;  %v2546_v53 = vpop.f32.mrb[32].mxu1 }
 0x2b1   :  { %v3006_v54 = vmul.f32 0.35355338, %v2470_v52  ;;  %v3007_v55 = vmul.f32 0.35355338, %v2546_v53  ;;  %v12523_v56 = vpop.f32.mrb[33].mxu0  ;;  %v12528_v57 = vpop.f32.mrb[33].mxu1 }
 0x2b3   :  { %v14083_v58 = vsel %vm2385_vm5, %v3006_v54, -1e+30  ;;  %v14089_v60 = vsel %vm2386_vm7, %v3007_v55, -1e+30 }
 0x2b4   :  { %v3023_v59 = vsel %vm3022_vm6, %v14083_v58, -inf  ;;  %v3026_v5 = vsel %vm3022_vm6, %v14089_v60, -inf }
 0x2b5   :  { %3024 = vmax.xlane.f32.xlu0 %v3023_v59  ;;  %v14151_v59 = vld [vmem:[%s15438_s1 + $0x1c] sm:$0x7]  ;;  %s13582_s1 = smov 112  }
 0x2b6   :  { %vm15451_vm13 = vcmp.eq.f32.partialorder %v14151_v59, 0.0 }
 0x2b8   :  { %v2622_v63 = vpop.f32.mrb[34].mxu0  ;;  %v2698_v3 = vpop.f32.mrb[34].mxu1 }
 0x2b9   :  { %v3008_v8 = vmul.f32 0.35355338, %v2622_v63  ;;  %v3009_v9 = vmul.f32 0.35355338, %v2698_v3  ;;  %v12538_v12 = vpop.f32.mrb[35].mxu1  ;;  %3027 = vmax.xlane.f32.xlu0 %v3026_v5  ;;  %v12533_v13 = vpop.f32.mrb[35].mxu0 }
 0x2bb   :  { %v3016_v16 = vsel %vm2387_vm8, %v3008_v8, -1e+30  ;;  %v3017_v20 = vsel %vm2388_vm9, %v3009_v9, -1e+30 }
 0x2bc   :  { %v3029_v17 = vsel %vm3022_vm6, %v3016_v16, -inf  ;;  %v3032_v29 = vsel %vm3022_vm6, %v3017_v20, -inf }
 0x2bd   :  { %3030 = vmax.xlane.f32.xlu1 %v3029_v17 }
 0x2c0   :  { %v2774_v25 = vpop.f32.mrb[36].mxu0  ;;  %v2850_v28 = vpop.f32.mrb[36].mxu1 }
 0x2c1   :  { %v3010_v32 = vmul.f32 0.35355338, %v2774_v25  ;;  %v3011_v33 = vmul.f32 0.35355338, %v2850_v28  ;;  %v12548_v36 = vpop.f32.mrb[37].mxu1  ;;  %3033 = vmax.xlane.f32.xlu1 %v3032_v29  ;;  %v12543_v37 = vpop.f32.mrb[37].mxu0 }
 0x2c3   :  { %v3019_v40 = vsel %vm2390_vm10, %v3011_v33, -1e+30  ;;  %v3018_v41 = vsel %vm15459_vm11, %v3010_v32, -1e+30 }
 0x2c4   :  { %v3038_v44 = vsel %vm3022_vm6, %v3019_v40, -inf  ;;  %v3035_v45 = vsel %vm3022_vm6, %v3018_v41, -inf }
 0x2c5   :  { %3039 = vmax.xlane.f32.xlu1 %v3038_v44  ;;  %3036 = vmax.xlane.f32.xlu0 %v3035_v45 }
 0x2c8   :  { %v2926_v49 = vpop.f32.mrb[38].mxu0  ;;  %v3002_v52 = vpop.f32.mrb[38].mxu1 }
 0x2c9   :  { %v3012_v53 = vmul.f32 0.35355338, %v2926_v49  ;;  %v12553_v54 = vpop.f32.mrb[39].mxu0  ;;  %v12558_v55 = vpop.f32.mrb[39].mxu1  ;;  %v3013_v63 = vmul.f32 0.35355338, %v3002_v52 }
 0x2cb   :  { %v3020_v56 = vsel %vm15458_vm12, %v3012_v53, -1e+30  ;;  %v14156_v3 = vsel %vm15451_vm13, %v3013_v63, -1e+30 }
 0x2cc   :  { %v3041_v57 = vsel %vm3022_vm6, %v3020_v56, -inf  ;;  %v3044_v5 = vsel %vm3022_vm6, %v14156_v3, -inf }
 0x2cd   :  { %3042 = vmax.xlane.f32.xlu0 %v3041_v57 }
 0x2d6   :  { %3825 = vrot.lane.b32.xlu1 %v13977_v19, %s13581_s28 }
 0x2da   :  { %3745 = vrot.lane.b32.xlu1 %v13959_v1, %s13581_s28 }
 0x2de   :  { %3823 = vrot.lane.b32.xlu1 %v13961_v2, %s13581_s28 }
 0x2e3   :  { %3747 = vrot.lane.b32.xlu0 %v13975_v18, %s13581_s28 }
 0x2e7   :  { %3903 = vrot.lane.b32.xlu0 %v13993_v22, %s13581_s28 }
 0x302   :  { %3045 = vmax.xlane.f32.xlu1 %v3044_v5 }
 0x313   :  { %3981 = vrot.lane.b32.xlu1 %v13995_v23, %s13581_s28 }
 0x342   :  { %v3025_v8 = vpop.xlane.xlu0 %3024 }
 0x343   :  { %v3047_v9 = vsub.f32 %v14083_v58, %v3025_v8 }
 0x345   :  { %v3055_v12 = vmul.f32 1.442695, %v3047_v9 }
 0x346   :  { %v3028_v13 = vpop.xlane.xlu0 %3027 }
 0x347   :  { %13450 = vpow2.f32 %v3055_v12  ;;  %v3048_v17 = vsub.f32 %v14089_v60, %v3028_v13 }
 0x349   :  { %v3057_v25 = vmul.f32 1.442695, %v3048_v17 }
 0x34a   :  { %v3031_v28 = vpop.xlane.xlu1 %3030 }
 0x34b   :  { %13452 = vpow2.f32 %v3057_v25  ;;  %v3049_v29 = vsub.f32 %v3016_v16, %v3031_v28 }
 0x34d   :  { %v3059_v32 = vmul.f32 1.442695, %v3049_v29 }
 0x34e   :  { %v3034_v33 = vpop.xlane.xlu1 %3033 }
 0x34f   :  { %13454 = vpow2.f32 %v3059_v32  ;;  %v3050_v36 = vsub.f32 %v3017_v20, %v3034_v33 }
 0x351   :  { %v13451_v37 = vpop.eup %13450  ;;  %v3061_v44 = vmul.f32 1.442695, %v3050_v36 }
 0x352   :  { %v3040_v45 = vpop.xlane.xlu1 %3039  ;;  %v3037_v49 = vpop.xlane.xlu0 %3036  ;;  %v14166_v58 = vsel %vm2385_vm5, %v13451_v37, 0.0 }
 0x353   :  { %13456 = vpow2.f32 %v3061_v44  ;;  %v3052_v52 = vsub.f32 %v3019_v40, %v3040_v45  ;;  %v3051_v53 = vsub.f32 %v3018_v41, %v3037_v49  ;;  %v3079_v60 = vsel %vm3022_vm6, %v14166_v58, 0.0 }
 0x354   :  { %3080 = vadd.xlane.f32.xlu0 %v3079_v60 }
 0x355   :  { %v13453_v16 = vpop.eup %13452  ;;  %v3065_v54 = vmul.f32 1.442695, %v3052_v52  ;;  %v3063_v55 = vmul.f32 1.442695, %v3051_v53 }
 0x356   :  { %v14172_v20 = vsel %vm2386_vm7, %v13453_v16, 0.0  ;;  %v14208_v45 = vpop.permute.xlu1 %3825 }
 0x357   :  { %13458 = vpow2.f32 %v3065_v54  ;;  %v3082_v57 = vsel %vm3022_vm6, %v14172_v20, 0.0 }
 0x358   :  { %13460 = vpow2.f32 %v3063_v55  ;;  %3083 = vadd.xlane.f32.xlu1 %v3082_v57 }
 0x359   :  { %v13455_v63 = vpop.eup %13454 }
 0x35a   :  { %v3043_v40 = vpop.xlane.xlu0 %3042  ;;  %v14178_v41 = vsel %vm2387_vm8, %v13455_v63, 0.0  ;;  %v14212_v49 = vpop.permute.xlu1 %3745 }
 0x35b   :  { %v3053_v5 = vsub.f32 %v3020_v56, %v3043_v40  ;;  %v3085_v8 = vsel %vm3022_vm6, %v14178_v41, 0.0 }
 0x35c   :  { %3086 = vadd.xlane.f32.xlu0 %v3085_v8 }
 0x35d   :  { %v13457_v9 = vpop.eup %13456  ;;  %v3067_v12 = vmul.f32 1.442695, %v3053_v5 }
 0x35e   :  { %v14184_v13 = vsel %vm2388_vm9, %v13457_v9, 0.0  ;;  %v14218_v52 = vpop.permute.xlu1 %3823 }
 0x35f   :  { %13462 = vpow2.f32 %v3067_v12  ;;  %v3088_v17 = vsel %vm3022_vm6, %v14184_v13, 0.0 }
 0x360   :  { %3089 = vadd.xlane.f32.xlu1 %v3088_v17 }
 0x361   :  { %v13459_v25 = vpop.eup %13458 }
 0x362   :  { %v13461_v28 = vpop.eup %13460  ;;  %v14190_v56 = vsel %vm2390_vm10, %v13459_v25, 0.0 }
 0x363   :  { %v3094_v29 = vsel %vm3022_vm6, %v14190_v56, 0.0  ;;  %v14196_v32 = vsel %vm15459_vm11, %v13461_v28, 0.0 }
 0x364   :  { %3095 = vadd.xlane.f32.xlu1 %v3094_v29  ;;  %v3091_v33 = vsel %vm3022_vm6, %v14196_v32, 0.0 }
 0x365   :  { %3092 = vadd.xlane.f32.xlu0 %v3091_v33 }
 0x369   :  { %v13463_v36 = vpop.eup %13462 }
 0x36a   :  { %v14202_v37 = vsel %vm15458_vm12, %v13463_v36, 0.0 }
 0x36b   :  { %v3097_v44 = vsel %vm3022_vm6, %v14202_v37, 0.0 }
 0x36c   :  { %3098 = vadd.xlane.f32.xlu0 %v3097_v44 }
 0x375   :  { %3979 = vrot.lane.b32.xlu1 %v13965_v7, %s13581_s28 }
 0x382   :  { %3901 = vrot.lane.b32.xlu0 %v13963_v6, %s13581_s28 }
 0x386   :  { %4059 = vrot.lane.b32.xlu0 %v14011_v26, %s13581_s28 }
 0x38a   :  { %4057 = vrot.lane.b32.xlu0 %v13967_v10, %s13581_s28 }
 0x38e   :  { %4215 = vrot.lane.b32.xlu0 %v14029_v30, %s13581_s28 }
 0x38f   :  { %v3046_v53 = vpop.xlane.xlu1 %3045 }
 0x390   :  { %v3054_v60 = vsub.f32 %v14156_v3, %v3046_v53  ;;  %v14239_v3 = vpop.permute.xlu0 %3747 }
 0x392   :  { %v3069_v16 = vmul.f32 1.442695, %v3054_v60  ;;  %4213 = vrot.lane.b32.xlu0 %v13971_v14, %s13581_s28 }
 0x393   :  { %v14243_v40 = vpop.permute.xlu1 %3981 }
 0x394   :  { %13464 = vpow2.f32 %v3069_v16  ;;  %v14241_v63 = vpop.permute.xlu0 %3903 }
 0x39e   :  { %v13465_v54 = vpop.eup %13464 }
 0x39f   :  { %v14227_v55 = vsel %vm15451_vm13, %v13465_v54, 0.0  ;;  %vm3135_vm13 = vcmask 48128  }
 0x3a0   :  { %v3100_v57 = vsel %vm3022_vm6, %v14227_v55, 0.0 }
 0x3a1   :  { %3101 = vadd.xlane.f32.xlu1 %v3100_v57 }
 0x3b2   :  { %4137 = vrot.lane.b32.xlu1 %v14013_v27, %s13581_s28 }
 0x3b6   :  { %4135 = vrot.lane.b32.xlu1 %v13969_v11, %s13581_s28 }
 0x3ba   :  { %4293 = vrot.lane.b32.xlu1 %v14031_v31, %s13581_s28 }
 0x3be   :  { %4291 = vrot.lane.b32.xlu1 %v13973_v15, %s13581_s28 }
 0x3e1   :  { %v3081_v5 = vpop.xlane.xlu0 %3080 }
 0x3e2   :  { %vm3103_vm14 = vcmp.eq.f32.partialorder %v3081_v5, 0.0 }
 0x3e3   :  { %v3111_v8 = vsel %vm3103_vm14, 1.0, %v3081_v5 }
 0x3e4   :  { %13466 = vrcp.f32 %v3111_v8 }
 0x3e5   :  { %v3084_v9 = vpop.xlane.xlu1 %3083 }
 0x3e6   :  { %vm3104_vm15 = vcmp.eq.f32.partialorder %v3084_v9, 0.0 }
 0x3e7   :  { %v3112_v12 = vsel %vm3104_vm15, 1.0, %v3084_v9 }
 0x3e8   :  { %13468 = vrcp.f32 %v3112_v12 }
 0x3e9   :  { %v3087_v17 = vpop.xlane.xlu0 %3086 }
 0x3ea   :  { %vm3105_vm1 = vcmp.eq.f32.partialorder %v3087_v17, 0.0 }
 0x3eb   :  { %v3113_v25 = vsel %vm3105_vm1, 1.0, %v3087_v17 }
 0x3ec   :  { %13470 = vrcp.f32 %v3113_v25 }
 0x3ed   :  { %v3090_v28 = vpop.xlane.xlu1 %3089 }
 0x3ee   :  { %v13467_v29 = vpop.eup %13466  ;;  %vm3106_vm2 = vcmp.eq.f32.partialorder %v3090_v28, 0.0 }
 0x3ef   :  { %v3114_v33 = vsel %vm3106_vm2, 1.0, %v3090_v28  ;;  %v3120_v36 = vmul.f32 %v13467_v29, %v14166_v58 }
 0x3f0   :  { %13472 = vrcp.f32 %v3114_v33 }
 0x3f1   :  { %v3096_v44 = vpop.xlane.xlu1 %3095  ;;  %12562 = vmatmul.mubr.msk.f32.vlgmr.msra.gmra.mrb[40].mxu0 %vm3135_vm13, %v3120_v36 }
 0x3f2   :  { %v13469_v53 = vpop.eup %13468  ;;  %vm3108_vm14 = vcmp.eq.f32.partialorder %v3096_v44, 0.0  ;;  %12570 = vmatpush3.msk.msra.mxu0 %vm3139_vm4, %v14057_v38  ;;  %v3093_v60 = vpop.xlane.xlu0 %3092  ;;  %12571 = vmatprep.mubr.msk.f32.mxu0 %vm13579_vm0, %v15454_v4 }
 0x3f3   :  { %v3116_v16 = vsel %vm3108_vm14, 1.0, %v3096_v44  ;;  %vm3107_vm15 = vcmp.eq.f32.partialorder %v3093_v60, 0.0  ;;  %v3122_v54 = vmul.f32 %v13469_v53, %v14172_v20  ;;  %12579 = vmatprep.subr.mxu0 %v15454_v4  ;;  %vm15465_vm14 = vcmp.eq.f32.partialorder %v14151_v59, 0.0 }
 0x3f4   :  { %13474 = vrcp.f32 %v3116_v16  ;;  %v3115_v58 = vsel %vm3107_vm15, 1.0, %v3093_v60  ;;  %vm15467_vm15 = vmmov %vm15465_vm14 }
 0x3f5   :  { %13476 = vrcp.f32 %v3115_v58  ;;  %12567 = vmatmul.mubr.msk.f32.vlgmr.msra.gmra.mrb[40].mxu1 %vm3135_vm13, %v3122_v54 }
 0x3f6   :  { %v13471_v57 = vpop.eup %13470  ;;  %12575 = vmatpush3.msk.msra.mxu1 %vm3139_vm4, %v14059_v39  ;;  %12576 = vmatprep.mubr.msk.f32.mxu1 %vm13579_vm0, %v15454_v4 }
 0x3f7   :  { %v3124_v5 = vmul.f32 %v13471_v57, %v14178_v41  ;;  %12584 = vmatprep.subr.mxu1 %v15454_v4 }
 0x3f9   :  { %12572 = vmatmul.mubr.msk.f32.vlgmr.msra.gmra.mrb[42].mxu0 %vm3135_vm13, %v3124_v5  ;;  %v3099_v20 = vpop.xlane.xlu0 %3098 }
 0x3fa   :  { %v13473_v8 = vpop.eup %13472  ;;  %12580 = vmatpush3.msk.msra.mxu0 %vm3139_vm4, %v14061_v42  ;;  %vm3109_vm2 = vcmp.eq.f32.partialorder %v3099_v20, 0.0  ;;  %12581 = vmatprep.mubr.msk.f32.mxu0 %vm13579_vm0, %v15454_v4 }
 0x3fb   :  { %v3117_v9 = vsel %vm3109_vm2, 1.0, %v3099_v20  ;;  %v3126_v12 = vmul.f32 %v13473_v8, %v14184_v13  ;;  %12589 = vmatprep.subr.mxu0 %v15454_v4 }
 0x3fc   :  { %13478 = vrcp.f32 %v3117_v9 }
 0x3fd   :  { %12577 = vmatmul.mubr.msk.f32.vlgmr.msra.gmra.mrb[42].mxu1 %vm3135_vm13, %v3126_v12  ;;  %v3902_v28 = vpop.permute.xlu0 %3901 }
 0x3fe   :  { %v13475_v41 = vpop.eup %13474  ;;  %12585 = vmatpush3.msk.msra.mxu1 %vm3139_vm4, %v14063_v43  ;;  %12586 = vmatprep.mubr.msk.f32.mxu1 %vm13579_vm0, %v15454_v4 }
 0x3ff   :  { %v13477_v17 = vpop.eup %13476  ;;  %12594 = vmatprep.subr.mxu1 %v15454_v4  ;;  %v3130_v25 = vmul.f32 %v13475_v41, %v14190_v56 }
 0x400   :  { %v3128_v13 = vmul.f32 %v13477_v17, %v14196_v32 }
 0x401   :  { %12587 = vmatmul.mubr.msk.f32.vlgmr.msra.gmra.mrb[44].mxu1 %vm3135_vm13, %v3130_v25  ;;  %v4060_v32 = vpop.permute.xlu0 %4059 }
 0x402   :  { %12582 = vmatmul.mubr.msk.f32.vlgmr.msra.gmra.mrb[44].mxu0 %vm3135_vm13, %v3128_v13  ;;  %12595 = vmatpush3.msk.msra.mxu1 %vm3139_vm4, %v14067_v47 }
 0x403   :  { %12590 = vmatpush3.msk.msra.mxu0 %vm3139_vm4, %v14065_v46  ;;  %12591 = vmatprep.mubr.msk.f32.mxu0 %vm13579_vm0, %v15454_v4 }
 0x404   :  { %12599 = vmatprep.subr.mxu0 %v15454_v4  ;;  %12596 = vmatprep.mubr.msk.f32.mxu1 %vm13579_vm0, %v15454_v4 }
 0x405   :  { %12604 = vmatprep.subr.mxu1 %v15454_v4  ;;  %v4058_v33 = vpop.permute.xlu0 %4057 }
 0x406   :  { %v13479_v56 = vpop.eup %13478 }
 0x407   :  { %v3132_v29 = vmul.f32 %v13479_v56, %v14202_v37 }
 0x409   :  { %12592 = vmatmul.mubr.msk.f32.vlgmr.msra.gmra.mrb[46].mxu0 %vm3135_vm13, %v3132_v29  ;;  %v4216_v37 = vpop.permute.xlu0 %4215 }
 0x40a   :  { %12600 = vmatpush3.xpose.msk.msra.mxu0 %vm2397_vm3, %v14239_v3  ;;  %12601 = vmatprep.mubr.msk.f32.mxu0 %vm13579_vm0, %v15454_v4  ;;  %v3980_v3 = vpop.permute.xlu1 %3979 }
 0x40b   :  { %12609 = vmatprep.subr.mxu0 %v15454_v4 }
 0x40d   :  { %12602 = vmatmul.mubr.msk.f32.vlgmr.msra.gmra.mrb[48].mxu0 %vm2397_vm3, %v14212_v49  ;;  %v4214_v49 = vpop.permute.xlu0 %4213 }
 0x40e   :  { %12610 = vmatpush3.xpose.msk.msra.mxu0 %vm2397_vm3, %v14241_v63  ;;  %12611 = vmatprep.mubr.msk.f32.mxu0 %vm13579_vm0, %v15454_v4 }
 0x40f   :  { %12619 = vmatprep.subr.mxu0 %v15454_v4 }
 0x411   :  { %12612 = vmatmul.mubr.msk.f32.vlgmr.msra.gmra.mrb[50].mxu0 %vm2397_vm3, %v3902_v28 }
 0x412   :  { %12620 = vmatpush3.xpose.msk.msra.mxu0 %vm2397_vm3, %v4060_v32  ;;  %12621 = vmatprep.mubr.msk.f32.mxu0 %vm13579_vm0, %v15454_v4 }
 0x413   :  { %12629 = vmatprep.subr.mxu0 %v15454_v4 }
 0x415   :  { %12622 = vmatmul.mubr.msk.f32.vlgmr.msra.gmra.mrb[52].mxu0 %vm2397_vm3, %v4058_v33 }
 0x416   :  { %12630 = vmatpush3.xpose.msk.msra.mxu0 %vm2397_vm3, %v4216_v37  ;;  %12631 = vmatprep.mubr.msk.f32.mxu0 %vm13579_vm0, %v15454_v4 }
 0x417   :  { %12639 = vmatprep.subr.mxu0 %v15454_v4 }
 0x419   :  { %12632 = vmatmul.mubr.msk.f32.vlgmr.msra.gmra.mrb[54].mxu0 %vm2397_vm3, %v4214_v49 }
 0x41a   :  { %12641 = vmatprep.mubr.msk.f32.mxu0 %vm13579_vm0, %v15454_v4 }
 0x42e   :  { %v3102_v63 = vpop.xlane.xlu1 %3101 }
 0x42f   :  { %vm3110_vm1 = vcmp.eq.f32.partialorder %v3102_v63, 0.0 }
 0x430   :  { %v3118_v36 = vsel %vm3110_vm1, 1.0, %v3102_v63 }
 0x431   :  { %13480 = vrcp.f32 %v3118_v36 }
 0x432   :  { %v4138_v53 = vpop.permute.xlu1 %4137 }
 0x436   :  { %v4136_v16 = vpop.permute.xlu1 %4135 }
 0x43b   :  { %v13481_v44 = vpop.eup %13480 }
 0x43c   :  { %v3134_v60 = vmul.f32 %v13481_v44, %v14227_v55 }
 0x43e   :  { %12597 = vmatmul.mubr.msk.f32.vlgmr.msra.gmra.mrb[46].mxu1 %vm3135_vm13, %v3134_v60 }
 0x43f   :  { %12605 = vmatpush3.xpose.msk.msra.mxu1 %vm2397_vm3, %v14208_v45  ;;  %12606 = vmatprep.mubr.msk.f32.mxu1 %vm13579_vm0, %v15454_v4  ;;  %v4294_v45 = vpop.permute.xlu1 %4293 }
 0x440   :  { %12614 = vmatprep.subr.mxu1 %v15454_v4 }
 0x442   :  { %12607 = vmatmul.mubr.msk.f32.vlgmr.msra.gmra.mrb[48].mxu1 %vm2397_vm3, %v14218_v52 }
 0x443   :  { %12615 = vmatpush3.xpose.msk.msra.mxu1 %vm2397_vm3, %v14243_v40  ;;  %12616 = vmatprep.mubr.msk.f32.mxu1 %vm13579_vm0, %v15454_v4  ;;  %v4292_v52 = vpop.permute.xlu1 %4291 }
 0x444   :  { %12624 = vmatprep.subr.mxu1 %v15454_v4 }
 0x446   :  { %12617 = vmatmul.mubr.msk.f32.vlgmr.msra.gmra.mrb[50].mxu1 %vm2397_vm3, %v3980_v3 }
 0x447   :  { %12625 = vmatpush3.xpose.msk.msra.mxu1 %vm2397_vm3, %v4138_v53  ;;  %12626 = vmatprep.mubr.msk.f32.mxu1 %vm13579_vm0, %v15454_v4 }
 0x448   :  { %12634 = vmatprep.subr.mxu1 %v15454_v4 }
 0x44a   :  { %12627 = vmatmul.mubr.msk.f32.vlgmr.msra.gmra.mrb[52].mxu1 %vm2397_vm3, %v4136_v16 }
 0x44b   :  { %12635 = vmatpush3.xpose.msk.msra.mxu1 %vm2397_vm3, %v4294_v45  ;;  %12636 = vmatprep.mubr.msk.f32.mxu1 %vm13579_vm0, %v15454_v4 }
 0x44c   :  { %12644 = vmatprep.subr.mxu1 %v15454_v4 }
 0x44e   :  { %12637 = vmatmul.mubr.msk.f32.vlgmr.msra.gmra.mrb[54].mxu1 %vm2397_vm3, %v4292_v52 }
 0x44f   :  { %12646 = vmatprep.mubr.msk.f32.mxu1 %vm13579_vm0, %v15454_v4 }
 0x4c4   :  { %v14341_v55 = vpop.f32.mrb[40].mxu0 }
 0x4c5   :  { %v12563_v40 = vpop.f32.mrb[41].mxu0 }
 0x4c8   :  { %v14343_v54 = vpop.f32.mrb[40].mxu1 }
 0x4c9   :  { %v12568_v58 = vpop.f32.mrb[41].mxu1 }
 0x4cc   :  { %v14345_v57 = vpop.f32.mrb[42].mxu0 }
 0x4cd   :  { %v12573_v5 = vpop.f32.mrb[43].mxu0 }
 0x4d0   :  { %v14347_v20 = vpop.f32.mrb[42].mxu1 }
 0x4d1   :  { %v12578_v8 = vpop.f32.mrb[43].mxu1 }
 0x4d4   :  { %v14349_v9 = vpop.f32.mrb[44].mxu1 }
 0x4d5   :  { %v14351_v12 = vpop.f32.mrb[44].mxu0  ;;  %v12588_v41 = vpop.f32.mrb[45].mxu1 }
 0x4d6   :  { %v12583_v17 = vpop.f32.mrb[45].mxu0 }
 0x4dc   :  { %v14353_v25 = vpop.f32.mrb[46].mxu0 }
 0x4dd   :  { %v12593_v28 = vpop.f32.mrb[47].mxu0 }
 0x4e0   :  { %v3819_v13 = vpop.f32.mrb[48].mxu0 }
 0x4e1   :  { %v4369_v56 = vmul.f32 0.35355338, %v3819_v13  ;;  %v12603_v32 = vpop.f32.mrb[49].mxu0 }
 0x4e3   :  { %v4377_v29 = vsel %vm2385_vm5, %v4369_v56, -1e+30 }
 0x4e4   :  { %v3975_v33 = vpop.f32.mrb[50].mxu0  ;;  %v4385_v37 = vsel %vm3022_vm6, %v4377_v29, -inf }
 0x4e5   :  { %v4371_v49 = vmul.f32 0.35355338, %v3975_v33  ;;  %4386 = vmax.xlane.f32.xlu0 %v4385_v37  ;;  %v12613_v3 = vpop.f32.mrb[51].mxu0 }
 0x4e7   :  { %v4379_v63 = vsel %vm2387_vm8, %v4371_v49, -1e+30 }
 0x4e8   :  { %v4131_v36 = vpop.f32.mrb[52].mxu0  ;;  %v4391_v44 = vsel %vm3022_vm6, %v4379_v63, -inf }
 0x4e9   :  { %4392 = vmax.xlane.f32.xlu0 %v4391_v44  ;;  %v12623_v53 = vpop.f32.mrb[53].mxu0  ;;  %v4373_v41 = vmul.f32 0.35355338, %v4131_v36 }
 0x4eb   :  { %v4381_v49 = vsel %vm15459_vm11, %v4373_v41, -1e+30 }
 0x4ec   :  { %v4287_v60 = vpop.f32.mrb[54].mxu0 }
 0x4ed   :  { %v12633_v16 = vpop.f32.mrb[55].mxu0  ;;  %v4375_v3 = vmul.f32 0.35355338, %v4287_v60 }
 0x511   :  { %v14361_v45 = vpop.f32.mrb[46].mxu1 }
 0x512   :  { %v12598_v52 = vpop.f32.mrb[47].mxu1 }
 0x515   :  { %v3897_v40 = vpop.f32.mrb[48].mxu1 }
 0x516   :  { %v4370_v58 = vmul.f32 0.35355338, %v3897_v40  ;;  %v12608_v5 = vpop.f32.mrb[49].mxu1  ;;  %v4397_v40 = vsel %vm3022_vm6, %v4381_v49, -inf }
 0x518   :  { %v4378_v8 = vsel %vm2386_vm7, %v4370_v58, -1e+30 }
 0x519   :  { %v4053_v17 = vpop.f32.mrb[50].mxu1  ;;  %v4388_v28 = vsel %vm3022_vm6, %v4378_v8, -inf }
 0x51a   :  { %v4372_v13 = vmul.f32 0.35355338, %v4053_v17  ;;  %4389 = vmax.xlane.f32.xlu1 %v4388_v28  ;;  %v12618_v56 = vpop.f32.mrb[51].mxu1  ;;  %v4383_v17 = vsel %vm15458_vm12, %v4375_v3, -1e+30 }
 0x51b   :  { %v4403_v28 = vsel %vm3022_vm6, %v4383_v17, -inf }
 0x51c   :  { %v4380_v32 = vsel %vm2388_vm9, %v4372_v13, -1e+30 }
 0x51d   :  { %v4209_v33 = vpop.f32.mrb[52].mxu1  ;;  %v4394_v37 = vsel %vm3022_vm6, %v4380_v32, -inf }
 0x51e   :  { %v4374_v44 = vmul.f32 0.35355338, %v4209_v33  ;;  %v12628_v53 = vpop.f32.mrb[53].mxu1  ;;  %4395 = vmax.xlane.f32.xlu0 %v4394_v37 }
 0x520   :  { %v4382_v36 = vsel %vm2390_vm10, %v4374_v44, -1e+30 }
 0x521   :  { %v4365_v16 = vpop.f32.mrb[54].mxu1  ;;  %v4400_v52 = vsel %vm3022_vm6, %v4382_v36, -inf }
 0x522   :  { %v4376_v58 = vmul.f32 0.35355338, %v4365_v16  ;;  %4401 = vmax.xlane.f32.xlu1 %v4400_v52  ;;  %v12638_v5 = vpop.f32.mrb[55].mxu1  ;;  %4398 = vmax.xlane.f32.xlu0 %v4397_v40 }
 0x524   :  { %v4384_v60 = vsel %vm15465_vm14, %v4376_v58, -1e+30 }
 0x525   :  { %v4406_v41 = vsel %vm3022_vm6, %v4384_v60, -inf }
 0x526   :  { %4407 = vmax.xlane.f32.xlu1 %v4406_v41  ;;  %4404 = vmax.xlane.f32.xlu0 %v4403_v28 }
 0x537   :  { %4574 = vrot.lane.b32.xlu1 %v14049_v35, %s13581_s28 }
 0x53b   :  { %4651 = vrot.lane.b32.xlu1 %v14057_v38, %s13581_s28 }
 0x53c   :  { %4497 = vrot.lane.b32.xlu0 %v14047_v34, %s13581_s28 }
 0x53f   :  { %4728 = vrot.lane.b32.xlu1 %v14059_v39, %s13581_s28 }
 0x540   :  { %4805 = vrot.lane.b32.xlu0 %v14061_v42, %s13581_s28 }
 0x543   :  { %4882 = vrot.lane.b32.xlu1 %v14063_v43, %s13581_s28 }
 0x572   :  { %v4387_v13 = vpop.xlane.xlu0 %4386 }
 0x573   :  { %v4409_v56 = vsub.f32 %v4377_v29, %v4387_v13 }
 0x575   :  { %v4417_v33 = vmul.f32 1.442695, %v4409_v56 }
 0x576   :  { %v4393_v37 = vpop.xlane.xlu0 %4392 }
 0x577   :  { %13482 = vpow2.f32 %v4417_v33  ;;  %v4411_v3 = vsub.f32 %v4379_v63, %v4393_v37 }
 0x579   :  { %v4421_v44 = vmul.f32 1.442695, %v4411_v3 }
 0x57b   :  { %13484 = vpow2.f32 %v4421_v44 }
 0x581   :  { %v13483_v53 = vpop.eup %13482 }
 0x582   :  { %v14395_v16 = vsel %vm2385_vm5, %v13483_v53, 0.0 }
 0x583   :  { %v4441_v52 = vsel %vm3022_vm6, %v14395_v16, 0.0 }
 0x584   :  { %4442 = vadd.xlane.f32.xlu0 %v4441_v52 }
 0x585   :  { %v13485_v40 = vpop.eup %13484 }
 0x586   :  { %v14401_v58 = vsel %vm2387_vm8, %v13485_v40, 0.0 }
 0x587   :  { %v4447_v29 = vsel %vm3022_vm6, %v14401_v58, 0.0 }
 0x588   :  { %4448 = vadd.xlane.f32.xlu0 %v4447_v29 }
 0x5a7   :  { %v4390_v63 = vpop.xlane.xlu1 %4389 }
 0x5a8   :  { %v4410_v5 = vsub.f32 %v4378_v8, %v4390_v63 }
 0x5aa   :  { %v4419_v41 = vmul.f32 1.442695, %v4410_v5 }
 0x5ab   :  { %v4396_v28 = vpop.xlane.xlu0 %4395 }
 0x5ac   :  { %13486 = vpow2.f32 %v4419_v41  ;;  %v4412_v13 = vsub.f32 %v4380_v32, %v4396_v28 }
 0x5ae   :  { %v4423_v56 = vmul.f32 1.442695, %v4412_v13 }
 0x5af   :  { %v4402_v33 = vpop.xlane.xlu1 %4401  ;;  %v4399_v37 = vpop.xlane.xlu0 %4398 }
 0x5b0   :  { %13488 = vpow2.f32 %v4423_v56  ;;  %v4414_v3 = vsub.f32 %v4382_v36, %v4402_v33  ;;  %v4413_v44 = vsub.f32 %v4381_v49, %v4399_v37 }
 0x5b2   :  { %v4427_v53 = vmul.f32 1.442695, %v4414_v3  ;;  %v4425_v52 = vmul.f32 1.442695, %v4413_v44 }
 0x5b3   :  { %v4408_v40 = vpop.xlane.xlu1 %4407  ;;  %v4405_v0 = vpop.xlane.xlu0 %4404 }
 0x5b4   :  { %13490 = vpow2.f32 %v4427_v53  ;;  %v4416_v4 = vsub.f32 %v4384_v60, %v4408_v40  ;;  %v4415_v42 = vsub.f32 %v4383_v17, %v4405_v0  ;;  %v15466_v0 = vmov 0.0  }
 0x5b5   :  { %13492 = vpow2.f32 %v4425_v52 }
 0x5b6   :  { %v13487_v29 = vpop.eup %13486  ;;  %v4431_v8 = vmul.f32 1.442695, %v4416_v4  ;;  %v4429_v63 = vmul.f32 1.442695, %v4415_v42 }
 0x5b7   :  { %v4575_v5 = vpop.permute.xlu1 %4574  ;;  %v4498_v41 = vpop.permute.xlu0 %4497  ;;  %v14407_v32 = vsel %vm2386_vm7, %v13487_v29, 0.0 }
 0x5b8   :  { %13494 = vpow2.f32 %v4431_v8  ;;  %12640 = vmatpush3.msk.msra.mxu0 %vm3139_vm4, %v4498_v41  ;;  %12645 = vmatpush3.msk.msra.mxu1 %vm3139_vm4, %v4575_v5  ;;  %v4444_v49 = vsel %vm3022_vm6, %v14407_v32, 0.0 }
 0x5b9   :  { %13496 = vpow2.f32 %v4429_v63  ;;  %4445 = vadd.xlane.f32.xlu1 %v4444_v49  ;;  %12649 = vmatprep.subr.mxu0 %v15466_v0 }
 0x5ba   :  { %v13489_v4 = vpop.eup %13488  ;;  %12654 = vmatprep.subr.mxu1 %v15466_v0 }
 0x5bb   :  { %v14417_v42 = vsel %vm2388_vm9, %v13489_v4, 0.0  ;;  %v4806_v29 = vpop.permute.xlu0 %4805 }
 0x5bc   :  { %v4450_v36 = vsel %vm3022_vm6, %v14417_v42, 0.0 }
 0x5bd   :  { %4451 = vadd.xlane.f32.xlu1 %v4450_v36  ;;  %v4652_v36 = vpop.permute.xlu1 %4651 }
 0x5be   :  { %v13491_v17 = vpop.eup %13490 }
 0x5bf   :  { %v13493_v60 = vpop.eup %13492  ;;  %v14423_v28 = vsel %vm2390_vm10, %v13491_v17, 0.0 }
 0x5c0   :  { %v4456_v13 = vsel %vm3022_vm6, %v14423_v28, 0.0  ;;  %v14429_v56 = vsel %vm15459_vm11, %v13493_v60, 0.0 }
 0x5c1   :  { %4457 = vadd.xlane.f32.xlu1 %v4456_v13  ;;  %v4453_v33 = vsel %vm3022_vm6, %v14429_v56, 0.0 }
 0x5c2   :  { %v13495_v37 = vpop.eup %13494  ;;  %4454 = vadd.xlane.f32.xlu0 %v4453_v33 }
 0x5c3   :  { %v13497_v3 = vpop.eup %13496  ;;  %v14435_v44 = vsel %vm15467_vm15, %v13495_v37, 0.0 }
 0x5c4   :  { %v4462_v53 = vsel %vm3022_vm6, %v14435_v44, 0.0  ;;  %v14441_v52 = vsel %vm15458_vm12, %v13497_v3, 0.0 }
 0x5c5   :  { %4463 = vadd.xlane.f32.xlu1 %v4462_v53  ;;  %v4459_v40 = vsel %vm3022_vm6, %v14441_v52, 0.0 }
 0x5c6   :  { %4460 = vadd.xlane.f32.xlu0 %v4459_v40 }
 0x5d6   :  { %5036 = vrot.lane.b32.xlu1 %v14067_v47, %s13581_s28 }
 0x5da   :  { %6361 = vrot.lane.b32.xlu1 %v13977_v19, %s13582_s1 }
 0x5dc   :  { %4959 = vrot.lane.b32.xlu0 %v14065_v46, %s13581_s28 }
 0x5de   :  { %6359 = vrot.lane.b32.xlu1 %v13961_v2, %s13582_s1 }
 0x5e0   :  { %6283 = vrot.lane.b32.xlu0 %v13975_v18, %s13582_s1 }
 0x5e2   :  { %6517 = vrot.lane.b32.xlu1 %v13995_v23, %s13582_s1 }
 0x5e4   :  { %6281 = vrot.lane.b32.xlu0 %v13959_v1, %s13582_s1 }
 0x5e6   :  { %6515 = vrot.lane.b32.xlu1 %v13965_v7, %s13582_s1 }
 0x5e8   :  { %6439 = vrot.lane.b32.xlu0 %v13993_v22, %s13582_s1 }
 0x5ea   :  { %6673 = vrot.lane.b32.xlu1 %v14013_v27, %s13582_s1 }
 0x5ec   :  { %6437 = vrot.lane.b32.xlu0 %v13963_v6, %s13582_s1 }
 0x5ee   :  { %6671 = vrot.lane.b32.xlu1 %v13969_v11, %s13582_s1 }
 0x5f0   :  { %6595 = vrot.lane.b32.xlu0 %v14011_v26, %s13582_s1 }
 0x5f2   :  { %6829 = vrot.lane.b32.xlu1 %v14031_v31, %s13582_s1 }
 0x5f4   :  { %6593 = vrot.lane.b32.xlu0 %v13967_v10, %s13582_s1 }
 0x5f6   :  { %6827 = vrot.lane.b32.xlu1 %v13973_v15, %s13582_s1 }
 0x5f8   :  { %6751 = vrot.lane.b32.xlu0 %v14029_v30, %s13582_s1 }
 0x5fc   :  { %6749 = vrot.lane.b32.xlu0 %v13971_v14, %s13582_s1 }
 0x611   :  { %v4443_v8 = vpop.xlane.xlu0 %4442 }
 0x612   :  { %vm4465_vm2 = vcmp.eq.f32.partialorder %v4443_v8, 0.0 }
 0x613   :  { %v4473_v63 = vsel %vm4465_vm2, 1.0, %v4443_v8 }
 0x614   :  { %13498 = vrcp.f32 %v4473_v63 }
 0x615   :  { %v4449_v5 = vpop.xlane.xlu0 %4448 }
 0x616   :  { %vm4467_vm1 = vcmp.eq.f32.partialorder %v4449_v5, 0.0 }
 0x617   :  { %v4475_v41 = vsel %vm4467_vm1, 1.0, %v4449_v5 }
 0x618   :  { %13500 = vrcp.f32 %v4475_v41 }
 0x61e   :  { %v13499_v49 = vpop.eup %13498 }
 0x61f   :  { %v4482_v4 = vmul.f32 %v13499_v49, %v14395_v16  ;;  %v4729_v16 = vpop.permute.xlu1 %4728 }
 0x621   :  { %12642 = vmatmul.mubr.msk.f32.vlgmr.msra.gmra.mrb[56].mxu0 %vm3135_vm13, %v4482_v4 }
 0x622   :  { %v13501_v17 = vpop.eup %13500  ;;  %12650 = vmatpush3.msk.msra.mxu0 %vm3139_vm4, %v4652_v36  ;;  %12651 = vmatprep.mubr.msk.f32.mxu0 %vm13579_vm0, %v15466_v0 }
 0x623   :  { %12659 = vmatprep.subr.mxu0 %v15466_v0  ;;  %v4486_v60 = vmul.f32 %v13501_v17, %v14401_v58  ;;  %v4883_v13 = vpop.permute.xlu1 %4882 }
 0x625   :  { %12652 = vmatmul.mubr.msk.f32.vlgmr.msra.gmra.mrb[58].mxu0 %vm3135_vm13, %v4486_v60 }
 0x626   :  { %12660 = vmatpush3.msk.msra.mxu0 %vm3139_vm4, %v4806_v29  ;;  %12661 = vmatprep.mubr.msk.f32.mxu0 %vm13579_vm0, %v15466_v0 }
 0x627   :  { %12669 = vmatprep.subr.mxu0 %v15466_v0 }
 0x646   :  { %v4446_v33 = vpop.xlane.xlu1 %4445 }
 0x647   :  { %vm4466_vm14 = vcmp.eq.f32.partialorder %v4446_v33, 0.0 }
 0x648   :  { %v4474_v37 = vsel %vm4466_vm14, 1.0, %v4446_v33  ;;  %vm15470_vm14 = vcmp.eq.f32.partialorder %v14132_v48, 0.0 }
 0x649   :  { %13502 = vrcp.f32 %v4474_v37 }
 0x64a   :  { %v4452_v3 = vpop.xlane.xlu1 %4451 }
 0x64b   :  { %vm4468_vm15 = vcmp.eq.f32.partialorder %v4452_v3, 0.0 }
 0x64c   :  { %v4476_v53 = vsel %vm4468_vm15, 1.0, %v4452_v3 }
 0x64d   :  { %13504 = vrcp.f32 %v4476_v53 }
 0x64e   :  { %v4458_v58 = vpop.xlane.xlu1 %4457 }
 0x64f   :  { %vm4470_vm2 = vcmp.eq.f32.partialorder %v4458_v58, 0.0  ;;  %v4455_v40 = vpop.xlane.xlu0 %4454 }
 0x650   :  { %v4478_v8 = vsel %vm4470_vm2, 1.0, %v4458_v58  ;;  %vm4469_vm1 = vcmp.eq.f32.partialorder %v4455_v40, 0.0 }
 0x651   :  { %13506 = vrcp.f32 %v4478_v8  ;;  %v4477_v29 = vsel %vm4469_vm1, 1.0, %v4455_v40  ;;  %vm15474_vm1 = vmmov %vm15470_vm14 }
 0x652   :  { %13508 = vrcp.f32 %v4477_v29  ;;  %v4464_v63 = vpop.xlane.xlu1 %4463 }
 0x653   :  { %v13503_v5 = vpop.eup %13502  ;;  %vm4472_vm12 = vcmp.eq.f32.partialorder %v4464_v63, 0.0  ;;  %v4461_v41 = vpop.xlane.xlu0 %4460 }
 0x654   :  { %v4480_v49 = vsel %vm4472_vm12, 1.0, %v4464_v63  ;;  %vm4471_vm11 = vcmp.eq.f32.partialorder %v4461_v41, 0.0  ;;  %v4484_v4 = vmul.f32 %v13503_v5, %v14407_v32  ;;  %vm15469_vm12 = vcmp.eq.f32.partialorder %v14151_v59, 0.0 }
 0x655   :  { %13510 = vrcp.f32 %v4480_v49  ;;  %v4479_v36 = vsel %vm4471_vm11, 1.0, %v4461_v41  ;;  %vm15468_vm11 = vcmp.eq.f32.partialorder %v14118_v24, 0.0  ;;  %vm15473_vm2 = vmmov %vm15469_vm12 }
 0x656   :  { %13512 = vrcp.f32 %v4479_v36  ;;  %12647 = vmatmul.mubr.msk.f32.vlgmr.msra.gmra.mrb[56].mxu1 %vm3135_vm13, %v4484_v4  ;;  %v5037_v3 = vpop.permute.xlu1 %5036  ;;  %vm15472_vm15 = vmmov %vm15468_vm11 }
 0x657   :  { %v13505_v17 = vpop.eup %13504  ;;  %12655 = vmatpush3.msk.msra.mxu1 %vm3139_vm4, %v4729_v16  ;;  %12656 = vmatprep.mubr.msk.f32.mxu1 %vm13579_vm0, %v15466_v0 }
 0x658   :  { %12664 = vmatprep.subr.mxu1 %v15466_v0  ;;  %v4488_v60 = vmul.f32 %v13505_v17, %v14417_v42  ;;  %v4960_v42 = vpop.permute.xlu0 %4959 }
 0x65a   :  { %12657 = vmatmul.mubr.msk.f32.vlgmr.msra.gmra.mrb[58].mxu1 %vm3135_vm13, %v4488_v60  ;;  %v14542_v41 = vpop.permute.xlu1 %6361 }
 0x65b   :  { %v13507_v33 = vpop.eup %13506  ;;  %12665 = vmatpush3.msk.msra.mxu1 %vm3139_vm4, %v4883_v13  ;;  %12666 = vmatprep.mubr.msk.f32.mxu1 %vm13579_vm0, %v15466_v0 }
 0x65c   :  { %v13509_v32 = vpop.eup %13508  ;;  %12674 = vmatprep.subr.mxu1 %v15466_v0  ;;  %v4492_v16 = vmul.f32 %v13507_v33, %v14423_v28  ;;  %v14545_v4 = vpop.permute.xlu0 %6283 }
 0x65d   :  { %v4490_v37 = vmul.f32 %v13509_v32, %v14429_v56  ;;  %v2394_v56 = vld [vmem:[%s15439_s8 + $0x8] sm:$0xff] }
 0x65e   :  { %12667 = vmatmul.mubr.msk.f32.vlgmr.msra.gmra.mrb[60].mxu1 %vm3135_vm13, %v4492_v16  ;;  %v6360_v32 = vpop.permute.xlu1 %6359  ;;  %v2393_v16 = vld [vmem:[%s15439_s8] sm:$0xff] }
 0x65f   :  { %v13511_v53 = vpop.eup %13510  ;;  %12675 = vmatpush3.msk.msra.mxu1 %vm3139_vm4, %v5037_v3  ;;  %12662 = vmatmul.mubr.msk.f32.vlgmr.msra.gmra.mrb[60].mxu0 %vm3135_vm13, %v4490_v37 }
 0x660   :  { %v13513_v13 = vpop.eup %13512  ;;  %12670 = vmatpush3.msk.msra.mxu0 %vm3139_vm4, %v4960_v42  ;;  %12671 = vmatprep.mubr.msk.f32.mxu0 %vm13579_vm0, %v15466_v0  ;;  %v4496_v58 = vmul.f32 %v13511_v53, %v14435_v44  ;;  %v6282_v37 = vpop.permute.xlu0 %6281 }
 0x661   :  { %12676 = vmatprep.mubr.msk.f32.mxu1 %vm13579_vm0, %v15466_v0  ;;  %v4494_v28 = vmul.f32 %v13513_v13, %v14441_v52  ;;  %12679 = vmatprep.subr.mxu0 %v15466_v0 }
 0x662   :  { %12677 = vmatmul.mubr.msk.f32.vlgmr.msra.gmra.mrb[62].mxu1 %vm3135_vm13, %v4496_v58  ;;  %12684 = vmatprep.subr.mxu1 %v15466_v0  ;;  %v6518_v58 = vpop.permute.xlu1 %6517 }
 0x663   :  { %12672 = vmatmul.mubr.msk.f32.vlgmr.msra.gmra.mrb[62].mxu0 %vm3135_vm13, %v4494_v28  ;;  %12686 = vmatprep.mubr.msk.f32.mxu1 %vm13579_vm0, %v15466_v0 }
 0x664   :  { %12681 = vmatprep.mubr.msk.f32.mxu0 %vm13579_vm0, %v15466_v0  ;;  %12680 = vmatpush3.msra.mxu0 %v2394_v56  ;;  %v6440_v28 = vpop.permute.xlu0 %6439 }
 0x665   :  { %12685 = vmatpush3.msra.mxu1 %v2394_v56  ;;  %12689 = vmatprep.subr.mxu0 %v15466_v0 }
 0x666   :  { %12694 = vmatprep.subr.mxu1 %v15466_v0 }
 0x6f4   :  { %v4570_v44 = vpop.f32.mrb[56].mxu0 }
 0x6f5   :  { %v12643_v52 = vpop.f32.mrb[57].mxu0  ;;  %12682 = vmatmul.mubr.msk.f32.vlgmr.msra.gmra.mrb[64].mxu0 %vm2397_vm3, %v4570_v44 }
 0x6f6   :  { %12690 = vmatpush3.msra.mxu0 %v2394_v56  ;;  %12691 = vmatprep.mubr.msk.f32.mxu0 %vm13579_vm0, %v15466_v0 }
 0x6f7   :  { %12699 = vmatprep.subr.mxu0 %v15466_v0 }
 0x6f8   :  { %v4724_v40 = vpop.f32.mrb[58].mxu0 }
 0x6f9   :  { %v12653_v8 = vpop.f32.mrb[59].mxu0  ;;  %12692 = vmatmul.mubr.msk.f32.vlgmr.msra.gmra.mrb[66].mxu0 %vm2397_vm3, %v4724_v40 }
 0x6fa   :  { %12700 = vmatpush3.msra.mxu0 %v2394_v56  ;;  %12701 = vmatprep.mubr.msk.f32.mxu0 %vm13579_vm0, %v15466_v0 }
 0x6fb   :  { %12709 = vmatprep.subr.mxu0 %v15466_v0 }
 0x729   :  { %v4647_v29 = vpop.f32.mrb[56].mxu1 }
 0x72a   :  { %v12648_v63 = vpop.f32.mrb[57].mxu1  ;;  %12687 = vmatmul.mubr.msk.f32.vlgmr.msra.gmra.mrb[64].mxu1 %vm2397_vm3, %v4647_v29 }
 0x72b   :  { %12695 = vmatpush3.msra.mxu1 %v2394_v56  ;;  %12696 = vmatprep.mubr.msk.f32.mxu1 %vm13579_vm0, %v15466_v0 }
 0x72c   :  { %12704 = vmatprep.subr.mxu1 %v15466_v0 }
 0x72d   :  { %v4801_v5 = vpop.f32.mrb[58].mxu1 }
 0x72e   :  { %v12658_v49 = vpop.f32.mrb[59].mxu1  ;;  %12697 = vmatmul.mubr.msk.f32.vlgmr.msra.gmra.mrb[66].mxu1 %vm2397_vm3, %v4801_v5 }
 0x72f   :  { %12705 = vmatpush3.msra.mxu1 %v2394_v56  ;;  %12706 = vmatprep.mubr.msk.f32.mxu1 %vm13579_vm0, %v15466_v0 }
 0x730   :  { %12714 = vmatprep.subr.mxu1 %v15466_v0 }
 0x731   :  { %v4955_v36 = vpop.f32.mrb[60].mxu1 }
 0x732   :  { %v4878_v17 = vpop.f32.mrb[60].mxu0  ;;  %v12668_v60 = vpop.f32.mrb[61].mxu1  ;;  %12707 = vmatmul.mubr.msk.f32.vlgmr.msra.gmra.mrb[68].mxu1 %vm2397_vm3, %v4955_v36 }
 0x733   :  { %v12663_v33 = vpop.f32.mrb[61].mxu0  ;;  %12702 = vmatmul.mubr.msk.f32.vlgmr.msra.gmra.mrb[68].mxu0 %vm2397_vm3, %v4878_v17  ;;  %12715 = vmatpush3.msra.mxu1 %v2394_v56 }
 0x734   :  { %12710 = vmatpush3.msra.mxu0 %v2394_v56  ;;  %12711 = vmatprep.mubr.msk.f32.mxu0 %vm13579_vm0, %v15466_v0 }
 0x735   :  { %v5109_v3 = vpop.f32.mrb[62].mxu1  ;;  %12716 = vmatprep.mubr.msk.f32.mxu1 %vm13579_vm0, %v15466_v0  ;;  %12719 = vmatprep.subr.mxu0 %v15466_v0 }
 0x736   :  { %v5032_v53 = vpop.f32.mrb[62].mxu0  ;;  %v12678_v42 = vpop.f32.mrb[63].mxu1  ;;  %12717 = vmatmul.mubr.msk.f32.vlgmr.msra.gmra.mrb[70].mxu1 %vm2397_vm3, %v5109_v3  ;;  %12724 = vmatprep.subr.mxu1 %v15466_v0 }
 0x737   :  { %v12673_v13 = vpop.f32.mrb[63].mxu0  ;;  %12712 = vmatmul.mubr.msk.f32.vlgmr.msra.gmra.mrb[70].mxu0 %vm2397_vm3, %v5032_v53  ;;  %12725 = vmatpush3.msra.mxu1 %v2393_v16 }
 0x738   :  { %12720 = vmatpush3.msra.mxu0 %v2393_v16  ;;  %12721 = vmatprep.mubr.msk.f32.mxu0 %vm13579_vm0, %v15466_v0 }
 0x739   :  { %12726 = vmatprep.mubr.msk.f32.mxu1 %vm13579_vm0, %v15466_v0  ;;  %12729 = vmatprep.subr.mxu0 %v15466_v0 }
 0x73a   :  { %12727 = vmatmul.mubr.msk.f32.vlgmr.msra.gmra.mrb[72].mxu1 %vm2397_vm3, %v14343_v54  ;;  %12734 = vmatprep.subr.mxu1 %v15466_v0  ;;  %v6438_v54 = vpop.permute.xlu0 %6437 }
 0x73b   :  { %12722 = vmatmul.mubr.msk.f32.vlgmr.msra.gmra.mrb[72].mxu0 %vm2397_vm3, %v14341_v55  ;;  %12735 = vmatpush3.msra.mxu1 %v2393_v16  ;;  %v6516_v55 = vpop.permute.xlu1 %6515 }
 0x73c   :  { %12730 = vmatpush3.msra.mxu0 %v2393_v16  ;;  %12731 = vmatprep.mubr.msk.f32.mxu0 %vm13579_vm0, %v15466_v0 }
 0x73d   :  { %12736 = vmatprep.mubr.msk.f32.mxu1 %vm13579_vm0, %v15466_v0  ;;  %12739 = vmatprep.subr.mxu0 %v15466_v0 }
 0x73e   :  { %12737 = vmatmul.mubr.msk.f32.vlgmr.msra.gmra.mrb[74].mxu1 %vm2397_vm3, %v14347_v20  ;;  %12744 = vmatprep.subr.mxu1 %v15466_v0  ;;  %v6596_v20 = vpop.permute.xlu0 %6595 }
 0x73f   :  { %12732 = vmatmul.mubr.msk.f32.vlgmr.msra.gmra.mrb[74].mxu0 %vm2397_vm3, %v14345_v57  ;;  %12745 = vmatpush3.msra.mxu1 %v2393_v16  ;;  %v6674_v57 = vpop.permute.xlu1 %6673 }
 0x740   :  { %12740 = vmatpush3.msra.mxu0 %v2393_v16  ;;  %12741 = vmatprep.mubr.msk.f32.mxu0 %vm13579_vm0, %v15466_v0 }
 0x741   :  { %12746 = vmatprep.mubr.msk.f32.mxu1 %vm13579_vm0, %v15466_v0  ;;  %12749 = vmatprep.subr.mxu0 %v15466_v0 }
 0x742   :  { %12754 = vmatprep.subr.mxu1 %v15466_v0  ;;  %12747 = vmatmul.mubr.msk.f32.vlgmr.msra.gmra.mrb[76].mxu1 %vm2397_vm3, %v14349_v9 }
 0x743   :  { %12742 = vmatmul.mubr.msk.f32.vlgmr.msra.gmra.mrb[76].mxu0 %vm2397_vm3, %v14351_v12  ;;  %12755 = vmatpush3.msra.mxu1 %v2393_v16  ;;  %v6672_v9 = vpop.permute.xlu1 %6671  ;;  %v6594_v12 = vpop.permute.xlu0 %6593 }
 0x744   :  { %12750 = vmatpush3.msra.mxu0 %v2393_v16  ;;  %12751 = vmatprep.mubr.msk.f32.mxu0 %vm13579_vm0, %v15466_v0 }
 0x745   :  { %12756 = vmatprep.mubr.msk.f32.mxu1 %vm13579_vm0, %v15466_v0  ;;  %12759 = vmatprep.subr.mxu0 %v15466_v0 }
 0x746   :  { %12757 = vmatmul.mubr.msk.f32.vlgmr.msra.gmra.mrb[78].mxu1 %vm2397_vm3, %v14361_v45  ;;  %12764 = vmatprep.subr.mxu1 %v15466_v0 }
 0x747   :  { %12752 = vmatmul.mubr.msk.f32.vlgmr.msra.gmra.mrb[78].mxu0 %vm2397_vm3, %v14353_v25  ;;  %12766 = vmatprep.mubr.msk.f32.mxu1 %vm13579_vm0, %v15466_v0  ;;  %v6830_v25 = vpop.permute.xlu1 %6829  ;;  %v6752_v45 = vpop.permute.xlu0 %6751 }
 0x748   :  { %12761 = vmatprep.mubr.msk.f32.mxu0 %vm13579_vm0, %v15466_v0 }
 0x74a   :  { %12765 = vmatpush3.xpose.msk.msra.mxu1 %vm2397_vm3, %v14542_v41 }
 0x74b   :  { %12760 = vmatpush3.xpose.msk.msra.mxu0 %vm2397_vm3, %v14545_v4  ;;  %12774 = vmatprep.subr.mxu1 %v15466_v0  ;;  %v6828_v56 = vpop.permute.xlu1 %6827  ;;  %v6750_v44 = vpop.permute.xlu0 %6749 }
 0x74c   :  { %12769 = vmatprep.subr.mxu0 %v15466_v0 }
 0x74d   :  { %12767 = vmatmul.mubr.msk.f32.vlgmr.msra.gmra.mrb[80].mxu1 %vm2397_vm3, %v6360_v32 }
 0x74e   :  { %12762 = vmatmul.mubr.msk.f32.vlgmr.msra.gmra.mrb[80].mxu0 %vm2397_vm3, %v6282_v37  ;;  %12775 = vmatpush3.xpose.msk.msra.mxu1 %vm2397_vm3, %v6518_v58 }
 0x74f   :  { %12770 = vmatpush3.xpose.msk.msra.mxu0 %vm2397_vm3, %v6440_v28  ;;  %12771 = vmatprep.mubr.msk.f32.mxu0 %vm13579_vm0, %v15466_v0 }
 0x750   :  { %12776 = vmatprep.mubr.msk.f32.mxu1 %vm13579_vm0, %v15466_v0  ;;  %12779 = vmatprep.subr.mxu0 %v15466_v0 }
 0x751   :  { %12777 = vmatmul.mubr.msk.f32.vlgmr.msra.gmra.mrb[82].mxu1 %vm2397_vm3, %v6516_v55  ;;  %12784 = vmatprep.subr.mxu1 %v15466_v0 }
 0x752   :  { %12772 = vmatmul.mubr.msk.f32.vlgmr.msra.gmra.mrb[82].mxu0 %vm2397_vm3, %v6438_v54  ;;  %12785 = vmatpush3.xpose.msk.msra.mxu1 %vm2397_vm3, %v6674_v57 }
 0x753   :  { %12780 = vmatpush3.xpose.msk.msra.mxu0 %vm2397_vm3, %v6596_v20  ;;  %12781 = vmatprep.mubr.msk.f32.mxu0 %vm13579_vm0, %v15466_v0 }
 0x754   :  { %12786 = vmatprep.mubr.msk.f32.mxu1 %vm13579_vm0, %v15466_v0  ;;  %12789 = vmatprep.subr.mxu0 %v15466_v0 }
 0x755   :  { %12787 = vmatmul.mubr.msk.f32.vlgmr.msra.gmra.mrb[84].mxu1 %vm2397_vm3, %v6672_v9  ;;  %12794 = vmatprep.subr.mxu1 %v15466_v0 }
 0x756   :  { %12782 = vmatmul.mubr.msk.f32.vlgmr.msra.gmra.mrb[84].mxu0 %vm2397_vm3, %v6594_v12  ;;  %12795 = vmatpush3.xpose.msk.msra.mxu1 %vm2397_vm3, %v6830_v25 }
 0x757   :  { %12790 = vmatpush3.xpose.msk.msra.mxu0 %vm2397_vm3, %v6752_v45  ;;  %12791 = vmatprep.mubr.msk.f32.mxu0 %vm13579_vm0, %v15466_v0 }
 0x758   :  { %12796 = vmatprep.mubr.msk.f32.mxu1 %vm13579_vm0, %v15466_v0  ;;  %12804 = vmatprep.subr.mxu1 %v15466_v0 }
 0x759   :  { %12797 = vmatmul.mubr.msk.f32.vlgmr.msra.gmra.mrb[86].mxu1 %vm2397_vm3, %v6828_v56  ;;  %12799 = vmatprep.subr.mxu0 %v15466_v0 }
 0x75a   :  { %12792 = vmatmul.mubr.msk.f32.vlgmr.msra.gmra.mrb[86].mxu0 %vm2397_vm3, %v6750_v44  ;;  %12806 = vmatprep.mubr.msk.f32.mxu1 %vm13579_vm0, %v15466_v0 }
 0x75b   :  { %12801 = vmatprep.mubr.msk.f32.mxu0 %vm13579_vm0, %v15466_v0 }
 0x7c8   :  { %v5182_v52 = vpop.f32.mrb[64].mxu0 }
 0x7c9   :  { %v12683_v40 = vpop.f32.mrb[65].mxu0 }
 0x7cc   :  { %v5328_v8 = vpop.f32.mrb[66].mxu0 }
 0x7cd   :  { %v12693_v29 = vpop.f32.mrb[67].mxu0 }
 0x7fd   :  { %v5255_v63 = vpop.f32.mrb[64].mxu1 }
 0x7fe   :  { %v12688_v5 = vpop.f32.mrb[65].mxu1 }
 0x801   :  { %v5401_v41 = vpop.f32.mrb[66].mxu1 }
 0x802   :  { %v12698_v49 = vpop.f32.mrb[67].mxu1 }
 0x805   :  { %v5547_v4 = vpop.f32.mrb[68].mxu1 }
 0x806   :  { %v5474_v36 = vpop.f32.mrb[68].mxu0  ;;  %v12708_v17 = vpop.f32.mrb[69].mxu1 }
 0x807   :  { %v12703_v60 = vpop.f32.mrb[69].mxu0 }
 0x809   :  { %v5693_v33 = vpop.f32.mrb[70].mxu1 }
 0x80a   :  { %v5620_v32 = vpop.f32.mrb[70].mxu0  ;;  %v12718_v16 = vpop.f32.mrb[71].mxu1 }
 0x80b   :  { %v12713_v37 = vpop.f32.mrb[71].mxu0 }
 0x80d   :  { %v5839_v3 = vpop.f32.mrb[72].mxu1 }
 0x80e   :  { %v5766_v53 = vpop.f32.mrb[72].mxu0  ;;  %v14649_v42 = vadd.f32 %v5839_v3, %v5255_v63  ;;  %v12728_v13 = vpop.f32.mrb[73].mxu1 }
 0x80f   :  { %v14651_v58 = vadd.f32 %v5766_v53, %v5182_v52  ;;  %v12723_v28 = vpop.f32.mrb[73].mxu0 }
 0x811   :  { %v5985_v55 = vpop.f32.mrb[74].mxu1 }
 0x812   :  { %v5912_v54 = vpop.f32.mrb[74].mxu0  ;;  %v14653_v57 = vadd.f32 %v5985_v55, %v5401_v41  ;;  %v12738_v20 = vpop.f32.mrb[75].mxu1 }
 0x813   :  { %v14655_v9 = vadd.f32 %v5912_v54, %v5328_v8  ;;  %v12733_v12 = vpop.f32.mrb[75].mxu0 }
 0x815   :  { %v6131_v25 = vpop.f32.mrb[76].mxu1 }
 0x816   :  { %v6058_v45 = vpop.f32.mrb[76].mxu0  ;;  %v14657_v56 = vadd.f32 %v6131_v25, %v5547_v4  ;;  %v12748_v44 = vpop.f32.mrb[77].mxu1 }
 0x817   :  { %v14659_v40 = vadd.f32 %v6058_v45, %v5474_v36  ;;  %v12743_v29 = vpop.f32.mrb[77].mxu0 }
 0x819   :  { %v6277_v63 = vpop.f32.mrb[78].mxu1 }
 0x81a   :  { %v6204_v52 = vpop.f32.mrb[78].mxu0  ;;  %v14661_v5 = vadd.f32 %v6277_v63, %v5693_v33  ;;  %v12758_v49 = vpop.f32.mrb[79].mxu1 }
 0x81b   :  { %v14663_v17 = vadd.f32 %v6204_v52, %v5620_v32  ;;  %v12753_v41 = vpop.f32.mrb[79].mxu0 }
 0x820   :  { %v6433_v60 = vpop.f32.mrb[80].mxu1 }
 0x821   :  { %v6355_v8 = vpop.f32.mrb[80].mxu0  ;;  %v6906_v16 = vmul.f32 0.35355338, %v6433_v60  ;;  %v12768_v37 = vpop.f32.mrb[81].mxu1 }
 0x822   :  { %v6905_v3 = vmul.f32 0.35355338, %v6355_v8  ;;  %v12763_v53 = vpop.f32.mrb[81].mxu0 }
 0x823   :  { %v6914_v4 = vsel %vm2386_vm7, %v6906_v16, -1e+30 }
 0x824   :  { %v6589_v36 = vpop.f32.mrb[82].mxu1  ;;  %v6924_v13 = vsel %vm3022_vm6, %v6914_v4, -inf  ;;  %v6913_v33 = vsel %vm2385_vm5, %v6905_v3, -1e+30 }
 0x825   :  { %v6511_v28 = vpop.f32.mrb[82].mxu0  ;;  %6925 = vmax.xlane.f32.xlu1 %v6924_v13  ;;  %v12778_v32 = vpop.f32.mrb[83].mxu1  ;;  %v6921_v55 = vsel %vm3022_vm6, %v6913_v33, -inf  ;;  %v6908_v20 = vmul.f32 0.35355338, %v6589_v36 }
 0x826   :  { %v6907_v54 = vmul.f32 0.35355338, %v6511_v28  ;;  %6922 = vmax.xlane.f32.xlu0 %v6921_v55  ;;  %v12773_v12 = vpop.f32.mrb[83].mxu0 }
 0x827   :  { %v6916_v60 = vsel %vm2388_vm9, %v6908_v20, -1e+30 }
 0x828   :  { %v6745_v25 = vpop.f32.mrb[84].mxu1  ;;  %v6915_v45 = vsel %vm2387_vm8, %v6907_v54, -1e+30  ;;  %v6930_v13 = vsel %vm3022_vm6, %v6916_v60, -inf }
 0x829   :  { %v6667_v44 = vpop.f32.mrb[84].mxu0  ;;  %v6910_v29 = vmul.f32 0.35355338, %v6745_v25  ;;  %v12788_v63 = vpop.f32.mrb[85].mxu1  ;;  %v6927_v52 = vsel %vm3022_vm6, %v6915_v45, -inf }
 0x82a   :  { %v6909_v49 = vmul.f32 0.35355338, %v6667_v44  ;;  %6928 = vmax.xlane.f32.xlu0 %v6927_v52  ;;  %v12783_v41 = vpop.f32.mrb[85].mxu0 }
 0x82b   :  { %v6918_v8 = vsel %vm2390_vm10, %v6910_v29, -1e+30  ;;  %v15471_v29 = vld [vmem:[#allocation2_spill] sm:$0xff] }
 0x82c   :  { %v6901_v16 = vpop.f32.mrb[86].mxu1  ;;  %v6936_v37 = vsel %vm3022_vm6, %v6918_v8, -inf  ;;  %v6917_v55 = vsel %vm15468_vm11, %v6909_v49, -1e+30 }
 0x82d   :  { %v6823_v3 = vpop.f32.mrb[86].mxu0  ;;  %v6912_v53 = vmul.f32 0.35355338, %v6901_v16  ;;  %6937 = vmax.xlane.f32.xlu1 %v6936_v37  ;;  %v12798_v36 = vpop.f32.mrb[87].mxu1  ;;  %v6933_v12 = vsel %vm3022_vm6, %v6917_v55, -inf }
 0x82e   :  { %v6911_v28 = vmul.f32 0.35355338, %v6823_v3  ;;  %6931 = vmax.xlane.f32.xlu0 %v6930_v13  ;;  %v12793_v32 = vpop.f32.mrb[87].mxu0 }
 0x82f   :  { %v6920_v54 = vsel %vm15469_vm12, %v6912_v53, -1e+30 }
 0x830   :  { %v6942_v20 = vsel %vm3022_vm6, %v6920_v54, -inf  ;;  %v6919_v25 = vsel %vm15470_vm14, %v6911_v28, -1e+30 }
 0x831   :  { %6943 = vmax.xlane.f32.xlu1 %v6942_v20  ;;  %v6939_v44 = vsel %vm3022_vm6, %v6919_v25, -inf }
 0x832   :  { %6934 = vmax.xlane.f32.xlu0 %v6933_v12 }
 0x836   :  { %6940 = vmax.xlane.f32.xlu0 %v6939_v44 }
 0x842   :  { %7110 = vrot.lane.b32.xlu1 %v14049_v35, %s13582_s1 }
 0x846   :  { %7187 = vrot.lane.b32.xlu1 %v14057_v38, %s13582_s1 }
 0x84a   :  { %7264 = vrot.lane.b32.xlu1 %v14059_v39, %s13582_s1 }
 0x84c   :  { %7033 = vrot.lane.b32.xlu0 %v14047_v34, %s13582_s1 }
 0x84e   :  { %7418 = vrot.lane.b32.xlu1 %v14063_v43, %s13582_s1 }
 0x850   :  { %7341 = vrot.lane.b32.xlu0 %v15471_v29, %s13582_s1 }
 0x8b2   :  { %v6926_v63 = vpop.xlane.xlu1 %6925 }
 0x8b3   :  { %v6946_v52 = vsub.f32 %v6914_v4, %v6926_v63  ;;  %v6923_v49 = vpop.xlane.xlu0 %6922 }
 0x8b4   :  { %v6945_v41 = vsub.f32 %v6913_v33, %v6923_v49 }
 0x8b5   :  { %v6955_v16 = vmul.f32 1.442695, %v6946_v52 }
 0x8b6   :  { %v6953_v37 = vmul.f32 1.442695, %v6945_v41 }
 0x8b7   :  { %13514 = vpow2.f32 %v6955_v16  ;;  %v6929_v3 = vpop.xlane.xlu0 %6928 }
 0x8b8   :  { %13516 = vpow2.f32 %v6953_v37  ;;  %v6947_v53 = vsub.f32 %v6915_v45, %v6929_v3 }
 0x8ba   :  { %v6957_v36 = vmul.f32 1.442695, %v6947_v53  ;;  %v6938_v13 = vpop.xlane.xlu1 %6937 }
 0x8bb   :  { %v6950_v28 = vsub.f32 %v6918_v8, %v6938_v13  ;;  %v6932_v32 = vpop.xlane.xlu0 %6931 }
 0x8bc   :  { %13518 = vpow2.f32 %v6957_v36  ;;  %v6948_v20 = vsub.f32 %v6916_v60, %v6932_v32 }
 0x8bd   :  { %v6963_v12 = vmul.f32 1.442695, %v6950_v28 }
 0x8be   :  { %v6959_v44 = vmul.f32 1.442695, %v6948_v20  ;;  %v6944_v43 = vpop.xlane.xlu1 %6943 }
 0x8bf   :  { %13520 = vpow2.f32 %v6963_v12  ;;  %v6952_v29 = vsub.f32 %v6920_v54, %v6944_v43  ;;  %v6935_v4 = vpop.xlane.xlu0 %6934 }
 0x8c0   :  { %13522 = vpow2.f32 %v6959_v44  ;;  %v6949_v33 = vsub.f32 %v6917_v55, %v6935_v4 }
 0x8c1   :  { %v13515_v63 = vpop.eup %13514  ;;  %v6967_v52 = vmul.f32 1.442695, %v6952_v29 }
 0x8c2   :  { %v13517_v49 = vpop.eup %13516  ;;  %v6961_v41 = vmul.f32 1.442695, %v6949_v33  ;;  %v7111_v16 = vpop.permute.xlu1 %7110  ;;  %v14703_v45 = vsel %vm2386_vm7, %v13515_v63, 0.0 }
 0x8c3   :  { %13524 = vpow2.f32 %v6967_v52  ;;  %v6941_v8 = vpop.xlane.xlu0 %6940  ;;  %12805 = vmatpush3.msk.msra.mxu1 %vm3139_vm4, %v7111_v16  ;;  %v6980_v60 = vsel %vm3022_vm6, %v14703_v45, 0.0  ;;  %v14710_v43 = vsel %vm2385_vm5, %v13517_v49, 0.0 }
 0x8c4   :  { %13526 = vpow2.f32 %v6961_v41  ;;  %v6951_v55 = vsub.f32 %v6919_v25, %v6941_v8  ;;  %6981 = vadd.xlane.f32.xlu1 %v6980_v60  ;;  %v6977_v54 = vsel %vm3022_vm6, %v14710_v43, 0.0  ;;  %12814 = vmatprep.subr.mxu1 %v15466_v0 }
 0x8c5   :  { %6978 = vadd.xlane.f32.xlu0 %v6977_v54 }
 0x8c6   :  { %v13519_v29 = vpop.eup %13518  ;;  %v6965_v37 = vmul.f32 1.442695, %v6951_v55 }
 0x8c7   :  { %v7034_v3 = vpop.permute.xlu0 %7033  ;;  %v14717_v53 = vsel %vm2387_vm8, %v13519_v29, 0.0 }
 0x8c8   :  { %13528 = vpow2.f32 %v6965_v37  ;;  %12800 = vmatpush3.msk.msra.mxu0 %vm3139_vm4, %v7034_v3  ;;  %v6983_v25 = vsel %vm3022_vm6, %v14717_v53, 0.0 }
 0x8c9   :  { %v13521_v36 = vpop.eup %13520  ;;  %6984 = vadd.xlane.f32.xlu0 %v6983_v25  ;;  %12809 = vmatprep.subr.mxu0 %v15466_v0 }
 0x8ca   :  { %v13523_v13 = vpop.eup %13522  ;;  %v14731_v12 = vsel %vm2390_vm10, %v13521_v36, 0.0 }
 0x8cb   :  { %v14725_v28 = vsel %vm2388_vm9, %v13523_v13, 0.0  ;;  %v6992_v33 = vsel %vm3022_vm6, %v14731_v12, 0.0 }
 0x8cc   :  { %v6986_v32 = vsel %vm3022_vm6, %v14725_v28, 0.0 }
 0x8cd   :  { %v13525_v20 = vpop.eup %13524  ;;  %6987 = vadd.xlane.f32.xlu1 %v6986_v32 }
 0x8ce   :  { %v13527_v44 = vpop.eup %13526  ;;  %v14743_v52 = vsel %vm15473_vm2, %v13525_v20, 0.0 }
 0x8cf   :  { %v14735_v4 = vsel %vm15472_vm15, %v13527_v44, 0.0  ;;  %v6998_v16 = vsel %vm3022_vm6, %v14743_v52, 0.0 }
 0x8d0   :  { %v6989_v63 = vsel %vm3022_vm6, %v14735_v4, 0.0 }
 0x8d1   :  { %6993 = vadd.xlane.f32.xlu1 %v6992_v33  ;;  %6990 = vadd.xlane.f32.xlu0 %v6989_v63 }
 0x8d2   :  { %v13529_v49 = vpop.eup %13528 }
 0x8d3   :  { %v14747_v41 = vsel %vm15474_vm1, %v13529_v49, 0.0 }
 0x8d4   :  { %v6995_v8 = vsel %vm3022_vm6, %v14747_v41, 0.0 }
 0x8d5   :  { %6999 = vadd.xlane.f32.xlu1 %v6998_v16  ;;  %6996 = vadd.xlane.f32.xlu0 %v6995_v8 }
 0x8e6   :  { %7572 = vrot.lane.b32.xlu1 %v14067_v47, %s13582_s1 }
 0x8ea   :  { %8321 = vrot.lane.b32.xlu1 %v13977_v19, %s13583_s18 }
 0x8eb   :  { %7495 = vrot.lane.b32.xlu0 %v14065_v46, %s13582_s1 }
 0x8ee   :  { %8319 = vrot.lane.b32.xlu1 %v13961_v2, %s13583_s18 }
 0x8ef   :  { %8243 = vrot.lane.b32.xlu0 %v13975_v18, %s13583_s18 }
 0x8f2   :  { %8477 = vrot.lane.b32.xlu1 %v13995_v23, %s13583_s18 }
 0x8f3   :  { %8241 = vrot.lane.b32.xlu0 %v13959_v1, %s13583_s18  ;;  %v7188_v1 = vpop.permute.xlu1 %7187 }
 0x8f6   :  { %8475 = vrot.lane.b32.xlu1 %v13965_v7, %s13583_s18  ;;  %v7342_v7 = vpop.permute.xlu0 %7341 }
 0x8f7   :  { %8399 = vrot.lane.b32.xlu0 %v13993_v22, %s13583_s18  ;;  %v7265_v2 = vpop.permute.xlu1 %7264 }
 0x8fa   :  { %8633 = vrot.lane.b32.xlu1 %v14013_v27, %s13583_s18 }
 0x8fb   :  { %8397 = vrot.lane.b32.xlu0 %v13963_v6, %s13583_s18  ;;  %v7419_v6 = vpop.permute.xlu1 %7418 }
 0x8fe   :  { %8631 = vrot.lane.b32.xlu1 %v13969_v11, %s13583_s18 }
 0x8ff   :  { %8555 = vrot.lane.b32.xlu0 %v14011_v26, %s13583_s18 }
 0x902   :  { %8789 = vrot.lane.b32.xlu1 %v14031_v31, %s13583_s18 }
 0x903   :  { %8553 = vrot.lane.b32.xlu0 %v13967_v10, %s13583_s18 }
 0x906   :  { %8787 = vrot.lane.b32.xlu1 %v13973_v15, %s13583_s18 }
 0x907   :  { %8711 = vrot.lane.b32.xlu0 %v14029_v30, %s13583_s18 }
 0x90b   :  { %8709 = vrot.lane.b32.xlu0 %v13971_v14, %s13583_s18 }
 0x951   :  { %v6982_v11 = vpop.xlane.xlu1 %6981 }
 0x952   :  { %vm7002_vm11 = vcmp.eq.f32.partialorder %v6982_v11, 0.0  ;;  %v6979_v18 = vpop.xlane.xlu0 %6978 }
 0x953   :  { %v7010_v19 = vsel %vm7002_vm11, 1.0, %v6982_v11  ;;  %vm7001_vm12 = vcmp.eq.f32.partialorder %v6979_v18, 0.0 }
 0x954   :  { %13530 = vrcp.f32 %v7010_v19  ;;  %v7009_v10 = vsel %vm7001_vm12, 1.0, %v6979_v18 }
 0x955   :  { %13532 = vrcp.f32 %v7009_v10 }
 0x956   :  { %v6985_v22 = vpop.xlane.xlu0 %6984 }
 0x957   :  { %vm7003_vm14 = vcmp.eq.f32.partialorder %v6985_v22, 0.0 }
 0x958   :  { %v7011_v15 = vsel %vm7003_vm14, 1.0, %v6985_v22  ;;  %vm15475_vm14 = vcmp.eq.f32.partialorder %v14118_v24, 0.0 }
 0x959   :  { %13534 = vrcp.f32 %v7011_v15 }
 0x95a   :  { %v6988_v23 = vpop.xlane.xlu1 %6987 }
 0x95b   :  { %vm7004_vm15 = vcmp.eq.f32.partialorder %v6988_v23, 0.0 }
 0x95c   :  { %v7012_v26 = vsel %vm7004_vm15, 1.0, %v6988_v23  ;;  %vm15476_vm15 = vcmp.eq.f32.partialorder %v14132_v48, 0.0 }
 0x95d   :  { %13536 = vrcp.f32 %v7012_v26 }
 0x95e   :  { %v13531_v14 = vpop.eup %13530  ;;  %v6994_v27 = vpop.xlane.xlu1 %6993 }
 0x95f   :  { %v6991_v30 = vpop.xlane.xlu0 %6990  ;;  %v13533_v31 = vpop.eup %13532  ;;  %vm7006_vm2 = vcmp.eq.f32.partialorder %v6994_v27, 0.0  ;;  %v7020_v60 = vmul.f32 %v13531_v14, %v14703_v45 }
 0x960   :  { %vm7005_vm1 = vcmp.eq.f32.partialorder %v6991_v30, 0.0  ;;  %v7014_v55 = vsel %vm7006_vm2, 1.0, %v6994_v27  ;;  %v7018_v29 = vmul.f32 %v13533_v31, %v14710_v43  ;;  %vm15477_vm2 = vcmp.eq.f32.partialorder %v14151_v59, 0.0 }
 0x961   :  { %v7013_v54 = vsel %vm7005_vm1, 1.0, %v6991_v30  ;;  %13538 = vrcp.f32 %v7014_v55  ;;  %12807 = vmatmul.mubr.msk.f32.vlgmr.msra.gmra.mrb[88].mxu1 %vm3135_vm13, %v7020_v60 }
 0x962   :  { %13540 = vrcp.f32 %v7013_v54  ;;  %12815 = vmatpush3.msk.msra.mxu1 %vm3139_vm4, %v7265_v2  ;;  %v7000_v37 = vpop.xlane.xlu1 %6999  ;;  %12802 = vmatmul.mubr.msk.f32.vlgmr.msra.gmra.mrb[88].mxu0 %vm3135_vm13, %v7018_v29 }
 0x963   :  { %v6997_v3 = vpop.xlane.xlu0 %6996  ;;  %v13535_v25 = vpop.eup %13534  ;;  %vm7008_vm11 = vcmp.eq.f32.partialorder %v7000_v37, 0.0  ;;  %12810 = vmatpush3.msk.msra.mxu0 %vm3139_vm4, %v7188_v1  ;;  %12811 = vmatprep.mubr.msk.f32.mxu0 %vm13579_vm0, %v15466_v0 }
 0x964   :  { %vm7007_vm12 = vcmp.eq.f32.partialorder %v6997_v3, 0.0  ;;  %v7016_v45 = vsel %vm7008_vm11, 1.0, %v7000_v37  ;;  %12819 = vmatprep.subr.mxu0 %v15466_v0  ;;  %v7022_v36 = vmul.f32 %v13535_v25, %v14717_v53  ;;  %12816 = vmatprep.mubr.msk.f32.mxu1 %vm13579_vm0, %v15466_v0 }
 0x965   :  { %v7015_v43 = vsel %vm7007_vm12, 1.0, %v6997_v3  ;;  %13542 = vrcp.f32 %v7016_v45  ;;  %12824 = vmatprep.subr.mxu1 %v15466_v0 }
 0x966   :  { %13544 = vrcp.f32 %v7015_v43  ;;  %12812 = vmatmul.mubr.msk.f32.vlgmr.msra.gmra.mrb[90].mxu0 %vm3135_vm13, %v7022_v36  ;;  %v7573_v63 = vpop.permute.xlu1 %7572 }
 0x967   :  { %v13537_v13 = vpop.eup %13536  ;;  %12820 = vmatpush3.msk.msra.mxu0 %vm3139_vm4, %v7342_v7  ;;  %12821 = vmatprep.mubr.msk.f32.mxu0 %vm13579_vm0, %v15466_v0  ;;  %v7496_v49 = vpop.permute.xlu0 %7495 }
 0x968   :  { %v7024_v32 = vmul.f32 %v13537_v13, %v14725_v28  ;;  %12829 = vmatprep.subr.mxu0 %v15466_v0 }
 0x96a   :  { %12817 = vmatmul.mubr.msk.f32.vlgmr.msra.gmra.mrb[90].mxu1 %vm3135_vm13, %v7024_v32 }
 0x96b   :  { %v13539_v53 = vpop.eup %13538  ;;  %12825 = vmatpush3.msk.msra.mxu1 %vm3139_vm4, %v7419_v6  ;;  %12826 = vmatprep.mubr.msk.f32.mxu1 %vm13579_vm0, %v15466_v0 }
 0x96c   :  { %v13541_v20 = vpop.eup %13540  ;;  %12834 = vmatprep.subr.mxu1 %v15466_v0  ;;  %v7028_v44 = vmul.f32 %v13539_v53, %v14731_v12 }
 0x96d   :  { %v7026_v33 = vmul.f32 %v13541_v20, %v14735_v4  ;;  %v2395_v4 = vld [vmem:[%s15439_s8 + $0x10] sm:$0xff] }
 0x96e   :  { %12827 = vmatmul.mubr.msk.f32.vlgmr.msra.gmra.mrb[92].mxu1 %vm3135_vm13, %v7028_v44 }
 0x96f   :  { %v13543_v28 = vpop.eup %13542  ;;  %12835 = vmatpush3.msk.msra.mxu1 %vm3139_vm4, %v7573_v63  ;;  %12822 = vmatmul.mubr.msk.f32.vlgmr.msra.gmra.mrb[92].mxu0 %vm3135_vm13, %v7026_v33 }
 0x970   :  { %v13545_v16 = vpop.eup %13544  ;;  %12830 = vmatpush3.msk.msra.mxu0 %vm3139_vm4, %v7496_v49  ;;  %12831 = vmatprep.mubr.msk.f32.mxu0 %vm13579_vm0, %v15466_v0  ;;  %v7032_v8 = vmul.f32 %v13543_v28, %v14743_v52  ;;  %v8322_v52 = vpop.permute.xlu1 %8321 }
 0x971   :  { %12836 = vmatprep.mubr.msk.f32.mxu1 %vm13579_vm0, %v15466_v0  ;;  %v7030_v12 = vmul.f32 %v13545_v16, %v14747_v41  ;;  %12839 = vmatprep.subr.mxu0 %v15466_v0  ;;  %v8244_v41 = vpop.permute.xlu0 %8243 }
 0x972   :  { %12837 = vmatmul.mubr.msk.f32.vlgmr.msra.gmra.mrb[94].mxu1 %vm3135_vm13, %v7032_v8  ;;  %12844 = vmatprep.subr.mxu1 %v15466_v0 }
 0x973   :  { %12832 = vmatmul.mubr.msk.f32.vlgmr.msra.gmra.mrb[94].mxu0 %vm3135_vm13, %v7030_v12  ;;  %12846 = vmatprep.mubr.msk.f32.mxu1 %vm13579_vm0, %v15466_v0 }
 0x974   :  { %12841 = vmatprep.mubr.msk.f32.mxu0 %vm13579_vm0, %v15466_v0  ;;  %12840 = vmatpush3.msra.mxu0 %v2395_v4  ;;  %v8320_v1 = vpop.permute.xlu1 %8319 }
 0x975   :  { %12845 = vmatpush3.msra.mxu1 %v2395_v4  ;;  %12849 = vmatprep.subr.mxu0 %v15466_v0  ;;  %v8242_v2 = vpop.permute.xlu0 %8241 }
 0x976   :  { %12854 = vmatprep.subr.mxu1 %v15466_v0 }
 0x978   :  { %v8478_v19 = vpop.permute.xlu1 %8477 }
 0x979   :  { %v8400_v15 = vpop.permute.xlu0 %8399 }
 0x97c   :  { %v8476_v14 = vpop.permute.xlu1 %8475 }
 0x97d   :  { %v8398_v27 = vpop.permute.xlu0 %8397 }
 0x980   :  { %v8634_v54 = vpop.permute.xlu1 %8633 }
 0x981   :  { %v8556_v25 = vpop.permute.xlu0 %8555 }
 0x984   :  { %v8632_v43 = vpop.permute.xlu1 %8631 }
 0x985   :  { %v8554_v36 = vpop.permute.xlu0 %8553 }
 0x988   :  { %v8790_v13 = vpop.permute.xlu1 %8789 }
 0x989   :  { %v8712_v32 = vpop.permute.xlu0 %8711 }
 0x98c   :  { %v8788_v53 = vpop.permute.xlu1 %8787 }
 0x98d   :  { %v8710_v20 = vpop.permute.xlu0 %8709 }
 0xa34   :  { %v7183_v6 = vpop.f32.mrb[88].mxu1 }
 0xa35   :  { %v7106_v7 = vpop.f32.mrb[88].mxu0  ;;  %v12808_v11 = vpop.f32.mrb[89].mxu1  ;;  %12847 = vmatmul.mubr.msk.f32.vlgmr.msra.gmra.mrb[96].mxu1 %vm2397_vm3, %v7183_v6 }
 0xa36   :  { %v12803_v18 = vpop.f32.mrb[89].mxu0  ;;  %12842 = vmatmul.mubr.msk.f32.vlgmr.msra.gmra.mrb[96].mxu0 %vm2397_vm3, %v7106_v7  ;;  %12855 = vmatpush3.msra.mxu1 %v2395_v4 }
 0xa37   :  { %12850 = vmatpush3.msra.mxu0 %v2395_v4  ;;  %12851 = vmatprep.mubr.msk.f32.mxu0 %vm13579_vm0, %v15466_v0 }
 0xa38   :  { %12856 = vmatprep.mubr.msk.f32.mxu1 %vm13579_vm0, %v15466_v0  ;;  %12864 = vmatprep.subr.mxu1 %v15466_v0 }
 0xa39   :  { %v7260_v10 = vpop.f32.mrb[90].mxu0  ;;  %12859 = vmatprep.subr.mxu0 %v15466_v0 }
 0xa3a   :  { %v12813_v22 = vpop.f32.mrb[91].mxu0  ;;  %12852 = vmatmul.mubr.msk.f32.vlgmr.msra.gmra.mrb[98].mxu0 %vm2397_vm3, %v7260_v10 }
 0xa3b   :  { %12860 = vmatpush3.msra.mxu0 %v2395_v4  ;;  %12861 = vmatprep.mubr.msk.f32.mxu0 %vm13579_vm0, %v15466_v0 }
 0xa3c   :  { %12869 = vmatprep.subr.mxu0 %v15466_v0 }
 0xa3d   :  { %v7337_v23 = vpop.f32.mrb[90].mxu1 }
 0xa3e   :  { %v12818_v26 = vpop.f32.mrb[91].mxu1  ;;  %12857 = vmatmul.mubr.msk.f32.vlgmr.msra.gmra.mrb[98].mxu1 %vm2397_vm3, %v7337_v23 }
 0xa3f   :  { %12865 = vmatpush3.msra.mxu1 %v2395_v4  ;;  %12866 = vmatprep.mubr.msk.f32.mxu1 %vm13579_vm0, %v15466_v0 }
 0xa40   :  { %12874 = vmatprep.subr.mxu1 %v15466_v0 }
 0xa41   :  { %v7491_v30 = vpop.f32.mrb[92].mxu1 }
 0xa42   :  { %v7414_v31 = vpop.f32.mrb[92].mxu0  ;;  %v12828_v60 = vpop.f32.mrb[93].mxu1  ;;  %12867 = vmatmul.mubr.msk.f32.vlgmr.msra.gmra.mrb[100].mxu1 %vm2397_vm3, %v7491_v30 }
 0xa43   :  { %v12823_v55 = vpop.f32.mrb[93].mxu0  ;;  %12862 = vmatmul.mubr.msk.f32.vlgmr.msra.gmra.mrb[100].mxu0 %vm2397_vm3, %v7414_v31  ;;  %12875 = vmatpush3.msra.mxu1 %v2395_v4 }
 0xa44   :  { %12870 = vmatpush3.msra.mxu0 %v2395_v4  ;;  %12871 = vmatprep.mubr.msk.f32.mxu0 %vm13579_vm0, %v15466_v0 }
 0xa45   :  { %v7645_v29 = vpop.f32.mrb[94].mxu1  ;;  %12876 = vmatprep.mubr.msk.f32.mxu1 %vm13579_vm0, %v15466_v0  ;;  %12879 = vmatprep.subr.mxu0 %v15466_v0 }
 0xa46   :  { %v7568_v37 = vpop.f32.mrb[94].mxu0  ;;  %v12838_v3 = vpop.f32.mrb[95].mxu1  ;;  %12877 = vmatmul.mubr.msk.f32.vlgmr.msra.gmra.mrb[102].mxu1 %vm2397_vm3, %v7645_v29  ;;  %12884 = vmatprep.subr.mxu1 %v15466_v0 }
 0xa47   :  { %v12833_v45 = vpop.f32.mrb[95].mxu0  ;;  %12872 = vmatmul.mubr.msk.f32.vlgmr.msra.gmra.mrb[102].mxu0 %vm2397_vm3, %v7568_v37  ;;  %12886 = vmatprep.mubr.msk.f32.mxu1 %vm13579_vm0, %v15466_v0 }
 0xa48   :  { %12881 = vmatprep.mubr.msk.f32.mxu0 %vm13579_vm0, %v15466_v0 }
 0xa4a   :  { %12885 = vmatpush3.xpose.msk.msra.mxu1 %vm2397_vm3, %v8322_v52 }
 0xa4b   :  { %12880 = vmatpush3.xpose.msk.msra.mxu0 %vm2397_vm3, %v8244_v41  ;;  %12894 = vmatprep.subr.mxu1 %v15466_v0 }
 0xa4c   :  { %12889 = vmatprep.subr.mxu0 %v15466_v0 }
 0xa4d   :  { %12887 = vmatmul.mubr.msk.f32.vlgmr.msra.gmra.mrb[104].mxu1 %vm2397_vm3, %v8320_v1 }
 0xa4e   :  { %12882 = vmatmul.mubr.msk.f32.vlgmr.msra.gmra.mrb[104].mxu0 %vm2397_vm3, %v8242_v2  ;;  %12895 = vmatpush3.xpose.msk.msra.mxu1 %vm2397_vm3, %v8478_v19 }
 0xa4f   :  { %12890 = vmatpush3.xpose.msk.msra.mxu0 %vm2397_vm3, %v8400_v15  ;;  %12891 = vmatprep.mubr.msk.f32.mxu0 %vm13579_vm0, %v15466_v0 }
 0xa50   :  { %12896 = vmatprep.mubr.msk.f32.mxu1 %vm13579_vm0, %v15466_v0  ;;  %12899 = vmatprep.subr.mxu0 %v15466_v0 }
 0xa51   :  { %12897 = vmatmul.mubr.msk.f32.vlgmr.msra.gmra.mrb[106].mxu1 %vm2397_vm3, %v8476_v14  ;;  %12904 = vmatprep.subr.mxu1 %v15466_v0 }
 0xa52   :  { %12892 = vmatmul.mubr.msk.f32.vlgmr.msra.gmra.mrb[106].mxu0 %vm2397_vm3, %v8398_v27  ;;  %12905 = vmatpush3.xpose.msk.msra.mxu1 %vm2397_vm3, %v8634_v54 }
 0xa53   :  { %12900 = vmatpush3.xpose.msk.msra.mxu0 %vm2397_vm3, %v8556_v25  ;;  %12901 = vmatprep.mubr.msk.f32.mxu0 %vm13579_vm0, %v15466_v0 }
 0xa54   :  { %12906 = vmatprep.mubr.msk.f32.mxu1 %vm13579_vm0, %v15466_v0  ;;  %12909 = vmatprep.subr.mxu0 %v15466_v0 }
 0xa55   :  { %12907 = vmatmul.mubr.msk.f32.vlgmr.msra.gmra.mrb[108].mxu1 %vm2397_vm3, %v8632_v43  ;;  %12914 = vmatprep.subr.mxu1 %v15466_v0 }
 0xa56   :  { %12902 = vmatmul.mubr.msk.f32.vlgmr.msra.gmra.mrb[108].mxu0 %vm2397_vm3, %v8554_v36  ;;  %12915 = vmatpush3.xpose.msk.msra.mxu1 %vm2397_vm3, %v8790_v13 }
 0xa57   :  { %12910 = vmatpush3.xpose.msk.msra.mxu0 %vm2397_vm3, %v8712_v32  ;;  %12911 = vmatprep.mubr.msk.f32.mxu0 %vm13579_vm0, %v15466_v0 }
 0xa58   :  { %12916 = vmatprep.mubr.msk.f32.mxu1 %vm13579_vm0, %v15466_v0  ;;  %12924 = vmatprep.subr.mxu1 %v15466_v0 }
 0xa59   :  { %12917 = vmatmul.mubr.msk.f32.vlgmr.msra.gmra.mrb[110].mxu1 %vm2397_vm3, %v8788_v53  ;;  %12919 = vmatprep.subr.mxu0 %v15466_v0 }
 0xa5a   :  { %12912 = vmatmul.mubr.msk.f32.vlgmr.msra.gmra.mrb[110].mxu0 %vm2397_vm3, %v8710_v20  ;;  %12926 = vmatprep.mubr.msk.f32.mxu1 %vm13579_vm0, %v15466_v0 }
 0xa5b   :  { %12921 = vmatprep.mubr.msk.f32.mxu0 %vm13579_vm0, %v15466_v0 }
 0xb08   :  { %v7791_v44 = vpop.f32.mrb[96].mxu1 }
 0xb09   :  { %v7718_v33 = vpop.f32.mrb[96].mxu0  ;;  %v14909_v63 = vadd.f32 %v7791_v44, %v14649_v42  ;;  %v12848_v28 = vpop.f32.mrb[97].mxu1 }
 0xb0a   :  { %v14912_v49 = vadd.f32 %v7718_v33, %v14651_v58  ;;  %v12843_v16 = vpop.f32.mrb[97].mxu0 }
 0xb0d   :  { %v7864_v8 = vpop.f32.mrb[98].mxu0 }
 0xb0e   :  { %v14915_v12 = vadd.f32 %v7864_v8, %v14655_v9  ;;  %v12853_v4 = vpop.f32.mrb[99].mxu0 }
 0xb11   :  { %v7937_v52 = vpop.f32.mrb[98].mxu1 }
 0xb12   :  { %v14918_v41 = vadd.f32 %v7937_v52, %v14653_v57  ;;  %v12858_v1 = vpop.f32.mrb[99].mxu1 }
 0xb15   :  { %v8083_v2 = vpop.f32.mrb[100].mxu1 }
 0xb16   :  { %v8010_v6 = vpop.f32.mrb[100].mxu0  ;;  %v14921_v42 = vadd.f32 %v8083_v2, %v14657_v56  ;;  %v12868_v7 = vpop.f32.mrb[101].mxu1 }
 0xb17   :  { %v14924_v58 = vadd.f32 %v8010_v6, %v14659_v40  ;;  %v12863_v11 = vpop.f32.mrb[101].mxu0 }
 0xb19   :  { %v8229_v18 = vpop.f32.mrb[102].mxu1 }
 0xb1a   :  { %v8156_v19 = vpop.f32.mrb[102].mxu0  ;;  %v14927_v9 = vadd.f32 %v8229_v18, %v14661_v5  ;;  %v12878_v10 = vpop.f32.mrb[103].mxu1 }
 0xb1b   :  { %v14930_v57 = vadd.f32 %v8156_v19, %v14663_v17  ;;  %v12873_v22 = vpop.f32.mrb[103].mxu0 }
 0xb20   :  { %v8393_v15 = vpop.f32.mrb[104].mxu1 }
 0xb21   :  { %v8315_v23 = vpop.f32.mrb[104].mxu0  ;;  %v8866_v26 = vmul.f32 0.35355338, %v8393_v15  ;;  %v12888_v56 = vpop.f32.mrb[105].mxu1 }
 0xb22   :  { %v8865_v14 = vmul.f32 0.35355338, %v8315_v23  ;;  %v12883_v27 = vpop.f32.mrb[105].mxu0 }
 0xb23   :  { %v8874_v40 = vsel %vm2386_vm7, %v8866_v26, -1e+30 }
 0xb24   :  { %v8873_v30 = vsel %vm2385_vm5, %v8865_v14, -1e+30  ;;  %v8549_v31 = vpop.f32.mrb[106].mxu1  ;;  %v8884_v5 = vsel %vm3022_vm6, %v8874_v40, -inf }
 0xb25   :  { %v8471_v60 = vpop.f32.mrb[106].mxu0  ;;  %8885 = vmax.xlane.f32.xlu1 %v8884_v5  ;;  %v12898_v17 = vpop.f32.mrb[107].mxu1  ;;  %v8881_v55 = vsel %vm3022_vm6, %v8873_v30, -inf  ;;  %v8868_v29 = vmul.f32 0.35355338, %v8549_v31 }
 0xb26   :  { %v8867_v54 = vmul.f32 0.35355338, %v8471_v60  ;;  %8882 = vmax.xlane.f32.xlu0 %v8881_v55  ;;  %v12893_v37 = vpop.f32.mrb[107].mxu0 }
 0xb27   :  { %v14943_v32 = vsel %vm2388_vm9, %v8868_v29, -1e+30 }
 0xb28   :  { %v8875_v3 = vsel %vm2387_vm8, %v8867_v54, -1e+30  ;;  %v8705_v25 = vpop.f32.mrb[108].mxu1  ;;  %v8890_v4 = vsel %vm3022_vm6, %v14943_v32, -inf }
 0xb29   :  { %v8627_v45 = vpop.f32.mrb[108].mxu0  ;;  %v8870_v43 = vmul.f32 0.35355338, %v8705_v25  ;;  %v12908_v36 = vpop.f32.mrb[109].mxu1  ;;  %v8887_v13 = vsel %vm3022_vm6, %v8875_v3, -inf }
 0xb2a   :  { %v8869_v53 = vmul.f32 0.35355338, %v8627_v45  ;;  %8888 = vmax.xlane.f32.xlu0 %v8887_v13  ;;  %v12903_v20 = vpop.f32.mrb[109].mxu0  ;;  %v15479_v45 = vld [vmem:[#allocation2_spill] sm:$0xff] }
 0xb2b   :  { %v14947_v44 = vsel %vm2390_vm10, %v8870_v43, -1e+30 }
 0xb2c   :  { %v8861_v33 = vpop.f32.mrb[110].mxu1  ;;  %v8896_v28 = vsel %vm3022_vm6, %v14947_v44, -inf  ;;  %v8877_v52 = vsel %vm15475_vm14, %v8869_v53, -1e+30 }
 0xb2d   :  { %v8783_v16 = vpop.f32.mrb[110].mxu0  ;;  %8897 = vmax.xlane.f32.xlu1 %v8896_v28  ;;  %v12918_v8 = vpop.f32.mrb[111].mxu1  ;;  %v8893_v6 = vsel %vm3022_vm6, %v8877_v52, -inf  ;;  %v8872_v18 = vmul.f32 0.35355338, %v8861_v33 }
 0xb2e   :  { %v8871_v1 = vmul.f32 0.35355338, %v8783_v16  ;;  %8891 = vmax.xlane.f32.xlu0 %v8890_v4  ;;  %v12913_v2 = vpop.f32.mrb[111].mxu0 }
 0xb2f   :  { %v8880_v19 = vsel %vm15477_vm2, %v8872_v18, -1e+30 }
 0xb30   :  { %v8879_v7 = vsel %vm15476_vm15, %v8871_v1, -1e+30  ;;  %v8902_v10 = vsel %vm3022_vm6, %v8880_v19, -inf }
 0xb31   :  { %v8899_v11 = vsel %vm3022_vm6, %v8879_v7, -inf }
 0xb32   :  { %8894 = vmax.xlane.f32.xlu0 %v8893_v6 }
 0xb36   :  { %8900 = vmax.xlane.f32.xlu0 %v8899_v11 }
 0xb3e   :  { %9070 = vrot.lane.b32.xlu1 %v14049_v35, %s13583_s18 }
 0xb42   :  { %9147 = vrot.lane.b32.xlu1 %v14057_v38, %s13583_s18 }
 0xb4c   :  { %8993 = vrot.lane.b32.xlu0 %v14047_v34, %s13583_s18 }
 0xb66   :  { %8903 = vmax.xlane.f32.xlu1 %v8902_v10 }
 0xb77   :  { %9224 = vrot.lane.b32.xlu1 %v14059_v39, %s13583_s18 }
 0xbb2   :  { %v8886_v22 = vpop.xlane.xlu1 %8885 }
 0xbb3   :  { %v8906_v15 = vsub.f32 %v8874_v40, %v8886_v22  ;;  %v8883_v23 = vpop.xlane.xlu0 %8882 }
 0xbb4   :  { %v8905_v35 = vsub.f32 %v8873_v30, %v8883_v23 }
 0xbb5   :  { %v8915_v26 = vmul.f32 1.442695, %v8906_v15 }
 0xbb6   :  { %v8913_v56 = vmul.f32 1.442695, %v8905_v35 }
 0xbb7   :  { %13546 = vpow2.f32 %v8915_v26  ;;  %v8889_v38 = vpop.xlane.xlu0 %8888 }
 0xbb8   :  { %13548 = vpow2.f32 %v8913_v56  ;;  %v8907_v34 = vsub.f32 %v8875_v3, %v8889_v38 }
 0xbba   :  { %v8917_v14 = vmul.f32 1.442695, %v8907_v34  ;;  %v8898_v27 = vpop.xlane.xlu1 %8897 }
 0xbbb   :  { %v8892_v31 = vpop.xlane.xlu0 %8891  ;;  %v8910_v61 = vsub.f32 %v14947_v44, %v8898_v27 }
 0xbbc   :  { %13550 = vpow2.f32 %v8917_v14  ;;  %v8908_v43 = vsub.f32 %v14943_v32, %v8892_v31 }
 0xbbd   :  { %v8923_v53 = vmul.f32 1.442695, %v8910_v61 }
 0xbbe   :  { %v9071_v5 = vpop.permute.xlu1 %9070  ;;  %v8919_v36 = vmul.f32 1.442695, %v8908_v43 }
 0xbbf   :  { %v8895_v60 = vpop.xlane.xlu0 %8894  ;;  %12925 = vmatpush3.msk.msra.mxu1 %vm3139_vm4, %v9071_v5 }
 0xbc0   :  { %12934 = vmatprep.subr.mxu1 %v15466_v0  ;;  %v8909_v13 = vsub.f32 %v8877_v52, %v8895_v60  ;;  %13552 = vpow2.f32 %v8919_v36 }
 0xbc1   :  { %v13547_v39 = vpop.eup %13546  ;;  %13554 = vpow2.f32 %v8923_v53 }
 0xbc2   :  { %v13549_v40 = vpop.eup %13548  ;;  %v14974_v30 = vsel %vm2386_vm7, %v13547_v39, 0.0  ;;  %v8921_v20 = vmul.f32 1.442695, %v8909_v13  ;;  %v9148_v16 = vpop.permute.xlu1 %9147  ;;  %vm15481_vm7 = vmmov %vm15476_vm15 }
 0xbc3   :  { %v8901_v17 = vpop.xlane.xlu0 %8900  ;;  %v8940_v55 = vsel %vm3022_vm6, %v14974_v30, 0.0  ;;  %v14980_v54 = vsel %vm2385_vm5, %v13549_v40, 0.0  ;;  %vm15480_vm5 = vmmov %vm15475_vm14 }
 0xbc4   :  { %8941 = vadd.xlane.f32.xlu1 %v8940_v55  ;;  %v8937_v29 = vsel %vm3022_vm6, %v14980_v54, 0.0  ;;  %v8911_v33 = vsub.f32 %v8879_v7, %v8901_v17  ;;  %13556 = vpow2.f32 %v8921_v20 }
 0xbc5   :  { %8938 = vadd.xlane.f32.xlu0 %v8937_v29 }
 0xbc6   :  { %v13551_v37 = vpop.eup %13550  ;;  %v8925_v28 = vmul.f32 1.442695, %v8911_v33 }
 0xbc7   :  { %v8994_v3 = vpop.permute.xlu0 %8993  ;;  %v14986_v51 = vsel %vm2387_vm8, %v13551_v37, 0.0  ;;  %vm15482_vm8 = vmmov %vm15477_vm2 }
 0xbc8   :  { %12920 = vmatpush3.msk.msra.mxu0 %vm3139_vm4, %v8994_v3  ;;  %v8943_v25 = vsel %vm3022_vm6, %v14986_v51, 0.0  ;;  %13558 = vpow2.f32 %v8925_v28 }
 0xbc9   :  { %8944 = vadd.xlane.f32.xlu0 %v8943_v25  ;;  %12929 = vmatprep.subr.mxu0 %v15466_v0 }
 0xbca   :  { %v13553_v8 = vpop.eup %13552 }
 0xbcb   :  { %v15000_v2 = vsel %vm2388_vm9, %v13553_v8, 0.0  ;;  %v13555_v32 = vpop.eup %13554  ;;  %v15079_v8 = vld [vmem:[%s15439_s8 + $0x18] sm:$0xff] }
 0xbcc   :  { %v8946_v52 = vsel %vm3022_vm6, %v15000_v2, 0.0  ;;  %v15006_v7 = vsel %vm2390_vm10, %v13555_v32, 0.0  ;;  %v10218_v32 = vld [vmem:[%s15440_s2 + $0x8] sm:$0x7] }
 0xbcd   :  { %v8952_v62 = vsel %vm3022_vm6, %v15006_v7, 0.0  ;;  %vm10226_vm2 = vcmp.ne.f32.partialorder %v10218_v32, 0.0 }
 0xbce   :  { %v13557_v6 = vpop.eup %13556 }
 0xbcf   :  { %v15010_v11 = vsel %vm15480_vm5, %v13557_v6, 0.0 }
 0xbd2   :  { %v13559_v18 = vpop.eup %13558 }
 0xbd3   :  { %v15018_v10 = vsel %vm15481_vm7, %v13559_v18, 0.0 }
 0xbd4   :  { %v8955_v21 = vsel %vm3022_vm6, %v15018_v10, 0.0 }
 0xbd5   :  { %9378 = vrot.lane.b32.xlu1 %v15478_v50, %s13583_s18 }
 0xbdf   :  { %9301 = vrot.lane.b32.xlu0 %v15479_v45, %s13583_s18 }
 0xbf3   :  { %v8904_v4 = vpop.xlane.xlu1 %8903 }
 0xbf4   :  { %v8912_v1 = vsub.f32 %v8880_v19, %v8904_v4  ;;  %v8949_v19 = vsel %vm3022_vm6, %v15010_v11, 0.0  ;;  %v13584_v4 = vmov 0  }
 0xbf5   :  { %13449 = vset.pattern.permute.xlu1 %v13584_v4  ;;  %13448 = vset.pattern.permute.xlu0 %v13584_v4  ;;  %v10234_v18 = vsel %vm10226_vm2, 1, %v13584_v4 }
 0xbf6   :  { %v8927_v44 = vmul.f32 1.442695, %v8912_v1  ;;  %v10217_v1 = vld [vmem:[%s15440_s2 + $0x4] sm:$0x7] }
 0xbf7   :  { %v9225_v48 = vpop.permute.xlu1 %9224 }
 0xbf8   :  { %13560 = vpow2.f32 %v8927_v44  ;;  %v10219_v44 = vld [vmem:[%s15440_s2 + $0xc] sm:$0x7] }
 0xbf9   :  { %8947 = vadd.xlane.f32.xlu1 %v8946_v52  ;;  %vm10227_vm5 = vcmp.ne.f32.partialorder %v10219_v44, 0.0 }
 0xbfd   :  { %8953 = vadd.xlane.f32.xlu1 %v8952_v62  ;;  %v10235_v62 = vsel %vm10227_vm5, 1, %v13584_v4 }
 0xbfe   :  { %8950 = vadd.xlane.f32.xlu0 %v8949_v19  ;;  %v10222_v19 = vld [vmem:[%s15440_s2 + $0x18] sm:$0x7] }
 0xc02   :  { %v13561_v22 = vpop.eup %13560  ;;  %8956 = vadd.xlane.f32.xlu0 %v8955_v21 }
 0xc03   :  { %v15024_v24 = vsel %vm15482_vm8, %v13561_v22, 0.0 }
 0xc04   :  { %v8958_v15 = vsel %vm3022_vm6, %v15024_v24, 0.0 }
 0xc05   :  { %8959 = vadd.xlane.f32.xlu1 %v8958_v15 }
 0xc16   :  { %9532 = vrot.lane.b32.xlu1 %v14067_v47, %s13583_s18 }
 0xc18   :  { %9455 = vrot.lane.b32.xlu0 %v14065_v46, %s13583_s18 }
 0xc51   :  { %v8942_v23 = vpop.xlane.xlu1 %8941 }
 0xc52   :  { %vm8962_vm9 = vcmp.eq.f32.partialorder %v8942_v23, 0.0  ;;  %v8939_v35 = vpop.xlane.xlu0 %8938 }
 0xc53   :  { %v8970_v26 = vsel %vm8962_vm9, 1.0, %v8942_v23  ;;  %vm8961_vm10 = vcmp.eq.f32.partialorder %v8939_v35, 0.0  ;;  %vm10230_vm9 = vcmp.ne.f32.partialorder %v10222_v19, 0.0 }
 0xc54   :  { %13562 = vrcp.f32 %v8970_v26  ;;  %v8969_v59 = vsel %vm8961_vm10, 1.0, %v8939_v35 }
 0xc55   :  { %13564 = vrcp.f32 %v8969_v59  ;;  %v9379_v60 = vpop.permute.xlu1 %9378 }
 0xc56   :  { %v8945_v56 = vpop.xlane.xlu0 %8944 }
 0xc57   :  { %vm8963_vm1 = vcmp.eq.f32.partialorder %v8945_v56, 0.0 }
 0xc58   :  { %v8971_v38 = vsel %vm8963_vm1, 1.0, %v8945_v56 }
 0xc59   :  { %13566 = vrcp.f32 %v8971_v38 }
 0xc5a   :  { %v9302_v5 = vpop.permute.xlu0 %9301 }
 0xc5e   :  { %v13563_v34 = vpop.eup %13562 }
 0xc5f   :  { %v13565_v14 = vpop.eup %13564  ;;  %v8980_v47 = vmul.f32 %v13563_v34, %v14974_v30 }
 0xc60   :  { %v8978_v27 = vmul.f32 %v13565_v14, %v14980_v54 }
 0xc61   :  { %12927 = vmatmul.mubr.msk.f32.vlgmr.msra.gmra.mrb[112].mxu1 %vm3135_vm13, %v8980_v47  ;;  %v10280_v47 = vld [vmem:[%s15441_s10] sm:$0xff] }
 0xc62   :  { %12922 = vmatmul.mubr.msk.f32.vlgmr.msra.gmra.mrb[112].mxu0 %vm3135_vm13, %v8978_v27  ;;  %12935 = vmatpush3.msk.msra.mxu1 %vm3139_vm4, %v9225_v48  ;;  %v10281_v27 = vld [vmem:[%s15441_s10 + $0x8] sm:$0xff] }
 0xc63   :  { %v13567_v46 = vpop.eup %13566  ;;  %12930 = vmatpush3.msk.msra.mxu0 %vm3139_vm4, %v9148_v16  ;;  %12931 = vmatprep.mubr.msk.f32.mxu0 %vm13579_vm0, %v15466_v0 }
 0xc64   :  { %12939 = vmatprep.subr.mxu0 %v15466_v0  ;;  %v8982_v31 = vmul.f32 %v13567_v46, %v14986_v51  ;;  %12936 = vmatprep.mubr.msk.f32.mxu1 %vm13579_vm0, %v15466_v0 }
 0xc65   :  { %12944 = vmatprep.subr.mxu1 %v15466_v0 }
 0xc66   :  { %12932 = vmatmul.mubr.msk.f32.vlgmr.msra.gmra.mrb[114].mxu0 %vm3135_vm13, %v8982_v31 }
 0xc67   :  { %12940 = vmatpush3.msk.msra.mxu0 %vm3139_vm4, %v9302_v5  ;;  %12941 = vmatprep.mubr.msk.f32.mxu0 %vm13579_vm0, %v15466_v0 }
 0xc68   :  { %12949 = vmatprep.subr.mxu0 %v15466_v0 }
 0xc86   :  { %v8948_v39 = vpop.xlane.xlu1 %8947 }
 0xc87   :  { %vm8964_vm6 = vcmp.eq.f32.partialorder %v8948_v39, 0.0 }
 0xc88   :  { %v8972_v40 = vsel %vm8964_vm6, 1.0, %v8948_v39  ;;  %v15483_v39 = vmov 0.0|0.0   ;;  %vm15484_vm6 = vcmask 261120  }
 0xc89   :  { %13568 = vrcp.f32 %v8972_v40 }
 0xc8a   :  { %v8954_v30 = vpop.xlane.xlu1 %8953 }
 0xc8b   :  { %vm8966_vm11 = vcmp.eq.f32.partialorder %v8954_v30, 0.0  ;;  %v8951_v17 = vpop.xlane.xlu0 %8950 }
 0xc8c   :  { %v8974_v55 = vsel %vm8966_vm11, 1.0, %v8954_v30  ;;  %vm8965_vm12 = vcmp.eq.f32.partialorder %v8951_v17, 0.0  ;;  %vm15485_vm11 = vmmov %vm15484_vm6 }
 0xc8d   :  { %13570 = vrcp.f32 %v8974_v55  ;;  %v8973_v54 = vsel %vm8965_vm12, 1.0, %v8951_v17 }
 0xc8e   :  { %13572 = vrcp.f32 %v8973_v54  ;;  %v10282_v54 = vld [vmem:[%s15441_s10 + $0x10] sm:$0xff] }
 0xc8f   :  { %v8957_v29 = vpop.xlane.xlu0 %8956 }
 0xc90   :  { %vm8967_vm14 = vcmp.eq.f32.partialorder %v8957_v29, 0.0 }
 0xc91   :  { %v8975_v37 = vsel %vm8967_vm14, 1.0, %v8957_v29  ;;  %v10283_v29 = vld [vmem:[%s15441_s10 + $0x18] sm:$0xff]  ;;  %vm15486_vm14 = vmmov %vm15484_vm6 }
 0xc92   :  { %13574 = vrcp.f32 %v8975_v37  ;;  %v8960_v3 = vpop.xlane.xlu1 %8959  ;;  %v15163_v37 = vpack.c.bf16 %v10283_v29, %v10282_v54 }
 0xc93   :  { %v13569_v51 = vpop.eup %13568  ;;  %vm8968_vm15 = vcmp.eq.f32.partialorder %v8960_v3, 0.0  ;;  %v9456_v53 = vpop.permute.xlu0 %9455 }
 0xc94   :  { %v8976_v25 = vsel %vm8968_vm15, 1.0, %v8960_v3  ;;  %v8984_v50 = vmul.f32 %v13569_v51, %v15000_v2  ;;  %v10216_v2 = vld [vmem:[%s15440_s2] sm:$0x7] }
 0xc95   :  { %13576 = vrcp.f32 %v8976_v25  ;;  %v15172_v51 = vld [vmem:[%s15442_s9] ss:$0 sm:$0xff] }
 0xc96   :  { %12937 = vmatmul.mubr.msk.f32.vlgmr.msra.gmra.mrb[114].mxu1 %vm3135_vm13, %v8984_v50  ;;  %v9533_v13 = vpop.permute.xlu1 %9532 }
 0xc97   :  { %v13571_v45 = vpop.eup %13570  ;;  %12945 = vmatpush3.msk.msra.mxu1 %vm3139_vm4, %v9379_v60  ;;  %12946 = vmatprep.mubr.msk.f32.mxu1 %vm13579_vm0, %v15466_v0  ;;  %v15141_v60 = vpack.c.bf16 %v10281_v27, %v10280_v47 }
 0xc98   :  { %v13573_v43 = vpop.eup %13572  ;;  %12954 = vmatprep.subr.mxu1 %v15466_v0  ;;  %v8988_v61 = vmul.f32 %v13571_v45, %v15006_v7  ;;  %v10220_v7 = vld [vmem:[%s15440_s2 + $0x10] sm:$0x7] }
 0xc99   :  { %v8986_v36 = vmul.f32 %v13573_v43, %v15010_v11  ;;  %v10221_v11 = vld [vmem:[%s15440_s2 + $0x14] sm:$0x7]  ;;  %vm10228_vm7 = vcmp.ne.f32.partialorder %v10220_v7, 0.0 }
 0xc9a   :  { %12947 = vmatmul.mubr.msk.f32.vlgmr.msra.gmra.mrb[116].mxu1 %vm3135_vm13, %v8988_v61  ;;  %vm10229_vm8 = vcmp.ne.f32.partialorder %v10221_v11, 0.0  ;;  %v10236_v21 = vsel %vm10228_vm7, 1, %v13584_v4 }
 0xc9b   :  { %12942 = vmatmul.mubr.msk.f32.vlgmr.msra.gmra.mrb[116].mxu0 %vm3135_vm13, %v8986_v36  ;;  %12955 = vmatpush3.msk.msra.mxu1 %vm3139_vm4, %v9533_v13  ;;  %v10237_v22 = vsel %vm10229_vm8, 1, %v13584_v4 }
 0xc9c   :  { %v13575_v20 = vpop.eup %13574  ;;  %12950 = vmatpush3.msk.msra.mxu0 %vm3139_vm4, %v9456_v53  ;;  %12951 = vmatprep.mubr.msk.f32.mxu0 %vm13579_vm0, %v15466_v0  ;;  %vm10225_vm4 = vcmp.ne.f32.partialorder %v10217_v1, 0.0 }
 0xc9d   :  { %v8990_v33 = vmul.f32 %v13575_v20, %v15018_v10  ;;  %12956 = vmatprep.mubr.msk.f32.mxu1 %vm13579_vm0, %v15466_v0  ;;  %12959 = vmatprep.subr.mxu0 %v15466_v0  ;;  %v10233_v6 = vsel %vm10225_vm4, 1, %v13584_v4  ;;  %v10223_v10 = vld [vmem:[%s15440_s2 + $0x1c] sm:$0x7]  ;;  %vm15487_vm4 = vmmov %vm15484_vm6 }
 0xc9e   :  { %12964 = vmatprep.subr.mxu1 %v15466_v0  ;;  %10244 = vperm.xlu1 %13449, %v10233_v6   ;;  %vm10231_vm10 = vcmp.ne.f32.partialorder %v10223_v10, 0.0  ;;  %vm15488_vm2 = vmmov %vm15487_vm4 }
 0xc9f   :  { %v13577_v28 = vpop.eup %13576  ;;  %12952 = vmatmul.mubr.msk.f32.vlgmr.msra.gmra.mrb[118].mxu0 %vm3135_vm13, %v8990_v33  ;;  %v10239_v15 = vsel %vm10231_vm10, 1, %v13584_v4  ;;  %vm15489_vm7 = vmmov %vm15488_vm2 }
 0xca0   :  { %v8992_v16 = vmul.f32 %v13577_v28, %v15024_v24  ;;  %12961 = vmatprep.mubr.msk.f32.mxu0 %vm13579_vm0, %v15466_v0  ;;  %12960 = vmatpush3.msra.mxu0 %v15079_v8  ;;  %v10238_v24 = vsel %vm10230_vm9, 1, %v13584_v4  ;;  %vm15490_vm9 = vmmov %vm15488_vm2 }
 0xca1   :  { %12969 = vmatprep.subr.mxu0 %v15466_v0 }
 0xca2   :  { %12957 = vmatmul.mubr.msk.f32.vlgmr.msra.gmra.mrb[118].mxu1 %vm3135_vm13, %v8992_v16  ;;  %vm10224_vm13 = vcmp.ne.f32.partialorder %v10216_v2, 0.0  ;;  %10247 = vperm.xlu1 %13449, %v10234_v18  }
 0xca3   :  { %12966 = vmatprep.mubr.msk.f32.mxu1 %vm13579_vm0, %v15466_v0  ;;  %12965 = vmatpush3.msra.mxu1 %v15079_v8  ;;  %v10232_v52 = vsel %vm10224_vm13, 1, %v13584_v4 }
 0xca4   :  { %12974 = vmatprep.subr.mxu1 %v15466_v0  ;;  %10241 = vperm.xlu0 %13448, %v10232_v52  }
 0xca6   :  { %10253 = vperm.xlu1 %13449, %v10236_v21  }
 0xca8   :  { %10250 = vperm.xlu0 %13448, %v10235_v62  }
 0xcaa   :  { %10259 = vperm.xlu1 %13449, %v10238_v24  }
 0xcac   :  { %10256 = vperm.xlu0 %13448, %v10237_v22  }
 0xcb0   :  { %10262 = vperm.xlu0 %13448, %v10239_v15  }
 0xd1d   :  { %v10245_v3 = vpop.permute.xlu1 %10244 }
 0xd23   :  { %v10242_v50 = vpop.permute.xlu0 %10241 }
 0xd24   :  { %vm10264_vm1 = vcmp.eq.s32.totalorder %v10242_v50, 1 }
 0xd27   :  { %v10251_v44 = vpop.permute.xlu0 %10250 }
 0xd28   :  { %vm10267_vm15 = vcmp.eq.s32.totalorder %v10251_v44, 1 }
 0xd34   :  { %v9143_v48 = vpop.f32.mrb[112].mxu1 }
 0xd35   :  { %v9066_v23 = vpop.f32.mrb[112].mxu0  ;;  %v12928_v35 = vpop.f32.mrb[113].mxu1  ;;  %12967 = vmatmul.mubr.msk.f32.vlgmr.msra.gmra.mrb[120].mxu1 %vm2397_vm3, %v9143_v48 }
 0xd36   :  { %v12923_v26 = vpop.f32.mrb[113].mxu0  ;;  %12962 = vmatmul.mubr.msk.f32.vlgmr.msra.gmra.mrb[120].mxu0 %vm2397_vm3, %v9066_v23  ;;  %12975 = vmatpush3.msra.mxu1 %v15079_v8  ;;  %v10257_v48 = vpop.permute.xlu0 %10256 }
 0xd37   :  { %12970 = vmatpush3.msra.mxu0 %v15079_v8  ;;  %12971 = vmatprep.mubr.msk.f32.mxu0 %vm13579_vm0, %v15466_v0  ;;  %vm10269_vm5 = vcmp.eq.s32.totalorder %v10257_v48, 1 }
 0xd38   :  { %12976 = vmatprep.mubr.msk.f32.mxu1 %vm13579_vm0, %v15466_v0  ;;  %12979 = vmatprep.subr.mxu0 %v15466_v0 }
 0xd39   :  { %v9220_v59 = vpop.f32.mrb[114].mxu0  ;;  %12984 = vmatprep.subr.mxu1 %v15466_v0 }
 0xd3a   :  { %v12933_v56 = vpop.f32.mrb[115].mxu0  ;;  %12972 = vmatmul.mubr.msk.f32.vlgmr.msra.gmra.mrb[122].mxu0 %vm2397_vm3, %v9220_v59 }
 0xd3b   :  { %12980 = vmatpush3.msra.mxu0 %v15079_v8  ;;  %12981 = vmatprep.mubr.msk.f32.mxu0 %vm13579_vm0, %v15466_v0  ;;  %v10884_v56 = vld [vmem:[%s15443_s12 + $0x8] sm:$0xff] }
 0xd3c   :  { %12989 = vmatprep.subr.mxu0 %v15466_v0 }
 0xd69   :  { %v9297_v38 = vpop.f32.mrb[114].mxu1 }
 0xd6a   :  { %v12938_v34 = vpop.f32.mrb[115].mxu1  ;;  %12977 = vmatmul.mubr.msk.f32.vlgmr.msra.gmra.mrb[122].mxu1 %vm2397_vm3, %v9297_v38 }
 0xd6b   :  { %12985 = vmatpush3.msra.mxu1 %v15079_v8  ;;  %12986 = vmatprep.mubr.msk.f32.mxu1 %vm13579_vm0, %v15466_v0 }
 0xd6c   :  { %12994 = vmatprep.subr.mxu1 %v15466_v0 }
 0xd6d   :  { %v9451_v14 = vpop.f32.mrb[116].mxu1 }
 0xd6e   :  { %v9374_v46 = vpop.f32.mrb[116].mxu0  ;;  %v12948_v31 = vpop.f32.mrb[117].mxu1  ;;  %12987 = vmatmul.mubr.msk.f32.vlgmr.msra.gmra.mrb[124].mxu1 %vm2397_vm3, %v9451_v14 }
 0xd6f   :  { %v12943_v5 = vpop.f32.mrb[117].mxu0  ;;  %12982 = vmatmul.mubr.msk.f32.vlgmr.msra.gmra.mrb[124].mxu0 %vm2397_vm3, %v9374_v46  ;;  %12995 = vmatpush3.msra.mxu1 %v15079_v8  ;;  %v10263_v14 = vpop.permute.xlu0 %10262  ;;  %v10885_v31 = vld [vmem:[%s15443_s12 + $0x10] sm:$0xff] }
 0xd70   :  { %12990 = vmatpush3.msra.mxu0 %v15079_v8  ;;  %12991 = vmatprep.mubr.msk.f32.mxu0 %vm13579_vm0, %v15466_v0  ;;  %vm10271_vm10 = vcmp.eq.s32.totalorder %v10263_v14, 1  ;;  %v10886_v5 = vld [vmem:[%s15443_s12 + $0x18] sm:$0xff] }
 0xd71   :  { %12996 = vmatprep.mubr.msk.f32.mxu1 %vm13579_vm0, %v15466_v0  ;;  %13343 = vmatprep.subr.bf16.mxu0 %v15483_v39 }
 0xd72   :  { %v9528_v40 = vpop.f32.mrb[118].mxu0  ;;  %13349 = vmatprep.subr.bf16.mxu1 %v15483_v39 }
 0xd73   :  { %v12953_v30 = vpop.f32.mrb[119].mxu0  ;;  %12992 = vmatmul.mubr.msk.f32.vlgmr.msra.gmra.mrb[126].mxu0 %vm2397_vm3, %v9528_v40  ;;  %v15265_v40 = vld [vmem:[%s15444_s11] ss:$0 sm:$0xff] }
 0xd74   :  { %13345 = vmatpush3.bf16.msra.mxu0 %v15141_v60  ;;  %13007 = vmatprep.mubr.msk.f32.mxu0 %vm13579_vm0, %v15466_v0 }
 0xd75   :  { %v9605_v17 = vpop.f32.mrb[118].mxu1  ;;  %13346 = vmatprep.subr.bf16.mxu0 %v15483_v39 }
 0xd76   :  { %v12958_v55 = vpop.f32.mrb[119].mxu1  ;;  %12997 = vmatmul.mubr.msk.f32.vlgmr.msra.gmra.mrb[126].mxu1 %vm2397_vm3, %v9605_v17  ;;  %vm10265_vm3 = vcmp.eq.s32.totalorder %v10245_v3, 1 }
 0xd77   :  { %13351 = vmatpush3.bf16.msra.mxu1 %v15141_v60  ;;  %13018 = vmatprep.mubr.msk.f32.mxu1 %vm13579_vm0, %v15466_v0 }
 0xd78   :  { %13352 = vmatprep.subr.bf16.mxu1 %v15483_v39  ;;  %13348 = vmatpush3.bf16.msra.mxu0 %v15163_v37 }
 0xd79   :  { %13355 = vmatprep.subr.bf16.mxu0 %v15483_v39 }
 0xd7b   :  { %13354 = vmatpush3.bf16.msra.mxu1 %v15163_v37 }
 0xd7c   :  { %13361 = vmatprep.subr.bf16.mxu1 %v15483_v39 }
 0xe08   :  { %v9751_v25 = vpop.f32.mrb[120].mxu1 }
 0xe09   :  { %v9678_v45 = vpop.f32.mrb[120].mxu0  ;;  %v10194_v43 = vadd.f32 %v9751_v25, %v14909_v63  ;;  %v12968_v61 = vpop.f32.mrb[121].mxu1 }
 0xe0a   :  { %v10193_v36 = vadd.f32 %v9678_v45, %v14912_v49  ;;  %v12963_v13 = vpop.f32.mrb[121].mxu0  ;;  %v10248_v63 = vpop.permute.xlu1 %10247 }
 0xe0b   :  { %v10209_v53 = vadd.f32 %v15172_v51, %v10194_v43  ;;  %vm10266_vm12 = vcmp.eq.s32.totalorder %v10248_v63, 1 }
 0xe0c   :  { %v10208_v20 = vadd.f32 %v15172_v51, %v10193_v36 }
 0xe0d   :  { %v10273_v33 = vsel %vm10265_vm3, 0.0, %v10209_v53  ;;  %v9824_v28 = vpop.f32.mrb[122].mxu0  ;;  %vm15491_vm3 = vmmov %vm15488_vm2 }
 0xe0e   :  { %v10272_v16 = vsel %vm10264_vm1, 0.0, %v10208_v20  ;;  %v10195_v8 = vadd.f32 %v9824_v28, %v14915_v12  ;;  %v12973_v4 = vpop.f32.mrb[123].mxu0  ;;  %13019 = vmatmul.mubr.msk.f32.vlgmr.msra.gmra.mrb[128].mxu1 %vm15484_vm6, %v10273_v33  ;;  %vm15492_vm1 = vmmov %vm15488_vm2 }
 0xe0f   :  { %13008 = vmatmul.mubr.msk.f32.vlgmr.msra.gmra.mrb[128].mxu0 %vm15485_vm11, %v10272_v16  ;;  %13363 = vmatpush3.bf16.msra.mxu1 %v15141_v60  ;;  %vm15493_vm6 = vmmov %vm15492_vm1 }
 0xe10   :  { %13357 = vmatpush3.bf16.msra.mxu0 %v15141_v60  ;;  %13029 = vmatprep.mubr.msk.f32.mxu0 %vm13579_vm0, %v15466_v0  ;;  %v10210_v49 = vadd.f32 %v15172_v51, %v10195_v8  ;;  %vm15494_vm11 = vmmov %vm15492_vm1 }
 0xe11   :  { %13358 = vmatprep.subr.bf16.mxu0 %v15483_v39  ;;  %13364 = vmatprep.subr.bf16.mxu1 %v15483_v39 }
 0xe12   :  { %13040 = vmatprep.mubr.msk.f32.mxu1 %vm13579_vm0, %v15466_v0  ;;  %v10274_v12 = vsel %vm10266_vm12, 0.0, %v10210_v49  ;;  %vm15495_vm12 = vmmov %vm15492_vm1 }
 0xe13   :  { %13366 = vmatpush3.bf16.msra.mxu1 %v15163_v37 }
 0xe14   :  { %13360 = vmatpush3.bf16.msra.mxu0 %v15163_v37  ;;  %13373 = vmatprep.subr.bf16.mxu1 %v15483_v39 }
 0xe15   :  { %13367 = vmatprep.subr.bf16.mxu0 %v15483_v39 }
 0xe17   :  { %13030 = vmatmul.mubr.msk.f32.vlgmr.msra.gmra.mrb[130].mxu0 %vm15486_vm14, %v10274_v12  ;;  %vm15496_vm14 = vmmov %vm15492_vm1 }
 0xe18   :  { %13369 = vmatpush3.bf16.msra.mxu0 %v15141_v60  ;;  %13051 = vmatprep.mubr.msk.f32.mxu0 %vm13579_vm0, %v15466_v0 }
 0xe19   :  { %13370 = vmatprep.subr.bf16.mxu0 %v15483_v39 }
 0xe1c   :  { %13372 = vmatpush3.bf16.msra.mxu0 %v15163_v37 }
 0xe1d   :  { %13379 = vmatprep.subr.bf16.mxu0 %v15483_v39 }
 0xe3d   :  { %v9897_v1 = vpop.f32.mrb[122].mxu1 }
 0xe3e   :  { %v10196_v2 = vadd.f32 %v9897_v1, %v14918_v41  ;;  %v12978_v32 = vpop.f32.mrb[123].mxu1  ;;  %v10254_v41 = vpop.permute.xlu1 %10253 }
 0xe3f   :  { %vm10268_vm13 = vcmp.eq.s32.totalorder %v10254_v41, 1 }
 0xe40   :  { %v10211_v6 = vadd.f32 %v15172_v51, %v10196_v2 }
 0xe41   :  { %v10043_v52 = vpop.f32.mrb[124].mxu1 }
 0xe42   :  { %v10275_v7 = vsel %vm10267_vm15, 0.0, %v10211_v6  ;;  %v9970_v11 = vpop.f32.mrb[124].mxu0  ;;  %v10198_v18 = vadd.f32 %v10043_v52, %v14921_v42  ;;  %v12988_v62 = vpop.f32.mrb[125].mxu1  ;;  %vm15497_vm15 = vmmov %vm15492_vm1 }
 0xe43   :  { %v10197_v19 = vadd.f32 %v9970_v11, %v14924_v58  ;;  %v12983_v10 = vpop.f32.mrb[125].mxu0  ;;  %13041 = vmatmul.mubr.msk.f32.vlgmr.msra.gmra.mrb[130].mxu1 %vm15487_vm4, %v10275_v7  ;;  %v10260_v38 = vpop.permute.xlu1 %10259  ;;  %vm15498_vm4 = vmmov %vm15492_vm1 }
 0xe44   :  { %13375 = vmatpush3.bf16.msra.mxu1 %v15141_v60  ;;  %13062 = vmatprep.mubr.msk.f32.mxu1 %vm13579_vm0, %v15466_v0  ;;  %v10213_v22 = vadd.f32 %v15172_v51, %v10198_v18  ;;  %vm10270_vm8 = vcmp.eq.s32.totalorder %v10260_v38, 1 }
 0xe45   :  { %v10212_v21 = vadd.f32 %v15172_v51, %v10197_v19  ;;  %13376 = vmatprep.subr.bf16.mxu1 %v15483_v39 }
 0xe46   :  { %v10116_v42 = vpop.f32.mrb[126].mxu0  ;;  %v10277_v35 = vsel %vm10269_vm5, 0.0, %v10213_v22 }
 0xe47   :  { %v10276_v24 = vsel %vm10268_vm13, 0.0, %v10212_v21  ;;  %v10199_v58 = vadd.f32 %v10116_v42, %v14930_v57  ;;  %v12993_v15 = vpop.f32.mrb[127].mxu0  ;;  %v10883_v57 = vld [vmem:[%s15443_s12] sm:$0xff]  ;;  %vm15499_vm13 = vmmov %vm15492_vm1 }
 0xe48   :  { %13052 = vmatmul.mubr.msk.f32.vlgmr.msra.gmra.mrb[132].mxu0 %vm15488_vm2, %v10276_v24  ;;  %13378 = vmatpush3.bf16.msra.mxu1 %v15163_v37 }
 0xe49   :  { %13381 = vmatpush3.bf16.msra.mxu0 %v15141_v60  ;;  %v10189_v23 = vpop.f32.mrb[126].mxu1  ;;  %13385 = vmatprep.subr.bf16.mxu1 %v15483_v39  ;;  %v10214_v34 = vadd.f32 %v15172_v51, %v10199_v58 }
 0xe4a   :  { %v10200_v26 = vadd.f32 %v10189_v23, %v14927_v9  ;;  %v12998_v59 = vpop.f32.mrb[127].mxu1  ;;  %13382 = vmatprep.subr.bf16.mxu0 %v15483_v39  ;;  %13073 = vmatprep.mubr.msk.f32.mxu0 %vm13579_vm0, %v15466_v0  ;;  %v15234_v9 = vpack.c.bf16 %v10884_v56, %v10883_v57 }
 0xe4b   :  { %13063 = vmatmul.mubr.msk.f32.vlgmr.msra.gmra.mrb[132].mxu1 %vm15489_vm7, %v10277_v35  ;;  %v10278_v27 = vsel %vm10270_vm8, 0.0, %v10214_v34 }
 0xe4c   :  { %13387 = vmatpush3.bf16.msra.mxu1 %v15141_v60  ;;  %13084 = vmatprep.mubr.msk.f32.mxu1 %vm13579_vm0, %v15466_v0  ;;  %v10215_v47 = vadd.f32 %v15172_v51, %v10200_v26  ;;  %v15256_v60 = vpack.c.bf16 %v10886_v5, %v10885_v31 }
 0xe4d   :  { %13384 = vmatpush3.bf16.msra.mxu0 %v15163_v37  ;;  %13388 = vmatprep.subr.bf16.mxu1 %v15483_v39 }
 0xe4e   :  { %13391 = vmatprep.subr.bf16.mxu0 %v15483_v39  ;;  %v10279_v46 = vsel %vm10271_vm10, 0.0, %v10215_v47 }
 0xe50   :  { %13074 = vmatmul.mubr.msk.f32.vlgmr.msra.gmra.mrb[134].mxu0 %vm15490_vm9, %v10278_v27  ;;  %13390 = vmatpush3.bf16.msra.mxu1 %v15163_v37 }
 0xe51   :  { %13393 = vmatpush3.bf16.msra.mxu0 %v15234_v9  ;;  %13397 = vmatprep.subr.bf16.mxu1 %v15483_v39 }
 0xe52   :  { %13394 = vmatprep.subr.bf16.mxu0 %v15483_v39  ;;  %13095 = vmatprep.mubr.msk.f32.mxu0 %vm13579_vm0, %v15466_v0 }
 0xe53   :  { %13085 = vmatmul.mubr.msk.f32.vlgmr.msra.gmra.mrb[134].mxu1 %vm15491_vm3, %v10279_v46 }
 0xe54   :  { %13399 = vmatpush3.bf16.msra.mxu1 %v15234_v9  ;;  %13106 = vmatprep.mubr.msk.f32.mxu1 %vm13579_vm0, %v15466_v0 }
 0xe55   :  { %13400 = vmatprep.subr.bf16.mxu1 %v15483_v39  ;;  %13396 = vmatpush3.bf16.msra.mxu0 %v15256_v60 }
 0xe56   :  { %13403 = vmatprep.subr.bf16.mxu0 %v15483_v39 }
 0xe58   :  { %13402 = vmatpush3.bf16.msra.mxu1 %v15256_v60 }
 0xe59   :  { %13409 = vmatprep.subr.bf16.mxu1 %v15483_v39 }
 0xee1   :  { %v10433_v30 = vpop.f32.mrb[128].mxu1 }
 0xee2   :  { %v10360_v17 = vpop.f32.mrb[128].mxu0  ;;  %v10434_v55 = vadd.f32 %v15265_v40, %v10433_v30  ;;  %v13020_v54 = vpop.f32.mrb[129].mxu1 }
 0xee3   :  { %v10361_v29 = vadd.f32 %v15265_v40, %v10360_v17  ;;  %v13009_v37 = vpop.f32.mrb[129].mxu0 }
 0xee4   :  { %v10876_v3 = vmax.f32 %v10434_v55, 0.0 }
 0xee5   :  { %v10875_v51 = vmax.f32 %v10361_v29, 0.0 }
 0xee6   :  { %13107 = vmatmul.mubr.msk.f32.vlgmr.msra.gmra.mrb[136].mxu1 %vm15492_vm1, %v10876_v3 }
 0xee7   :  { %13096 = vmatmul.mubr.msk.f32.vlgmr.msra.gmra.mrb[136].mxu0 %vm15493_vm6, %v10875_v51  ;;  %13411 = vmatpush3.bf16.msra.mxu1 %v15234_v9 }
 0xee8   :  { %13405 = vmatpush3.bf16.msra.mxu0 %v15234_v9  ;;  %13117 = vmatprep.mubr.msk.f32.mxu0 %vm13579_vm0, %v15466_v0 }
 0xee9   :  { %13406 = vmatprep.subr.bf16.mxu0 %v15483_v39  ;;  %13412 = vmatprep.subr.bf16.mxu1 %v15483_v39 }
 0xeea   :  { %v10506_v25 = vpop.f32.mrb[130].mxu0  ;;  %13128 = vmatprep.mubr.msk.f32.mxu1 %vm13579_vm0, %v15466_v0 }
 0xeeb   :  { %v10507_v50 = vadd.f32 %v15265_v40, %v10506_v25  ;;  %v13031_v45 = vpop.f32.mrb[131].mxu0  ;;  %13414 = vmatpush3.bf16.msra.mxu1 %v15256_v60 }
 0xeec   :  { %13408 = vmatpush3.bf16.msra.mxu0 %v15256_v60  ;;  %13421 = vmatprep.subr.bf16.mxu1 %v15483_v39 }
 0xeed   :  { %v10877_v43 = vmax.f32 %v10507_v50, 0.0  ;;  %13415 = vmatprep.subr.bf16.mxu0 %v15483_v39 }
 0xeef   :  { %13118 = vmatmul.mubr.msk.f32.vlgmr.msra.gmra.mrb[138].mxu0 %vm15494_vm11, %v10877_v43 }
 0xef0   :  { %13417 = vmatpush3.bf16.msra.mxu0 %v15234_v9  ;;  %13139 = vmatprep.mubr.msk.f32.mxu0 %vm13579_vm0, %v15466_v0 }
 0xef1   :  { %13418 = vmatprep.subr.bf16.mxu0 %v15483_v39 }
 0xef4   :  { %13420 = vmatpush3.bf16.msra.mxu0 %v15256_v60 }
 0xef5   :  { %13427 = vmatprep.subr.bf16.mxu0 %v15483_v39 }
 0xf16   :  { %v10579_v61 = vpop.f32.mrb[130].mxu1 }
 0xf17   :  { %v10580_v36 = vadd.f32 %v15265_v40, %v10579_v61  ;;  %v13042_v13 = vpop.f32.mrb[131].mxu1 }
 0xf19   :  { %v10878_v53 = vmax.f32 %v10580_v36, 0.0 }
 0xf1b   :  { %v10652_v20 = vpop.f32.mrb[132].mxu0  ;;  %13129 = vmatmul.mubr.msk.f32.vlgmr.msra.gmra.mrb[138].mxu1 %vm15495_vm12, %v10878_v53 }
 0xf1c   :  { %v10653_v33 = vadd.f32 %v15265_v40, %v10652_v20  ;;  %v13053_v28 = vpop.f32.mrb[133].mxu0  ;;  %13423 = vmatpush3.bf16.msra.mxu1 %v15234_v9  ;;  %13150 = vmatprep.mubr.msk.f32.mxu1 %vm13579_vm0, %v15466_v0 }
 0xf1d   :  { %13424 = vmatprep.subr.bf16.mxu1 %v15483_v39 }
 0xf1e   :  { %v10879_v16 = vmax.f32 %v10653_v33, 0.0  ;;  %v10725_v8 = vpop.f32.mrb[132].mxu1 }
 0xf1f   :  { %v10726_v4 = vadd.f32 %v15265_v40, %v10725_v8  ;;  %v13064_v63 = vpop.f32.mrb[133].mxu1 }
 0xf20   :  { %13140 = vmatmul.mubr.msk.f32.vlgmr.msra.gmra.mrb[140].mxu0 %vm15496_vm14, %v10879_v16  ;;  %13426 = vmatpush3.bf16.msra.mxu1 %v15256_v60 }
 0xf21   :  { %v10880_v49 = vmax.f32 %v10726_v4, 0.0  ;;  %13429 = vmatpush3.bf16.msra.mxu0 %v15234_v9  ;;  %13433 = vmatprep.subr.bf16.mxu1 %v15483_v39 }
 0xf22   :  { %13430 = vmatprep.subr.bf16.mxu0 %v15483_v39  ;;  %13161 = vmatprep.mubr.msk.f32.mxu0 %vm13579_vm0, %v15466_v0 }
 0xf23   :  { %v10798_v12 = vpop.f32.mrb[134].mxu0  ;;  %13151 = vmatmul.mubr.msk.f32.vlgmr.msra.gmra.mrb[140].mxu1 %vm15497_vm15, %v10880_v49 }
 0xf24   :  { %v10799_v1 = vadd.f32 %v15265_v40, %v10798_v12  ;;  %v13075_v2 = vpop.f32.mrb[135].mxu0  ;;  %13435 = vmatpush3.bf16.msra.mxu1 %v15234_v9  ;;  %13172 = vmatprep.mubr.msk.f32.mxu1 %vm13579_vm0, %v15466_v0  ;;  %v11774_v0 = vld [vmem:[%s15445_s13] ss:$0 sm:$0xff]  ;;  %vm11478_vm0 = vcmask 256000   ;;  %s13586_s13 = smov 64  }
 0xf25   :  { %13432 = vmatpush3.bf16.msra.mxu0 %v15256_v60  ;;  %13436 = vmatprep.subr.bf16.mxu1 %v15483_v39 }
 0xf26   :  { %v10881_v32 = vmax.f32 %v10799_v1, 0.0  ;;  %v10871_v44 = vpop.f32.mrb[134].mxu1 }
 0xf27   :  { %v10872_v6 = vadd.f32 %v15265_v40, %v10871_v44  ;;  %v13086_v52 = vpop.f32.mrb[135].mxu1 }
 0xf28   :  { %13162 = vmatmul.mubr.msk.f32.vlgmr.msra.gmra.mrb[142].mxu0 %vm15498_vm4, %v10881_v32  ;;  %13438 = vmatpush3.bf16.msra.mxu1 %v15256_v60 }
 0xf29   :  { %v10882_v7 = vmax.f32 %v10872_v6, 0.0 }
 0xf2b   :  { %13173 = vmatmul.mubr.msk.f32.vlgmr.msra.gmra.mrb[142].mxu1 %vm15499_vm13, %v10882_v7 }
 0xfb9   :  { %v11036_v11 = vpop.f32.mrb[136].mxu1 }
 0xfba   :  { %v10963_v18 = vpop.f32.mrb[136].mxu0  ;;  %v11037_v39 = vadd.f32 %v11774_v0, %v11036_v11  ;;  %v13108_v62 = vpop.f32.mrb[137].mxu1 }
 0xfbb   :  { %v10964_v19 = vadd.f32 %v11774_v0, %v10963_v18  ;;  %v13097_v10 = vpop.f32.mrb[137].mxu0 }
 0xfbc   :  { %11480 = vst.msk [vmem:[%s15446_s14 + $0x4] sm:$0x7] %vm11478_vm0, %v11037_v39  ;;  %11497 = vrot.lane.b32.xlu0 %v11037_v39, %s13585_s0 }
 0xfbd   :  { %11479 = vst.msk [vmem:[%s15446_s14] sm:$0x7] %vm11478_vm0, %v10964_v19  ;;  %11495 = vrot.lane.b32.xlu1 %v10964_v19, %s13585_s0 }
 0xfc0   :  { %11529 = vrot.lane.b32.xlu0 %v11037_v39, %s13586_s13 }
 0xfc1   :  { %11527 = vrot.lane.b32.xlu1 %v10964_v19, %s13586_s13 }
 0xfc2   :  { %v11109_v41 = vpop.f32.mrb[138].mxu0 }
 0xfc3   :  { %v11110_v21 = vadd.f32 %v11774_v0, %v11109_v41  ;;  %v13119_v22 = vpop.f32.mrb[139].mxu0 }
 0xfc5   :  { %11481 = vst.msk [vmem:[%s15446_s14 + $0x8] sm:$0x7] %vm11478_vm0, %v11110_v21  ;;  %11499 = vrot.lane.b32.xlu1 %v11110_v21, %s13585_s0 }
 0xfc9   :  { %11531 = vrot.lane.b32.xlu1 %v11110_v21, %s13586_s13 }
 0xfee   :  { %v11182_v42 = vpop.f32.mrb[138].mxu1 }
 0xfef   :  { %v11183_v24 = vadd.f32 %v11774_v0, %v11182_v42  ;;  %v13130_v58 = vpop.f32.mrb[139].mxu1 }
 0xff1   :  { %11482 = vst.msk [vmem:[%s15446_s14 + $0xc] sm:$0x7] %vm11478_vm0, %v11183_v24  ;;  %11501 = vrot.lane.b32.xlu0 %v11183_v24, %s13585_s0 }
 0xff3   :  { %v11255_v15 = vpop.f32.mrb[140].mxu0 }
 0xff4   :  { %v11256_v48 = vadd.f32 %v11774_v0, %v11255_v15  ;;  %v13141_v23 = vpop.f32.mrb[141].mxu0 }
 0xff5   :  { %11533 = vrot.lane.b32.xlu0 %v11183_v24, %s13586_s13 }
 0xff6   :  { %11483 = vst.msk [vmem:[%s15446_s14 + $0x10] sm:$0x7] %vm11478_vm0, %v11256_v48  ;;  %v11328_v35 = vpop.f32.mrb[140].mxu1  ;;  %11503 = vrot.lane.b32.xlu1 %v11256_v48, %s13585_s0 }
 0xff7   :  { %v11329_v26 = vadd.f32 %v11774_v0, %v11328_v35  ;;  %v13152_v59 = vpop.f32.mrb[141].mxu1 }
 0xff9   :  { %11484 = vst.msk [vmem:[%s15446_s14 + $0x14] sm:$0x7] %vm11478_vm0, %v11329_v26  ;;  %11505 = vrot.lane.b32.xlu0 %v11329_v26, %s13585_s0 }
 0xffa   :  { %11535 = vrot.lane.b32.xlu1 %v11256_v48, %s13586_s13 }
 0xffb   :  { %v11401_v57 = vpop.f32.mrb[142].mxu0 }
 0xffc   :  { %v11402_v56 = vadd.f32 %v11774_v0, %v11401_v57  ;;  %v13163_v38 = vpop.f32.mrb[143].mxu0 }
 0xffd   :  { %11537 = vrot.lane.b32.xlu0 %v11329_v26, %s13586_s13 }
 0xffe   :  { %11485 = vst.msk [vmem:[%s15446_s14 + $0x18] sm:$0x7] %vm11478_vm0, %v11402_v56  ;;  %v11474_v34 = vpop.f32.mrb[142].mxu1  ;;  %11507 = vrot.lane.b32.xlu1 %v11402_v56, %s13585_s0 }
 0xfff   :  { %v11475_v9 = vadd.f32 %v11774_v0, %v11474_v34  ;;  %v13174_v14 = vpop.f32.mrb[143].mxu1 }
0x1001   :  { %11486 = vst.msk [vmem:[%s15446_s14 + $0x1c] sm:$0x7] %vm11478_vm0, %v11475_v9  ;;  %11509 = vrot.lane.b32.xlu0 %v11475_v9, %s13585_s0 }
0x1002   :  { %11539 = vrot.lane.b32.xlu1 %v11402_v56, %s13586_s13 }
0x1005   :  { %11541 = vrot.lane.b32.xlu0 %v11475_v9, %s13586_s13 }
0x102e   :  { %v11498_v47 = vpop.permute.xlu0 %11497 }
0x102f   :  { %11520 = vst.msk [vmem:[%s15447_s15 + $0x4] sm:$0x7] %vm11478_vm0, %v11498_v47  ;;  %v11496_v27 = vpop.permute.xlu1 %11495 }
0x1030   :  { %11519 = vst.msk [vmem:[%s15447_s15] sm:$0x7] %vm11478_vm0, %v11496_v27 }
0x1032   :  { %v11530_v46 = vpop.permute.xlu0 %11529 }
0x1033   :  { %11552 = vst.msk [vmem:[%s15448_s16 + $0x4] sm:$0x7] %vm11478_vm0, %v11530_v46  ;;  %v11528_v31 = vpop.permute.xlu1 %11527 }
0x1034   :  { %11551 = vst.msk [vmem:[%s15448_s16] sm:$0x7] %vm11478_vm0, %v11528_v31 }
0x1037   :  { %v11500_v5 = vpop.permute.xlu1 %11499 }
0x1038   :  { %11521 = vst.msk [vmem:[%s15447_s15 + $0x8] sm:$0x7] %vm11478_vm0, %v11500_v5 }
0x103b   :  { %v11532_v60 = vpop.permute.xlu1 %11531 }
0x103c   :  { %11553 = vst.msk [vmem:[%s15448_s16 + $0x8] sm:$0x7] %vm11478_vm0, %v11532_v60 }
0x1063   :  { %v11502_v40 = vpop.permute.xlu0 %11501 }
0x1064   :  { %11522 = vst.msk [vmem:[%s15447_s15 + $0xc] sm:$0x7] %vm11478_vm0, %v11502_v40 }
0x1067   :  { %v11534_v30 = vpop.permute.xlu0 %11533 }
0x1068   :  { %11554 = vst.msk [vmem:[%s15448_s16 + $0xc] sm:$0x7] %vm11478_vm0, %v11534_v30  ;;  %v11504_v17 = vpop.permute.xlu1 %11503 }
0x1069   :  { %11523 = vst.msk [vmem:[%s15447_s15 + $0x10] sm:$0x7] %vm11478_vm0, %v11504_v17 }
0x106b   :  { %v11506_v55 = vpop.permute.xlu0 %11505 }
0x106c   :  { %11524 = vst.msk [vmem:[%s15447_s15 + $0x14] sm:$0x7] %vm11478_vm0, %v11506_v55  ;;  %v11536_v54 = vpop.permute.xlu1 %11535 }
0x106d   :  { %11555 = vst.msk [vmem:[%s15448_s16 + $0x10] sm:$0x7] %vm11478_vm0, %v11536_v54 }
0x106f   :  { %v11538_v29 = vpop.permute.xlu0 %11537 }
0x1070   :  { %11556 = vst.msk [vmem:[%s15448_s16 + $0x14] sm:$0x7] %vm11478_vm0, %v11538_v29  ;;  %v11508_v37 = vpop.permute.xlu1 %11507 }
0x1071   :  { %11525 = vst.msk [vmem:[%s15447_s15 + $0x18] sm:$0x7] %vm11478_vm0, %v11508_v37 }
0x1073   :  { %v11510_v3 = vpop.permute.xlu0 %11509 }
0x1074   :  { %11526 = vst.msk [vmem:[%s15447_s15 + $0x1c] sm:$0x7] %vm11478_vm0, %v11510_v3  ;;  %v11540_v51 = vpop.permute.xlu1 %11539 }
0x1075   :  { %11557 = vst.msk [vmem:[%s15448_s16 + $0x18] sm:$0x7] %vm11478_vm0, %v11540_v51 }
0x1077   :  { %v11542_v25 = vpop.permute.xlu0 %11541 }
0x1078   :  { %11558 = vst.msk [vmem:[%s15448_s16 + $0x1c] sm:$0x7] %vm11478_vm0, %v11542_v25 }

</bundles_post_ra>
